<compile_context>
chip_gen: v5e
topology: v5e:2x2
jax: 0.10.0
libtpu: 0.0.40
codegen_flags: <defaults>
</compile_context>

<pallas_src>
import functools
import math

import jax
import jax.numpy as jnp
from jax.experimental import pallas as pl
from jax.experimental.pallas import tpu as pltpu

# Explicit scoped-VMEM budget: resident weights here are ~1.5 MiB (x2 for buffering),
# far under this; 32 MiB is safe on v5e/v6e/v7x.
_VMEM_LIMIT = 32 * 1024 * 1024


def _full_spec(arr):
    """Whole-array VMEM block (constant index map -> fetched once, resident across grid)."""
    nd = arr.ndim
    return pl.BlockSpec(arr.shape, lambda i, _nd=nd: (0,) * _nd)


def _layernorm(h, g, b, eps):
    mean = jnp.mean(h, axis=-1, keepdims=True)
    cen = h - mean
    var = jnp.mean(cen * cen, axis=-1, keepdims=True)
    return cen * jax.lax.rsqrt(var + eps) * g + b


# -----------------------------------------------------------------------------
# Fully fused forward kernel (one batch element per grid step)
# -----------------------------------------------------------------------------
def _forecaster_kernel(z_ref, tt_ref, pos_ref,
                       dw1_ref, db1_ref, dw2_ref, db2_ref,
                       wqkv_ref, bqkv_ref, wo_ref, bo_ref, ln1g_ref, ln1b_ref,
                       fw1_ref, fb1_ref, fw2_ref, fb2_ref, ln2g_ref, ln2b_ref,
                       ww_ref, wb_ref, o_ref,
                       *, W, T, d_model, num_heads, depth, eps=1e-5):
    D = d_model
    S = W * (T + 1)
    dh = D // num_heads
    scale = 1.0 / math.sqrt(dh)

    # ---- latent decoder: 2-layer MLP, (W, din) -> (W, T*D), bf16 matmuls / f32 accum --
    zr = z_ref[0].astype(jnp.bfloat16)                                     # (W, din)
    h = jnp.dot(zr, dw1_ref[...], preferred_element_type=jnp.float32) + db1_ref[...]
    h = jnp.maximum(h, 0.0)
    dec = jnp.dot(h.astype(jnp.bfloat16), dw2_ref[...],
                  preferred_element_type=jnp.float32) + db2_ref[...]       # (W, T*D)

    # ---- assemble the (S, D) sequence: [time tokens | decoded rows] ------------------
    # Decoded rows are kept in internal t-major order (row W + t*W + w holds the
    # reference's row W + w*T + t), produced by a plain concat of T lane-slices.
    # pos_ref / ww_ref were permuted on the host to match, so semantics are unchanged.
    x = jnp.concatenate(
        [tt_ref[0]] + [dec[:, t * D:(t + 1) * D] for t in range(T)], axis=0)
    x = x + pos_ref[...]                                                   # (S, D) f32

    # ---- transformer encoder blocks (post-norm, depth static-unrolled) ---------------
    for d in range(depth):
        xb = x.astype(jnp.bfloat16)
        qkv = jnp.dot(xb, wqkv_ref[d], preferred_element_type=jnp.float32) + bqkv_ref[d]
        qb = (qkv[:, :D] * scale).astype(jnp.bfloat16)                     # cast once
        kb = qkv[:, D:2 * D].astype(jnp.bfloat16)
        vb = qkv[:, 2 * D:].astype(jnp.bfloat16)

        heads = []
        for hd in range(num_heads):
            lo = hd * dh
            s = jax.lax.dot_general(qb[:, lo:lo + dh], kb[:, lo:lo + dh],
                                    (((1,), (1,)), ((), ())),
                                    preferred_element_type=jnp.float32)    # (S, S)
            s = s - jnp.max(s, axis=-1, keepdims=True)
            p = jnp.exp(s)
            p = p / jnp.sum(p, axis=-1, keepdims=True)                     # exact softmax
            heads.append(jnp.dot(p.astype(jnp.bfloat16), vb[:, lo:lo + dh],
                                 preferred_element_type=jnp.float32))      # (S, dh)
        a = jnp.concatenate(heads, axis=-1)                                # (S, D) dense
        attn = jnp.dot(a.astype(jnp.bfloat16), wo_ref[d],
                       preferred_element_type=jnp.float32) + bo_ref[d]     # single Wo matmul

        x = _layernorm(x + attn, ln1g_ref[d], ln1b_ref[d], eps)
        f = jnp.dot(x.astype(jnp.bfloat16), fw1_ref[d],
                    preferred_element_type=jnp.float32) + fb1_ref[d]
        f = jnp.maximum(f, 0.0)
        f = jnp.dot(f.astype(jnp.bfloat16), fw2_ref[d],
                    preferred_element_type=jnp.float32) + fb2_ref[d]
        x = _layernorm(x + f, ln2g_ref[d], ln2b_ref[d], eps)

    # ---- wide linear head: y = flatten(x) @ W_perm + b --------------------------------
    # Computed as a statically-unrolled sum of per-row (1,D)x(D,NP) matmuls; identical
    # contraction (K = S*D total), avoids an in-kernel lane<->sublane reshape.
    xb = x.astype(jnp.bfloat16)
    y = wb_ref[...]                                                        # (1, NP) f32
    for r in range(S):
        y = y + jnp.dot(xb[r:r + 1, :], ww_ref[pl.ds(r * D, D), :],
                        preferred_element_type=jnp.float32)
    o_ref[0] = y


def forecaster_forward(params, z, tidx, c=None):
    """z: (N, W, dz), tidx: (N, W) int32 -> (mu, log_var) each (N, H*T, d_out)."""
    N, W, _ = z.shape
    dm, T, Hh, d_out = params["d_model"], params["T"], params["H"], params["d_out"]
    depth, num_heads = params["depth"], params["num_heads"]
    NP = params["wide_w"].shape[1]

    # TODO(synk): exact wide_decoding conditioning path unknown; concat c features if given.
    x_in = z if c is None else jnp.concatenate([z, c], axis=-1)
    din = x_in.shape[-1]
    # tiny embedding gather stays in XLA; everything downstream runs in one fused kernel
    time_tok = jnp.take(params["time_emb_table"], tidx, axis=0)            # (N, W, dm)

    weights = (params["pos_perm"],
               params["dec_w1"], params["dec_b1"], params["dec_w2"], params["dec_b2"],
               params["wqkv"], params["bqkv"], params["wo"], params["bo"],
               params["ln1_g"], params["ln1_b"],
               params["ffn_w1"], params["ffn_b1"], params["ffn_w2"], params["ffn_b2"],
               params["ln2_g"], params["ln2_b"],
               params["wide_w"], params["wide_b"])

    kernel = functools.partial(_forecaster_kernel, W=W, T=T, d_model=dm,
                               num_heads=num_heads, depth=depth)
    in_specs = ([pl.BlockSpec((1, W, din), lambda i: (i, 0, 0)),
                 pl.BlockSpec((1, W, dm), lambda i: (i, 0, 0))]
                + [_full_spec(a) for a in weights])

    out = pl.pallas_call(
        kernel,
        grid=(N,),
        in_specs=in_specs,
        out_specs=pl.BlockSpec((1, 1, NP), lambda i: (i, 0, 0)),
        out_shape=jax.ShapeDtypeStruct((N, 1, NP), jnp.float32),
        compiler_params=pltpu.CompilerParams(
            dimension_semantics=("parallel",), vmem_limit_bytes=_VMEM_LIMIT),
    )(x_in, time_tok, *weights)

    y = out[:, 0, :params["n_out"]]
    mu, log_var = jnp.split(y, 2, axis=-1)
    out_len = Hh * T
    return mu.reshape(N, out_len, d_out), log_var.reshape(N, out_len, d_out)


# -----------------------------------------------------------------------------
# Parameters
# -----------------------------------------------------------------------------
def sincos_positional_encoding(d_model, max_len):
    pos = jnp.arange(max_len, dtype=jnp.float32)[:, None]
    div = jnp.exp(jnp.arange(0, d_model, 2, dtype=jnp.float32)
                  * (-math.log(10000.0) / d_model))
    pe = jnp.zeros((max_len, d_model), jnp.float32)
    pe = pe.at[:, 0::2].set(jnp.sin(pos * div))
    pe = pe.at[:, 1::2].set(jnp.cos(pos * div))
    return pe


def init_params(key, *, dz, dc, d_out, W, H, T, d_model=128, num_heads=4, depth=2):
    assert d_model % 128 == 0 and d_model % num_heads == 0
    ff = 3 * d_model
    S = W * (T + 1)                   # time_emb=True -> W extra time tokens
    K = d_model * S
    n_out = d_out * H * T * 2
    NP = ((n_out + 127) // 128) * 128

    keys = jax.random.split(key, 64)
    ki = iter(keys)

    def w(shape, dtype=jnp.bfloat16, scale=0.02):
        return (scale * jax.random.normal(next(ki), shape, jnp.float32)).astype(dtype)

    # ---- internal row-order permutation (decoded rows t-major inside the kernel) ----
    pos = sincos_positional_encoding(d_model, S)                 # reference row order
    j = jnp.arange(W * T)
    perm = jnp.concatenate([jnp.arange(W), W + (j % W) * T + (j // W)])   # internal->orig
    pos_perm = pos[perm]                                                   # (S, dm)

    # wide head weight (in, out) built in reference row order, then row-block-permuted
    wide_w = jnp.zeros((K, NP), jnp.float32)
    wide_w = wide_w.at[:, :n_out].set(
        0.02 * jax.random.normal(next(ki), (K, n_out), jnp.float32))
    wide_w = wide_w.reshape(S, d_model, NP)[perm].reshape(K, NP).astype(jnp.bfloat16)

    def stack(make):
        return jnp.stack([make() for _ in range(depth)], axis=0)

    params = dict(
        d_model=d_model, T=T, H=H, W=W, d_out=d_out, depth=depth,
        num_heads=num_heads, n_out=n_out,
        # latent decoder (wide_decoding approximated as 2-layer MLP)
        dec_w1=w((dz + dc, d_model)), dec_b1=jnp.zeros((1, d_model), jnp.float32),
        dec_w2=w((d_model, T * d_model)), dec_b2=jnp.zeros((1, T * d_model), jnp.float32),
        time_emb_table=w((550, d_model), dtype=jnp.float32),
        pos_perm=pos_perm,
        wide_w=wide_w, wide_b=jnp.zeros((1, NP), jnp.float32),
        # transformer-block weights stacked along a leading depth axis
        wqkv=stack(lambda: w((d_model, 3 * d_model))),
        bqkv=jnp.zeros((depth, 1, 3 * d_model), jnp.float32),
        wo=stack(lambda: w((d_model, d_model))),
        bo=jnp.zeros((depth, 1, d_model), jnp.float32),
        ln1_g=jnp.ones((depth, 1, d_model), jnp.float32),
        ln1_b=jnp.zeros((depth, 1, d_model), jnp.float32),
        ffn_w1=stack(lambda: w((d_model, ff))),
        ffn_b1=jnp.zeros((depth, 1, ff), jnp.float32),
        ffn_w2=stack(lambda: w((ff, d_model))),
        ffn_b2=jnp.zeros((depth, 1, d_model), jnp.float32),
        ln2_g=jnp.ones((depth, 1, d_model), jnp.float32),
        ln2_b=jnp.zeros((depth, 1, d_model), jnp.float32),
    )
    return params


if __name__ == "__main__":
    # small shapes consistent with the module's forward
    N, W, dz, dc = 2, 4, 8, 0
    d_out, H, T, d_model = 3, 2, 4, 128

    key = jax.random.PRNGKey(0)
    kp, kz = jax.random.split(key)
    params = init_params(kp, dz=dz, dc=dc, d_out=d_out, W=W, H=H, T=T,
                         d_model=d_model, num_heads=4, depth=2)

    z = jax.random.normal(kz, (N, W, dz), dtype=jnp.float32)
    tidx = (jnp.arange(N * W, dtype=jnp.int32).reshape(N, W)) % 550

    mu, log_var = forecaster_forward(params, z, tidx)
    jax.block_until_ready((mu, log_var))

    assert mu.shape == (N, H * T, d_out), mu.shape
    assert log_var.shape == (N, H * T, d_out), log_var.shape
    assert bool(jnp.all(jnp.isfinite(mu))) and bool(jnp.all(jnp.isfinite(log_var)))
    print("KERNEL_OK")
</pallas_src>

<mosaic_0001>
module attributes {stable_mosaic.version = 11 : i64} {
  func.func @_forecaster_kernel(%arg0: i32, %arg1: memref<1x4x8xf32, #tpu.memory_space<vmem>>, %arg2: memref<1x4x128xf32, #tpu.memory_space<vmem>>, %arg3: memref<20x128xf32, #tpu.memory_space<vmem>>, %arg4: memref<8x128xbf16, #tpu.memory_space<vmem>>, %arg5: memref<1x128xf32, #tpu.memory_space<vmem>>, %arg6: memref<128x512xbf16, #tpu.memory_space<vmem>>, %arg7: memref<1x512xf32, #tpu.memory_space<vmem>>, %arg8: memref<2x128x384xbf16, #tpu.memory_space<vmem>>, %arg9: memref<2x1x384xf32, #tpu.memory_space<vmem>>, %arg10: memref<2x128x128xbf16, #tpu.memory_space<vmem>>, %arg11: memref<2x1x128xf32, #tpu.memory_space<vmem>>, %arg12: memref<2x1x128xf32, #tpu.memory_space<vmem>>, %arg13: memref<2x1x128xf32, #tpu.memory_space<vmem>>, %arg14: memref<2x128x384xbf16, #tpu.memory_space<vmem>>, %arg15: memref<2x1x384xf32, #tpu.memory_space<vmem>>, %arg16: memref<2x384x128xbf16, #tpu.memory_space<vmem>>, %arg17: memref<2x1x128xf32, #tpu.memory_space<vmem>>, %arg18: memref<2x1x128xf32, #tpu.memory_space<vmem>>, %arg19: memref<2x1x128xf32, #tpu.memory_space<vmem>>, %arg20: memref<2560x128xbf16, #tpu.memory_space<vmem>>, %arg21: memref<1x128xf32, #tpu.memory_space<vmem>>, %arg22: memref<1x1x128xf32, #tpu.memory_space<vmem>>) attributes {dimension_semantics = [#tpu.dimension_semantics<parallel>], iteration_bounds = array<i64: 2>, scalar_prefetch = 0 : i64, scratch_operands = 0 : i64, tpu.core_type = #tpu.core_type<tc>, window_params = [{transform_indices = @transform_0, window_bounds = array<i64: 1, 4, 8>}, {transform_indices = @transform_1, window_bounds = array<i64: 1, 4, 128>}, {pipeline_mode = #tpu.pipeline_mode<synchronous>, transform_indices = @transform_2, window_bounds = array<i64: 20, 128>}, {pipeline_mode = #tpu.pipeline_mode<synchronous>, transform_indices = @transform_3, window_bounds = array<i64: 8, 128>}, {pipeline_mode = #tpu.pipeline_mode<synchronous>, transform_indices = @transform_4, window_bounds = array<i64: 1, 128>}, {pipeline_mode = #tpu.pipeline_mode<synchronous>, transform_indices = @transform_5, window_bounds = array<i64: 128, 512>}, {pipeline_mode = #tpu.pipeline_mode<synchronous>, transform_indices = @transform_6, window_bounds = array<i64: 1, 512>}, {pipeline_mode = #tpu.pipeline_mode<synchronous>, transform_indices = @transform_7, window_bounds = array<i64: 2, 128, 384>}, {pipeline_mode = #tpu.pipeline_mode<synchronous>, transform_indices = @transform_8, window_bounds = array<i64: 2, 1, 384>}, {pipeline_mode = #tpu.pipeline_mode<synchronous>, transform_indices = @transform_9, window_bounds = array<i64: 2, 128, 128>}, {pipeline_mode = #tpu.pipeline_mode<synchronous>, transform_indices = @transform_10, window_bounds = array<i64: 2, 1, 128>}, {pipeline_mode = #tpu.pipeline_mode<synchronous>, transform_indices = @transform_11, window_bounds = array<i64: 2, 1, 128>}, {pipeline_mode = #tpu.pipeline_mode<synchronous>, transform_indices = @transform_12, window_bounds = array<i64: 2, 1, 128>}, {pipeline_mode = #tpu.pipeline_mode<synchronous>, transform_indices = @transform_13, window_bounds = array<i64: 2, 128, 384>}, {pipeline_mode = #tpu.pipeline_mode<synchronous>, transform_indices = @transform_14, window_bounds = array<i64: 2, 1, 384>}, {pipeline_mode = #tpu.pipeline_mode<synchronous>, transform_indices = @transform_15, window_bounds = array<i64: 2, 384, 128>}, {pipeline_mode = #tpu.pipeline_mode<synchronous>, transform_indices = @transform_16, window_bounds = array<i64: 2, 1, 128>}, {pipeline_mode = #tpu.pipeline_mode<synchronous>, transform_indices = @transform_17, window_bounds = array<i64: 2, 1, 128>}, {pipeline_mode = #tpu.pipeline_mode<synchronous>, transform_indices = @transform_18, window_bounds = array<i64: 2, 1, 128>}, {pipeline_mode = #tpu.pipeline_mode<synchronous>, transform_indices = @transform_19, window_bounds = array<i64: 2560, 128>}, {pipeline_mode = #tpu.pipeline_mode<synchronous>, transform_indices = @transform_20, window_bounds = array<i64: 1, 128>}, {transform_indices = @transform_21, window_bounds = array<i64: 1, 1, 128>}]} {
    %c0 = arith.constant 0 : index
    %c0_0 = arith.constant 0 : index
    %c0_1 = arith.constant 0 : index
    %0 = vector.load %arg1[%c0, %c0_0, %c0_1] : memref<1x4x8xf32, #tpu.memory_space<vmem>>, vector<1x4x8xf32>
    %1 = vector.shape_cast %0 : vector<1x4x8xf32> to vector<4x8xf32>
    %2 = arith.truncf %1 : vector<4x8xf32> to vector<4x8xbf16>
    %c0_2 = arith.constant 0 : index
    %c0_3 = arith.constant 0 : index
    %3 = vector.load %arg4[%c0_2, %c0_3] : memref<8x128xbf16, #tpu.memory_space<vmem>>, vector<8x128xbf16>
    %cst = arith.constant dense<0.000000e+00> : vector<4x128xf32>
    %4 = tpu.matmul %2, %3, %cst {dimension_numbers = #tpu.dot_dimension_numbers<[1], [0], [0], [1], [0, 0, 1, 1], [], []>} : vector<4x8xbf16>, vector<8x128xbf16>, vector<4x128xf32> -> vector<4x128xf32>
    %c0_4 = arith.constant 0 : index
    %c0_5 = arith.constant 0 : index
    %5 = vector.load %arg5[%c0_4, %c0_5] : memref<1x128xf32, #tpu.memory_space<vmem>>, vector<1x128xf32>
    %6 = vector.broadcast %5 : vector<1x128xf32> to vector<4x128xf32>
    %7 = arith.addf %4, %6 : vector<4x128xf32>
    %cst_6 = arith.constant 0.000000e+00 : f32
    %8 = vector.broadcast %cst_6 : f32 to vector<4x128xf32>
    %9 = arith.maximumf %7, %8 : vector<4x128xf32>
    %10 = arith.truncf %9 : vector<4x128xf32> to vector<4x128xbf16>
    %c0_7 = arith.constant 0 : index
    %c0_8 = arith.constant 0 : index
    %11 = vector.load %arg6[%c0_7, %c0_8] : memref<128x512xbf16, #tpu.memory_space<vmem>>, vector<128x512xbf16>
    %cst_9 = arith.constant dense<0.000000e+00> : vector<4x512xf32>
    %12 = tpu.matmul %10, %11, %cst_9 {dimension_numbers = #tpu.dot_dimension_numbers<[1], [0], [0], [1], [0, 0, 1, 1], [], []>} : vector<4x128xbf16>, vector<128x512xbf16>, vector<4x512xf32> -> vector<4x512xf32>
    %c0_10 = arith.constant 0 : index
    %c0_11 = arith.constant 0 : index
    %13 = vector.load %arg7[%c0_10, %c0_11] : memref<1x512xf32, #tpu.memory_space<vmem>>, vector<1x512xf32>
    %14 = vector.broadcast %13 : vector<1x512xf32> to vector<4x512xf32>
    %15 = arith.addf %12, %14 : vector<4x512xf32>
    %c0_12 = arith.constant 0 : index
    %c0_13 = arith.constant 0 : index
    %c0_14 = arith.constant 0 : index
    %16 = vector.load %arg2[%c0_12, %c0_13, %c0_14] : memref<1x4x128xf32, #tpu.memory_space<vmem>>, vector<1x4x128xf32>
    %17 = vector.shape_cast %16 : vector<1x4x128xf32> to vector<4x128xf32>
    %18 = vector.extract_strided_slice %15 {offsets = [0, 0], sizes = [4, 128], strides = [1, 1]} : vector<4x512xf32> to vector<4x128xf32>
    %19 = vector.extract_strided_slice %15 {offsets = [0, 128], sizes = [4, 128], strides = [1, 1]} : vector<4x512xf32> to vector<4x128xf32>
    %20 = vector.extract_strided_slice %15 {offsets = [0, 256], sizes = [4, 128], strides = [1, 1]} : vector<4x512xf32> to vector<4x128xf32>
    %21 = vector.extract_strided_slice %15 {offsets = [0, 384], sizes = [4, 128], strides = [1, 1]} : vector<4x512xf32> to vector<4x128xf32>
    %22 = tpu.concatenate %17, %18, %19, %20, %21 in 0 : vector<4x128xf32>, vector<4x128xf32>, vector<4x128xf32>, vector<4x128xf32>, vector<4x128xf32> -> vector<20x128xf32>
    %c0_15 = arith.constant 0 : index
    %c0_16 = arith.constant 0 : index
    %23 = vector.load %arg3[%c0_15, %c0_16] : memref<20x128xf32, #tpu.memory_space<vmem>>, vector<20x128xf32>
    %24 = arith.addf %22, %23 : vector<20x128xf32>
    %25 = arith.truncf %24 : vector<20x128xf32> to vector<20x128xbf16>
    %c0_17 = arith.constant 0 : index
    %c0_18 = arith.constant 0 : index
    %c0_19 = arith.constant 0 : index
    %26 = vector.load %arg8[%c0_17, %c0_18, %c0_19] : memref<2x128x384xbf16, #tpu.memory_space<vmem>>, vector<1x128x384xbf16>
    %27 = vector.shape_cast %26 : vector<1x128x384xbf16> to vector<128x384xbf16>
    %cst_20 = arith.constant dense<0.000000e+00> : vector<20x384xf32>
    %28 = tpu.matmul %25, %27, %cst_20 {dimension_numbers = #tpu.dot_dimension_numbers<[1], [0], [0], [1], [0, 0, 1, 1], [], []>} : vector<20x128xbf16>, vector<128x384xbf16>, vector<20x384xf32> -> vector<20x384xf32>
    %c0_21 = arith.constant 0 : index
    %c0_22 = arith.constant 0 : index
    %c0_23 = arith.constant 0 : index
    %29 = vector.load %arg9[%c0_21, %c0_22, %c0_23] : memref<2x1x384xf32, #tpu.memory_space<vmem>>, vector<1x1x384xf32>
    %30 = vector.shape_cast %29 : vector<1x1x384xf32> to vector<1x384xf32>
    %31 = vector.broadcast %30 : vector<1x384xf32> to vector<20x384xf32>
    %32 = arith.addf %28, %31 : vector<20x384xf32>
    %33 = vector.extract_strided_slice %32 {offsets = [0, 0], sizes = [20, 128], strides = [1, 1]} : vector<20x384xf32> to vector<20x128xf32>
    %cst_24 = arith.constant 0.176776692 : f32
    %34 = vector.broadcast %cst_24 : f32 to vector<20x128xf32>
    %35 = arith.mulf %33, %34 : vector<20x128xf32>
    %36 = arith.truncf %35 : vector<20x128xf32> to vector<20x128xbf16>
    %37 = vector.extract_strided_slice %32 {offsets = [0, 128], sizes = [20, 128], strides = [1, 1]} : vector<20x384xf32> to vector<20x128xf32>
    %38 = arith.truncf %37 : vector<20x128xf32> to vector<20x128xbf16>
    %39 = vector.extract_strided_slice %32 {offsets = [0, 256], sizes = [20, 128], strides = [1, 1]} : vector<20x384xf32> to vector<20x128xf32>
    %40 = arith.truncf %39 : vector<20x128xf32> to vector<20x128xbf16>
    %41 = vector.extract_strided_slice %36 {offsets = [0, 0], sizes = [20, 32], strides = [1, 1]} : vector<20x128xbf16> to vector<20x32xbf16>
    %42 = vector.extract_strided_slice %38 {offsets = [0, 0], sizes = [20, 32], strides = [1, 1]} : vector<20x128xbf16> to vector<20x32xbf16>
    %cst_25 = arith.constant dense<0.000000e+00> : vector<20x20xf32>
    %43 = tpu.matmul %41, %42, %cst_25 {dimension_numbers = #tpu.dot_dimension_numbers<[1], [1], [0], [0], [0, 0, 1, 0], [], []>} : vector<20x32xbf16>, vector<20x32xbf16>, vector<20x20xf32> -> vector<20x20xf32>
    %cst_26 = arith.constant dense<0xFF800000> : vector<20xf32>
    %44 = vector.multi_reduction <maximumf>, %43, %cst_26 [1] : vector<20x20xf32> to vector<20xf32>
    %45 = vector.shape_cast %44 : vector<20xf32> to vector<20x1xf32>
    %46 = vector.broadcast %45 : vector<20x1xf32> to vector<20x20xf32>
    %47 = arith.subf %43, %46 : vector<20x20xf32>
    %48 = math.exp %47 : vector<20x20xf32>
    %cst_27 = arith.constant dense<0.000000e+00> : vector<20xf32>
    %49 = vector.multi_reduction <add>, %48, %cst_27 [1] : vector<20x20xf32> to vector<20xf32>
    %50 = vector.shape_cast %49 : vector<20xf32> to vector<20x1xf32>
    %51 = vector.broadcast %50 : vector<20x1xf32> to vector<20x20xf32>
    %52 = arith.divf %48, %51 : vector<20x20xf32>
    %53 = arith.truncf %52 : vector<20x20xf32> to vector<20x20xbf16>
    %54 = vector.extract_strided_slice %40 {offsets = [0, 0], sizes = [20, 32], strides = [1, 1]} : vector<20x128xbf16> to vector<20x32xbf16>
    %cst_28 = arith.constant dense<0.000000e+00> : vector<20x32xf32>
    %55 = tpu.matmul %53, %54, %cst_28 {dimension_numbers = #tpu.dot_dimension_numbers<[1], [0], [0], [1], [0, 0, 1, 1], [], []>} : vector<20x20xbf16>, vector<20x32xbf16>, vector<20x32xf32> -> vector<20x32xf32>
    %56 = vector.extract_strided_slice %36 {offsets = [0, 32], sizes = [20, 32], strides = [1, 1]} : vector<20x128xbf16> to vector<20x32xbf16>
    %57 = vector.extract_strided_slice %38 {offsets = [0, 32], sizes = [20, 32], strides = [1, 1]} : vector<20x128xbf16> to vector<20x32xbf16>
    %cst_29 = arith.constant dense<0.000000e+00> : vector<20x20xf32>
    %58 = tpu.matmul %56, %57, %cst_29 {dimension_numbers = #tpu.dot_dimension_numbers<[1], [1], [0], [0], [0, 0, 1, 0], [], []>} : vector<20x32xbf16>, vector<20x32xbf16>, vector<20x20xf32> -> vector<20x20xf32>
    %cst_30 = arith.constant dense<0xFF800000> : vector<20xf32>
    %59 = vector.multi_reduction <maximumf>, %58, %cst_30 [1] : vector<20x20xf32> to vector<20xf32>
    %60 = vector.shape_cast %59 : vector<20xf32> to vector<20x1xf32>
    %61 = vector.broadcast %60 : vector<20x1xf32> to vector<20x20xf32>
    %62 = arith.subf %58, %61 : vector<20x20xf32>
    %63 = math.exp %62 : vector<20x20xf32>
    %cst_31 = arith.constant dense<0.000000e+00> : vector<20xf32>
    %64 = vector.multi_reduction <add>, %63, %cst_31 [1] : vector<20x20xf32> to vector<20xf32>
    %65 = vector.shape_cast %64 : vector<20xf32> to vector<20x1xf32>
    %66 = vector.broadcast %65 : vector<20x1xf32> to vector<20x20xf32>
    %67 = arith.divf %63, %66 : vector<20x20xf32>
    %68 = arith.truncf %67 : vector<20x20xf32> to vector<20x20xbf16>
    %69 = vector.extract_strided_slice %40 {offsets = [0, 32], sizes = [20, 32], strides = [1, 1]} : vector<20x128xbf16> to vector<20x32xbf16>
    %cst_32 = arith.constant dense<0.000000e+00> : vector<20x32xf32>
    %70 = tpu.matmul %68, %69, %cst_32 {dimension_numbers = #tpu.dot_dimension_numbers<[1], [0], [0], [1], [0, 0, 1, 1], [], []>} : vector<20x20xbf16>, vector<20x32xbf16>, vector<20x32xf32> -> vector<20x32xf32>
    %71 = vector.extract_strided_slice %36 {offsets = [0, 64], sizes = [20, 32], strides = [1, 1]} : vector<20x128xbf16> to vector<20x32xbf16>
    %72 = vector.extract_strided_slice %38 {offsets = [0, 64], sizes = [20, 32], strides = [1, 1]} : vector<20x128xbf16> to vector<20x32xbf16>
    %cst_33 = arith.constant dense<0.000000e+00> : vector<20x20xf32>
    %73 = tpu.matmul %71, %72, %cst_33 {dimension_numbers = #tpu.dot_dimension_numbers<[1], [1], [0], [0], [0, 0, 1, 0], [], []>} : vector<20x32xbf16>, vector<20x32xbf16>, vector<20x20xf32> -> vector<20x20xf32>
    %cst_34 = arith.constant dense<0xFF800000> : vector<20xf32>
    %74 = vector.multi_reduction <maximumf>, %73, %cst_34 [1] : vector<20x20xf32> to vector<20xf32>
    %75 = vector.shape_cast %74 : vector<20xf32> to vector<20x1xf32>
    %76 = vector.broadcast %75 : vector<20x1xf32> to vector<20x20xf32>
    %77 = arith.subf %73, %76 : vector<20x20xf32>
    %78 = math.exp %77 : vector<20x20xf32>
    %cst_35 = arith.constant dense<0.000000e+00> : vector<20xf32>
    %79 = vector.multi_reduction <add>, %78, %cst_35 [1] : vector<20x20xf32> to vector<20xf32>
    %80 = vector.shape_cast %79 : vector<20xf32> to vector<20x1xf32>
    %81 = vector.broadcast %80 : vector<20x1xf32> to vector<20x20xf32>
    %82 = arith.divf %78, %81 : vector<20x20xf32>
    %83 = arith.truncf %82 : vector<20x20xf32> to vector<20x20xbf16>
    %84 = vector.extract_strided_slice %40 {offsets = [0, 64], sizes = [20, 32], strides = [1, 1]} : vector<20x128xbf16> to vector<20x32xbf16>
    %cst_36 = arith.constant dense<0.000000e+00> : vector<20x32xf32>
    %85 = tpu.matmul %83, %84, %cst_36 {dimension_numbers = #tpu.dot_dimension_numbers<[1], [0], [0], [1], [0, 0, 1, 1], [], []>} : vector<20x20xbf16>, vector<20x32xbf16>, vector<20x32xf32> -> vector<20x32xf32>
    %86 = vector.extract_strided_slice %36 {offsets = [0, 96], sizes = [20, 32], strides = [1, 1]} : vector<20x128xbf16> to vector<20x32xbf16>
    %87 = vector.extract_strided_slice %38 {offsets = [0, 96], sizes = [20, 32], strides = [1, 1]} : vector<20x128xbf16> to vector<20x32xbf16>
    %cst_37 = arith.constant dense<0.000000e+00> : vector<20x20xf32>
    %88 = tpu.matmul %86, %87, %cst_37 {dimension_numbers = #tpu.dot_dimension_numbers<[1], [1], [0], [0], [0, 0, 1, 0], [], []>} : vector<20x32xbf16>, vector<20x32xbf16>, vector<20x20xf32> -> vector<20x20xf32>
    %cst_38 = arith.constant dense<0xFF800000> : vector<20xf32>
    %89 = vector.multi_reduction <maximumf>, %88, %cst_38 [1] : vector<20x20xf32> to vector<20xf32>
    %90 = vector.shape_cast %89 : vector<20xf32> to vector<20x1xf32>
    %91 = vector.broadcast %90 : vector<20x1xf32> to vector<20x20xf32>
    %92 = arith.subf %88, %91 : vector<20x20xf32>
    %93 = math.exp %92 : vector<20x20xf32>
    %cst_39 = arith.constant dense<0.000000e+00> : vector<20xf32>
    %94 = vector.multi_reduction <add>, %93, %cst_39 [1] : vector<20x20xf32> to vector<20xf32>
    %95 = vector.shape_cast %94 : vector<20xf32> to vector<20x1xf32>
    %96 = vector.broadcast %95 : vector<20x1xf32> to vector<20x20xf32>
    %97 = arith.divf %93, %96 : vector<20x20xf32>
    %98 = arith.truncf %97 : vector<20x20xf32> to vector<20x20xbf16>
    %99 = vector.extract_strided_slice %40 {offsets = [0, 96], sizes = [20, 32], strides = [1, 1]} : vector<20x128xbf16> to vector<20x32xbf16>
    %cst_40 = arith.constant dense<0.000000e+00> : vector<20x32xf32>
    %100 = tpu.matmul %98, %99, %cst_40 {dimension_numbers = #tpu.dot_dimension_numbers<[1], [0], [0], [1], [0, 0, 1, 1], [], []>} : vector<20x20xbf16>, vector<20x32xbf16>, vector<20x32xf32> -> vector<20x32xf32>
    %101 = tpu.concatenate %55, %70, %85, %100 in 1 : vector<20x32xf32>, vector<20x32xf32>, vector<20x32xf32>, vector<20x32xf32> -> vector<20x128xf32>
    %102 = arith.truncf %101 : vector<20x128xf32> to vector<20x128xbf16>
    %c0_41 = arith.constant 0 : index
    %c0_42 = arith.constant 0 : index
    %c0_43 = arith.constant 0 : index
    %103 = vector.load %arg10[%c0_41, %c0_42, %c0_43] : memref<2x128x128xbf16, #tpu.memory_space<vmem>>, vector<1x128x128xbf16>
    %104 = vector.shape_cast %103 : vector<1x128x128xbf16> to vector<128x128xbf16>
    %cst_44 = arith.constant dense<0.000000e+00> : vector<20x128xf32>
    %105 = tpu.matmul %102, %104, %cst_44 {dimension_numbers = #tpu.dot_dimension_numbers<[1], [0], [0], [1], [0, 0, 1, 1], [], []>} : vector<20x128xbf16>, vector<128x128xbf16>, vector<20x128xf32> -> vector<20x128xf32>
    %c0_45 = arith.constant 0 : index
    %c0_46 = arith.constant 0 : index
    %c0_47 = arith.constant 0 : index
    %106 = vector.load %arg11[%c0_45, %c0_46, %c0_47] : memref<2x1x128xf32, #tpu.memory_space<vmem>>, vector<1x1x128xf32>
    %107 = vector.shape_cast %106 : vector<1x1x128xf32> to vector<1x128xf32>
    %108 = vector.broadcast %107 : vector<1x128xf32> to vector<20x128xf32>
    %109 = arith.addf %105, %108 : vector<20x128xf32>
    %110 = arith.addf %24, %109 : vector<20x128xf32>
    %c0_48 = arith.constant 0 : index
    %c0_49 = arith.constant 0 : index
    %c0_50 = arith.constant 0 : index
    %111 = vector.load %arg12[%c0_48, %c0_49, %c0_50] : memref<2x1x128xf32, #tpu.memory_space<vmem>>, vector<1x1x128xf32>
    %112 = vector.shape_cast %111 : vector<1x1x128xf32> to vector<1x128xf32>
    %c0_51 = arith.constant 0 : index
    %c0_52 = arith.constant 0 : index
    %c0_53 = arith.constant 0 : index
    %113 = vector.load %arg13[%c0_51, %c0_52, %c0_53] : memref<2x1x128xf32, #tpu.memory_space<vmem>>, vector<1x1x128xf32>
    %114 = vector.shape_cast %113 : vector<1x1x128xf32> to vector<1x128xf32>
    %cst_54 = arith.constant dense<0.000000e+00> : vector<20xf32>
    %115 = vector.multi_reduction <add>, %110, %cst_54 [1] : vector<20x128xf32> to vector<20xf32>
    %116 = vector.shape_cast %115 : vector<20xf32> to vector<20x1xf32>
    %cst_55 = arith.constant 1.280000e+02 : f32
    %117 = vector.broadcast %cst_55 : f32 to vector<20x1xf32>
    %118 = arith.divf %116, %117 : vector<20x1xf32>
    %119 = vector.broadcast %118 : vector<20x1xf32> to vector<20x128xf32>
    %120 = arith.subf %110, %119 : vector<20x128xf32>
    %121 = arith.mulf %120, %120 : vector<20x128xf32>
    %cst_56 = arith.constant dense<0.000000e+00> : vector<20xf32>
    %122 = vector.multi_reduction <add>, %121, %cst_56 [1] : vector<20x128xf32> to vector<20xf32>
    %123 = vector.shape_cast %122 : vector<20xf32> to vector<20x1xf32>
    %cst_57 = arith.constant 1.280000e+02 : f32
    %124 = vector.broadcast %cst_57 : f32 to vector<20x1xf32>
    %125 = arith.divf %123, %124 : vector<20x1xf32>
    %cst_58 = arith.constant 9.99999974E-6 : f32
    %126 = vector.broadcast %cst_58 : f32 to vector<20x1xf32>
    %127 = arith.addf %125, %126 : vector<20x1xf32>
    %128 = math.rsqrt %127 : vector<20x1xf32>
    %129 = vector.broadcast %128 : vector<20x1xf32> to vector<20x128xf32>
    %130 = arith.mulf %120, %129 : vector<20x128xf32>
    %131 = vector.broadcast %112 : vector<1x128xf32> to vector<20x128xf32>
    %132 = arith.mulf %130, %131 : vector<20x128xf32>
    %133 = vector.broadcast %114 : vector<1x128xf32> to vector<20x128xf32>
    %134 = arith.addf %132, %133 : vector<20x128xf32>
    %135 = arith.truncf %134 : vector<20x128xf32> to vector<20x128xbf16>
    %c0_59 = arith.constant 0 : index
    %c0_60 = arith.constant 0 : index
    %c0_61 = arith.constant 0 : index
    %136 = vector.load %arg14[%c0_59, %c0_60, %c0_61] : memref<2x128x384xbf16, #tpu.memory_space<vmem>>, vector<1x128x384xbf16>
    %137 = vector.shape_cast %136 : vector<1x128x384xbf16> to vector<128x384xbf16>
    %cst_62 = arith.constant dense<0.000000e+00> : vector<20x384xf32>
    %138 = tpu.matmul %135, %137, %cst_62 {dimension_numbers = #tpu.dot_dimension_numbers<[1], [0], [0], [1], [0, 0, 1, 1], [], []>} : vector<20x128xbf16>, vector<128x384xbf16>, vector<20x384xf32> -> vector<20x384xf32>
    %c0_63 = arith.constant 0 : index
    %c0_64 = arith.constant 0 : index
    %c0_65 = arith.constant 0 : index
    %139 = vector.load %arg15[%c0_63, %c0_64, %c0_65] : memref<2x1x384xf32, #tpu.memory_space<vmem>>, vector<1x1x384xf32>
    %140 = vector.shape_cast %139 : vector<1x1x384xf32> to vector<1x384xf32>
    %141 = vector.broadcast %140 : vector<1x384xf32> to vector<20x384xf32>
    %142 = arith.addf %138, %141 : vector<20x384xf32>
    %cst_66 = arith.constant 0.000000e+00 : f32
    %143 = vector.broadcast %cst_66 : f32 to vector<20x384xf32>
    %144 = arith.maximumf %142, %143 : vector<20x384xf32>
    %145 = arith.truncf %144 : vector<20x384xf32> to vector<20x384xbf16>
    %c0_67 = arith.constant 0 : index
    %c0_68 = arith.constant 0 : index
    %c0_69 = arith.constant 0 : index
    %146 = vector.load %arg16[%c0_67, %c0_68, %c0_69] : memref<2x384x128xbf16, #tpu.memory_space<vmem>>, vector<1x384x128xbf16>
    %147 = vector.shape_cast %146 : vector<1x384x128xbf16> to vector<384x128xbf16>
    %cst_70 = arith.constant dense<0.000000e+00> : vector<20x128xf32>
    %148 = tpu.matmul %145, %147, %cst_70 {dimension_numbers = #tpu.dot_dimension_numbers<[1], [0], [0], [1], [0, 0, 1, 1], [], []>} : vector<20x384xbf16>, vector<384x128xbf16>, vector<20x128xf32> -> vector<20x128xf32>
    %c0_71 = arith.constant 0 : index
    %c0_72 = arith.constant 0 : index
    %c0_73 = arith.constant 0 : index
    %149 = vector.load %arg17[%c0_71, %c0_72, %c0_73] : memref<2x1x128xf32, #tpu.memory_space<vmem>>, vector<1x1x128xf32>
    %150 = vector.shape_cast %149 : vector<1x1x128xf32> to vector<1x128xf32>
    %151 = vector.broadcast %150 : vector<1x128xf32> to vector<20x128xf32>
    %152 = arith.addf %148, %151 : vector<20x128xf32>
    %153 = arith.addf %134, %152 : vector<20x128xf32>
    %c0_74 = arith.constant 0 : index
    %c0_75 = arith.constant 0 : index
    %c0_76 = arith.constant 0 : index
    %154 = vector.load %arg18[%c0_74, %c0_75, %c0_76] : memref<2x1x128xf32, #tpu.memory_space<vmem>>, vector<1x1x128xf32>
    %155 = vector.shape_cast %154 : vector<1x1x128xf32> to vector<1x128xf32>
    %c0_77 = arith.constant 0 : index
    %c0_78 = arith.constant 0 : index
    %c0_79 = arith.constant 0 : index
    %156 = vector.load %arg19[%c0_77, %c0_78, %c0_79] : memref<2x1x128xf32, #tpu.memory_space<vmem>>, vector<1x1x128xf32>
    %157 = vector.shape_cast %156 : vector<1x1x128xf32> to vector<1x128xf32>
    %cst_80 = arith.constant dense<0.000000e+00> : vector<20xf32>
    %158 = vector.multi_reduction <add>, %153, %cst_80 [1] : vector<20x128xf32> to vector<20xf32>
    %159 = vector.shape_cast %158 : vector<20xf32> to vector<20x1xf32>
    %cst_81 = arith.constant 1.280000e+02 : f32
    %160 = vector.broadcast %cst_81 : f32 to vector<20x1xf32>
    %161 = arith.divf %159, %160 : vector<20x1xf32>
    %162 = vector.broadcast %161 : vector<20x1xf32> to vector<20x128xf32>
    %163 = arith.subf %153, %162 : vector<20x128xf32>
    %164 = arith.mulf %163, %163 : vector<20x128xf32>
    %cst_82 = arith.constant dense<0.000000e+00> : vector<20xf32>
    %165 = vector.multi_reduction <add>, %164, %cst_82 [1] : vector<20x128xf32> to vector<20xf32>
    %166 = vector.shape_cast %165 : vector<20xf32> to vector<20x1xf32>
    %cst_83 = arith.constant 1.280000e+02 : f32
    %167 = vector.broadcast %cst_83 : f32 to vector<20x1xf32>
    %168 = arith.divf %166, %167 : vector<20x1xf32>
    %cst_84 = arith.constant 9.99999974E-6 : f32
    %169 = vector.broadcast %cst_84 : f32 to vector<20x1xf32>
    %170 = arith.addf %168, %169 : vector<20x1xf32>
    %171 = math.rsqrt %170 : vector<20x1xf32>
    %172 = vector.broadcast %171 : vector<20x1xf32> to vector<20x128xf32>
    %173 = arith.mulf %163, %172 : vector<20x128xf32>
    %174 = vector.broadcast %155 : vector<1x128xf32> to vector<20x128xf32>
    %175 = arith.mulf %173, %174 : vector<20x128xf32>
    %176 = vector.broadcast %157 : vector<1x128xf32> to vector<20x128xf32>
    %177 = arith.addf %175, %176 : vector<20x128xf32>
    %178 = arith.truncf %177 : vector<20x128xf32> to vector<20x128xbf16>
    %c1 = arith.constant 1 : index
    %c0_85 = arith.constant 0 : index
    %c0_86 = arith.constant 0 : index
    %179 = vector.load %arg8[%c1, %c0_85, %c0_86] : memref<2x128x384xbf16, #tpu.memory_space<vmem>>, vector<1x128x384xbf16>
    %180 = vector.shape_cast %179 : vector<1x128x384xbf16> to vector<128x384xbf16>
    %cst_87 = arith.constant dense<0.000000e+00> : vector<20x384xf32>
    %181 = tpu.matmul %178, %180, %cst_87 {dimension_numbers = #tpu.dot_dimension_numbers<[1], [0], [0], [1], [0, 0, 1, 1], [], []>} : vector<20x128xbf16>, vector<128x384xbf16>, vector<20x384xf32> -> vector<20x384xf32>
    %c1_88 = arith.constant 1 : index
    %c0_89 = arith.constant 0 : index
    %c0_90 = arith.constant 0 : index
    %182 = vector.load %arg9[%c1_88, %c0_89, %c0_90] : memref<2x1x384xf32, #tpu.memory_space<vmem>>, vector<1x1x384xf32>
    %183 = vector.shape_cast %182 : vector<1x1x384xf32> to vector<1x384xf32>
    %184 = vector.broadcast %183 : vector<1x384xf32> to vector<20x384xf32>
    %185 = arith.addf %181, %184 : vector<20x384xf32>
    %186 = vector.extract_strided_slice %185 {offsets = [0, 0], sizes = [20, 128], strides = [1, 1]} : vector<20x384xf32> to vector<20x128xf32>
    %cst_91 = arith.constant 0.176776692 : f32
    %187 = vector.broadcast %cst_91 : f32 to vector<20x128xf32>
    %188 = arith.mulf %186, %187 : vector<20x128xf32>
    %189 = arith.truncf %188 : vector<20x128xf32> to vector<20x128xbf16>
    %190 = vector.extract_strided_slice %185 {offsets = [0, 128], sizes = [20, 128], strides = [1, 1]} : vector<20x384xf32> to vector<20x128xf32>
    %191 = arith.truncf %190 : vector<20x128xf32> to vector<20x128xbf16>
    %192 = vector.extract_strided_slice %185 {offsets = [0, 256], sizes = [20, 128], strides = [1, 1]} : vector<20x384xf32> to vector<20x128xf32>
    %193 = arith.truncf %192 : vector<20x128xf32> to vector<20x128xbf16>
    %194 = vector.extract_strided_slice %189 {offsets = [0, 0], sizes = [20, 32], strides = [1, 1]} : vector<20x128xbf16> to vector<20x32xbf16>
    %195 = vector.extract_strided_slice %191 {offsets = [0, 0], sizes = [20, 32], strides = [1, 1]} : vector<20x128xbf16> to vector<20x32xbf16>
    %cst_92 = arith.constant dense<0.000000e+00> : vector<20x20xf32>
    %196 = tpu.matmul %194, %195, %cst_92 {dimension_numbers = #tpu.dot_dimension_numbers<[1], [1], [0], [0], [0, 0, 1, 0], [], []>} : vector<20x32xbf16>, vector<20x32xbf16>, vector<20x20xf32> -> vector<20x20xf32>
    %cst_93 = arith.constant dense<0xFF800000> : vector<20xf32>
    %197 = vector.multi_reduction <maximumf>, %196, %cst_93 [1] : vector<20x20xf32> to vector<20xf32>
    %198 = vector.shape_cast %197 : vector<20xf32> to vector<20x1xf32>
    %199 = vector.broadcast %198 : vector<20x1xf32> to vector<20x20xf32>
    %200 = arith.subf %196, %199 : vector<20x20xf32>
    %201 = math.exp %200 : vector<20x20xf32>
    %cst_94 = arith.constant dense<0.000000e+00> : vector<20xf32>
    %202 = vector.multi_reduction <add>, %201, %cst_94 [1] : vector<20x20xf32> to vector<20xf32>
    %203 = vector.shape_cast %202 : vector<20xf32> to vector<20x1xf32>
    %204 = vector.broadcast %203 : vector<20x1xf32> to vector<20x20xf32>
    %205 = arith.divf %201, %204 : vector<20x20xf32>
    %206 = arith.truncf %205 : vector<20x20xf32> to vector<20x20xbf16>
    %207 = vector.extract_strided_slice %193 {offsets = [0, 0], sizes = [20, 32], strides = [1, 1]} : vector<20x128xbf16> to vector<20x32xbf16>
    %cst_95 = arith.constant dense<0.000000e+00> : vector<20x32xf32>
    %208 = tpu.matmul %206, %207, %cst_95 {dimension_numbers = #tpu.dot_dimension_numbers<[1], [0], [0], [1], [0, 0, 1, 1], [], []>} : vector<20x20xbf16>, vector<20x32xbf16>, vector<20x32xf32> -> vector<20x32xf32>
    %209 = vector.extract_strided_slice %189 {offsets = [0, 32], sizes = [20, 32], strides = [1, 1]} : vector<20x128xbf16> to vector<20x32xbf16>
    %210 = vector.extract_strided_slice %191 {offsets = [0, 32], sizes = [20, 32], strides = [1, 1]} : vector<20x128xbf16> to vector<20x32xbf16>
    %cst_96 = arith.constant dense<0.000000e+00> : vector<20x20xf32>
    %211 = tpu.matmul %209, %210, %cst_96 {dimension_numbers = #tpu.dot_dimension_numbers<[1], [1], [0], [0], [0, 0, 1, 0], [], []>} : vector<20x32xbf16>, vector<20x32xbf16>, vector<20x20xf32> -> vector<20x20xf32>
    %cst_97 = arith.constant dense<0xFF800000> : vector<20xf32>
    %212 = vector.multi_reduction <maximumf>, %211, %cst_97 [1] : vector<20x20xf32> to vector<20xf32>
    %213 = vector.shape_cast %212 : vector<20xf32> to vector<20x1xf32>
    %214 = vector.broadcast %213 : vector<20x1xf32> to vector<20x20xf32>
    %215 = arith.subf %211, %214 : vector<20x20xf32>
    %216 = math.exp %215 : vector<20x20xf32>
    %cst_98 = arith.constant dense<0.000000e+00> : vector<20xf32>
    %217 = vector.multi_reduction <add>, %216, %cst_98 [1] : vector<20x20xf32> to vector<20xf32>
    %218 = vector.shape_cast %217 : vector<20xf32> to vector<20x1xf32>
    %219 = vector.broadcast %218 : vector<20x1xf32> to vector<20x20xf32>
    %220 = arith.divf %216, %219 : vector<20x20xf32>
    %221 = arith.truncf %220 : vector<20x20xf32> to vector<20x20xbf16>
    %222 = vector.extract_strided_slice %193 {offsets = [0, 32], sizes = [20, 32], strides = [1, 1]} : vector<20x128xbf16> to vector<20x32xbf16>
    %cst_99 = arith.constant dense<0.000000e+00> : vector<20x32xf32>
    %223 = tpu.matmul %221, %222, %cst_99 {dimension_numbers = #tpu.dot_dimension_numbers<[1], [0], [0], [1], [0, 0, 1, 1], [], []>} : vector<20x20xbf16>, vector<20x32xbf16>, vector<20x32xf32> -> vector<20x32xf32>
    %224 = vector.extract_strided_slice %189 {offsets = [0, 64], sizes = [20, 32], strides = [1, 1]} : vector<20x128xbf16> to vector<20x32xbf16>
    %225 = vector.extract_strided_slice %191 {offsets = [0, 64], sizes = [20, 32], strides = [1, 1]} : vector<20x128xbf16> to vector<20x32xbf16>
    %cst_100 = arith.constant dense<0.000000e+00> : vector<20x20xf32>
    %226 = tpu.matmul %224, %225, %cst_100 {dimension_numbers = #tpu.dot_dimension_numbers<[1], [1], [0], [0], [0, 0, 1, 0], [], []>} : vector<20x32xbf16>, vector<20x32xbf16>, vector<20x20xf32> -> vector<20x20xf32>
    %cst_101 = arith.constant dense<0xFF800000> : vector<20xf32>
    %227 = vector.multi_reduction <maximumf>, %226, %cst_101 [1] : vector<20x20xf32> to vector<20xf32>
    %228 = vector.shape_cast %227 : vector<20xf32> to vector<20x1xf32>
    %229 = vector.broadcast %228 : vector<20x1xf32> to vector<20x20xf32>
    %230 = arith.subf %226, %229 : vector<20x20xf32>
    %231 = math.exp %230 : vector<20x20xf32>
    %cst_102 = arith.constant dense<0.000000e+00> : vector<20xf32>
    %232 = vector.multi_reduction <add>, %231, %cst_102 [1] : vector<20x20xf32> to vector<20xf32>
    %233 = vector.shape_cast %232 : vector<20xf32> to vector<20x1xf32>
    %234 = vector.broadcast %233 : vector<20x1xf32> to vector<20x20xf32>
    %235 = arith.divf %231, %234 : vector<20x20xf32>
    %236 = arith.truncf %235 : vector<20x20xf32> to vector<20x20xbf16>
    %237 = vector.extract_strided_slice %193 {offsets = [0, 64], sizes = [20, 32], strides = [1, 1]} : vector<20x128xbf16> to vector<20x32xbf16>
    %cst_103 = arith.constant dense<0.000000e+00> : vector<20x32xf32>
    %238 = tpu.matmul %236, %237, %cst_103 {dimension_numbers = #tpu.dot_dimension_numbers<[1], [0], [0], [1], [0, 0, 1, 1], [], []>} : vector<20x20xbf16>, vector<20x32xbf16>, vector<20x32xf32> -> vector<20x32xf32>
    %239 = vector.extract_strided_slice %189 {offsets = [0, 96], sizes = [20, 32], strides = [1, 1]} : vector<20x128xbf16> to vector<20x32xbf16>
    %240 = vector.extract_strided_slice %191 {offsets = [0, 96], sizes = [20, 32], strides = [1, 1]} : vector<20x128xbf16> to vector<20x32xbf16>
    %cst_104 = arith.constant dense<0.000000e+00> : vector<20x20xf32>
    %241 = tpu.matmul %239, %240, %cst_104 {dimension_numbers = #tpu.dot_dimension_numbers<[1], [1], [0], [0], [0, 0, 1, 0], [], []>} : vector<20x32xbf16>, vector<20x32xbf16>, vector<20x20xf32> -> vector<20x20xf32>
    %cst_105 = arith.constant dense<0xFF800000> : vector<20xf32>
    %242 = vector.multi_reduction <maximumf>, %241, %cst_105 [1] : vector<20x20xf32> to vector<20xf32>
    %243 = vector.shape_cast %242 : vector<20xf32> to vector<20x1xf32>
    %244 = vector.broadcast %243 : vector<20x1xf32> to vector<20x20xf32>
    %245 = arith.subf %241, %244 : vector<20x20xf32>
    %246 = math.exp %245 : vector<20x20xf32>
    %cst_106 = arith.constant dense<0.000000e+00> : vector<20xf32>
    %247 = vector.multi_reduction <add>, %246, %cst_106 [1] : vector<20x20xf32> to vector<20xf32>
    %248 = vector.shape_cast %247 : vector<20xf32> to vector<20x1xf32>
    %249 = vector.broadcast %248 : vector<20x1xf32> to vector<20x20xf32>
    %250 = arith.divf %246, %249 : vector<20x20xf32>
    %251 = arith.truncf %250 : vector<20x20xf32> to vector<20x20xbf16>
    %252 = vector.extract_strided_slice %193 {offsets = [0, 96], sizes = [20, 32], strides = [1, 1]} : vector<20x128xbf16> to vector<20x32xbf16>
    %cst_107 = arith.constant dense<0.000000e+00> : vector<20x32xf32>
    %253 = tpu.matmul %251, %252, %cst_107 {dimension_numbers = #tpu.dot_dimension_numbers<[1], [0], [0], [1], [0, 0, 1, 1], [], []>} : vector<20x20xbf16>, vector<20x32xbf16>, vector<20x32xf32> -> vector<20x32xf32>
    %254 = tpu.concatenate %208, %223, %238, %253 in 1 : vector<20x32xf32>, vector<20x32xf32>, vector<20x32xf32>, vector<20x32xf32> -> vector<20x128xf32>
    %255 = arith.truncf %254 : vector<20x128xf32> to vector<20x128xbf16>
    %c1_108 = arith.constant 1 : index
    %c0_109 = arith.constant 0 : index
    %c0_110 = arith.constant 0 : index
    %256 = vector.load %arg10[%c1_108, %c0_109, %c0_110] : memref<2x128x128xbf16, #tpu.memory_space<vmem>>, vector<1x128x128xbf16>
    %257 = vector.shape_cast %256 : vector<1x128x128xbf16> to vector<128x128xbf16>
    %cst_111 = arith.constant dense<0.000000e+00> : vector<20x128xf32>
    %258 = tpu.matmul %255, %257, %cst_111 {dimension_numbers = #tpu.dot_dimension_numbers<[1], [0], [0], [1], [0, 0, 1, 1], [], []>} : vector<20x128xbf16>, vector<128x128xbf16>, vector<20x128xf32> -> vector<20x128xf32>
    %c1_112 = arith.constant 1 : index
    %c0_113 = arith.constant 0 : index
    %c0_114 = arith.constant 0 : index
    %259 = vector.load %arg11[%c1_112, %c0_113, %c0_114] : memref<2x1x128xf32, #tpu.memory_space<vmem>>, vector<1x1x128xf32>
    %260 = vector.shape_cast %259 : vector<1x1x128xf32> to vector<1x128xf32>
    %261 = vector.broadcast %260 : vector<1x128xf32> to vector<20x128xf32>
    %262 = arith.addf %258, %261 : vector<20x128xf32>
    %263 = arith.addf %177, %262 : vector<20x128xf32>
    %c1_115 = arith.constant 1 : index
    %c0_116 = arith.constant 0 : index
    %c0_117 = arith.constant 0 : index
    %264 = vector.load %arg12[%c1_115, %c0_116, %c0_117] : memref<2x1x128xf32, #tpu.memory_space<vmem>>, vector<1x1x128xf32>
    %265 = vector.shape_cast %264 : vector<1x1x128xf32> to vector<1x128xf32>
    %c1_118 = arith.constant 1 : index
    %c0_119 = arith.constant 0 : index
    %c0_120 = arith.constant 0 : index
    %266 = vector.load %arg13[%c1_118, %c0_119, %c0_120] : memref<2x1x128xf32, #tpu.memory_space<vmem>>, vector<1x1x128xf32>
    %267 = vector.shape_cast %266 : vector<1x1x128xf32> to vector<1x128xf32>
    %cst_121 = arith.constant dense<0.000000e+00> : vector<20xf32>
    %268 = vector.multi_reduction <add>, %263, %cst_121 [1] : vector<20x128xf32> to vector<20xf32>
    %269 = vector.shape_cast %268 : vector<20xf32> to vector<20x1xf32>
    %cst_122 = arith.constant 1.280000e+02 : f32
    %270 = vector.broadcast %cst_122 : f32 to vector<20x1xf32>
    %271 = arith.divf %269, %270 : vector<20x1xf32>
    %272 = vector.broadcast %271 : vector<20x1xf32> to vector<20x128xf32>
    %273 = arith.subf %263, %272 : vector<20x128xf32>
    %274 = arith.mulf %273, %273 : vector<20x128xf32>
    %cst_123 = arith.constant dense<0.000000e+00> : vector<20xf32>
    %275 = vector.multi_reduction <add>, %274, %cst_123 [1] : vector<20x128xf32> to vector<20xf32>
    %276 = vector.shape_cast %275 : vector<20xf32> to vector<20x1xf32>
    %cst_124 = arith.constant 1.280000e+02 : f32
    %277 = vector.broadcast %cst_124 : f32 to vector<20x1xf32>
    %278 = arith.divf %276, %277 : vector<20x1xf32>
    %cst_125 = arith.constant 9.99999974E-6 : f32
    %279 = vector.broadcast %cst_125 : f32 to vector<20x1xf32>
    %280 = arith.addf %278, %279 : vector<20x1xf32>
    %281 = math.rsqrt %280 : vector<20x1xf32>
    %282 = vector.broadcast %281 : vector<20x1xf32> to vector<20x128xf32>
    %283 = arith.mulf %273, %282 : vector<20x128xf32>
    %284 = vector.broadcast %265 : vector<1x128xf32> to vector<20x128xf32>
    %285 = arith.mulf %283, %284 : vector<20x128xf32>
    %286 = vector.broadcast %267 : vector<1x128xf32> to vector<20x128xf32>
    %287 = arith.addf %285, %286 : vector<20x128xf32>
    %288 = arith.truncf %287 : vector<20x128xf32> to vector<20x128xbf16>
    %c1_126 = arith.constant 1 : index
    %c0_127 = arith.constant 0 : index
    %c0_128 = arith.constant 0 : index
    %289 = vector.load %arg14[%c1_126, %c0_127, %c0_128] : memref<2x128x384xbf16, #tpu.memory_space<vmem>>, vector<1x128x384xbf16>
    %290 = vector.shape_cast %289 : vector<1x128x384xbf16> to vector<128x384xbf16>
    %cst_129 = arith.constant dense<0.000000e+00> : vector<20x384xf32>
    %291 = tpu.matmul %288, %290, %cst_129 {dimension_numbers = #tpu.dot_dimension_numbers<[1], [0], [0], [1], [0, 0, 1, 1], [], []>} : vector<20x128xbf16>, vector<128x384xbf16>, vector<20x384xf32> -> vector<20x384xf32>
    %c1_130 = arith.constant 1 : index
    %c0_131 = arith.constant 0 : index
    %c0_132 = arith.constant 0 : index
    %292 = vector.load %arg15[%c1_130, %c0_131, %c0_132] : memref<2x1x384xf32, #tpu.memory_space<vmem>>, vector<1x1x384xf32>
    %293 = vector.shape_cast %292 : vector<1x1x384xf32> to vector<1x384xf32>
    %294 = vector.broadcast %293 : vector<1x384xf32> to vector<20x384xf32>
    %295 = arith.addf %291, %294 : vector<20x384xf32>
    %cst_133 = arith.constant 0.000000e+00 : f32
    %296 = vector.broadcast %cst_133 : f32 to vector<20x384xf32>
    %297 = arith.maximumf %295, %296 : vector<20x384xf32>
    %298 = arith.truncf %297 : vector<20x384xf32> to vector<20x384xbf16>
    %c1_134 = arith.constant 1 : index
    %c0_135 = arith.constant 0 : index
    %c0_136 = arith.constant 0 : index
    %299 = vector.load %arg16[%c1_134, %c0_135, %c0_136] : memref<2x384x128xbf16, #tpu.memory_space<vmem>>, vector<1x384x128xbf16>
    %300 = vector.shape_cast %299 : vector<1x384x128xbf16> to vector<384x128xbf16>
    %cst_137 = arith.constant dense<0.000000e+00> : vector<20x128xf32>
    %301 = tpu.matmul %298, %300, %cst_137 {dimension_numbers = #tpu.dot_dimension_numbers<[1], [0], [0], [1], [0, 0, 1, 1], [], []>} : vector<20x384xbf16>, vector<384x128xbf16>, vector<20x128xf32> -> vector<20x128xf32>
    %c1_138 = arith.constant 1 : index
    %c0_139 = arith.constant 0 : index
    %c0_140 = arith.constant 0 : index
    %302 = vector.load %arg17[%c1_138, %c0_139, %c0_140] : memref<2x1x128xf32, #tpu.memory_space<vmem>>, vector<1x1x128xf32>
    %303 = vector.shape_cast %302 : vector<1x1x128xf32> to vector<1x128xf32>
    %304 = vector.broadcast %303 : vector<1x128xf32> to vector<20x128xf32>
    %305 = arith.addf %301, %304 : vector<20x128xf32>
    %306 = arith.addf %287, %305 : vector<20x128xf32>
    %c1_141 = arith.constant 1 : index
    %c0_142 = arith.constant 0 : index
    %c0_143 = arith.constant 0 : index
    %307 = vector.load %arg18[%c1_141, %c0_142, %c0_143] : memref<2x1x128xf32, #tpu.memory_space<vmem>>, vector<1x1x128xf32>
    %308 = vector.shape_cast %307 : vector<1x1x128xf32> to vector<1x128xf32>
    %c1_144 = arith.constant 1 : index
    %c0_145 = arith.constant 0 : index
    %c0_146 = arith.constant 0 : index
    %309 = vector.load %arg19[%c1_144, %c0_145, %c0_146] : memref<2x1x128xf32, #tpu.memory_space<vmem>>, vector<1x1x128xf32>
    %310 = vector.shape_cast %309 : vector<1x1x128xf32> to vector<1x128xf32>
    %cst_147 = arith.constant dense<0.000000e+00> : vector<20xf32>
    %311 = vector.multi_reduction <add>, %306, %cst_147 [1] : vector<20x128xf32> to vector<20xf32>
    %312 = vector.shape_cast %311 : vector<20xf32> to vector<20x1xf32>
    %cst_148 = arith.constant 1.280000e+02 : f32
    %313 = vector.broadcast %cst_148 : f32 to vector<20x1xf32>
    %314 = arith.divf %312, %313 : vector<20x1xf32>
    %315 = vector.broadcast %314 : vector<20x1xf32> to vector<20x128xf32>
    %316 = arith.subf %306, %315 : vector<20x128xf32>
    %317 = arith.mulf %316, %316 : vector<20x128xf32>
    %cst_149 = arith.constant dense<0.000000e+00> : vector<20xf32>
    %318 = vector.multi_reduction <add>, %317, %cst_149 [1] : vector<20x128xf32> to vector<20xf32>
    %319 = vector.shape_cast %318 : vector<20xf32> to vector<20x1xf32>
    %cst_150 = arith.constant 1.280000e+02 : f32
    %320 = vector.broadcast %cst_150 : f32 to vector<20x1xf32>
    %321 = arith.divf %319, %320 : vector<20x1xf32>
    %cst_151 = arith.constant 9.99999974E-6 : f32
    %322 = vector.broadcast %cst_151 : f32 to vector<20x1xf32>
    %323 = arith.addf %321, %322 : vector<20x1xf32>
    %324 = math.rsqrt %323 : vector<20x1xf32>
    %325 = vector.broadcast %324 : vector<20x1xf32> to vector<20x128xf32>
    %326 = arith.mulf %316, %325 : vector<20x128xf32>
    %327 = vector.broadcast %308 : vector<1x128xf32> to vector<20x128xf32>
    %328 = arith.mulf %326, %327 : vector<20x128xf32>
    %329 = vector.broadcast %310 : vector<1x128xf32> to vector<20x128xf32>
    %330 = arith.addf %328, %329 : vector<20x128xf32>
    %331 = arith.truncf %330 : vector<20x128xf32> to vector<20x128xbf16>
    %c0_152 = arith.constant 0 : index
    %c0_153 = arith.constant 0 : index
    %332 = vector.load %arg21[%c0_152, %c0_153] : memref<1x128xf32, #tpu.memory_space<vmem>>, vector<1x128xf32>
    %333 = vector.extract_strided_slice %331 {offsets = [0, 0], sizes = [1, 128], strides = [1, 1]} : vector<20x128xbf16> to vector<1x128xbf16>
    %c0_154 = arith.constant 0 : index
    %c0_155 = arith.constant 0 : index
    %334 = vector.load %arg20[%c0_154, %c0_155] : memref<2560x128xbf16, #tpu.memory_space<vmem>>, vector<128x128xbf16>
    %cst_156 = arith.constant dense<0.000000e+00> : vector<1x128xf32>
    %335 = tpu.matmul %333, %334, %cst_156 {dimension_numbers = #tpu.dot_dimension_numbers<[1], [0], [0], [1], [0, 0, 1, 1], [], []>} : vector<1x128xbf16>, vector<128x128xbf16>, vector<1x128xf32> -> vector<1x128xf32>
    %336 = arith.addf %332, %335 : vector<1x128xf32>
    %337 = vector.extract_strided_slice %331 {offsets = [1, 0], sizes = [1, 128], strides = [1, 1]} : vector<20x128xbf16> to vector<1x128xbf16>
    %c128 = arith.constant 128 : index
    %c0_157 = arith.constant 0 : index
    %338 = vector.load %arg20[%c128, %c0_157] : memref<2560x128xbf16, #tpu.memory_space<vmem>>, vector<128x128xbf16>
    %cst_158 = arith.constant dense<0.000000e+00> : vector<1x128xf32>
    %339 = tpu.matmul %337, %338, %cst_158 {dimension_numbers = #tpu.dot_dimension_numbers<[1], [0], [0], [1], [0, 0, 1, 1], [], []>} : vector<1x128xbf16>, vector<128x128xbf16>, vector<1x128xf32> -> vector<1x128xf32>
    %340 = arith.addf %336, %339 : vector<1x128xf32>
    %341 = vector.extract_strided_slice %331 {offsets = [2, 0], sizes = [1, 128], strides = [1, 1]} : vector<20x128xbf16> to vector<1x128xbf16>
    %c256 = arith.constant 256 : index
    %c0_159 = arith.constant 0 : index
    %342 = vector.load %arg20[%c256, %c0_159] : memref<2560x128xbf16, #tpu.memory_space<vmem>>, vector<128x128xbf16>
    %cst_160 = arith.constant dense<0.000000e+00> : vector<1x128xf32>
    %343 = tpu.matmul %341, %342, %cst_160 {dimension_numbers = #tpu.dot_dimension_numbers<[1], [0], [0], [1], [0, 0, 1, 1], [], []>} : vector<1x128xbf16>, vector<128x128xbf16>, vector<1x128xf32> -> vector<1x128xf32>
    %344 = arith.addf %340, %343 : vector<1x128xf32>
    %345 = vector.extract_strided_slice %331 {offsets = [3, 0], sizes = [1, 128], strides = [1, 1]} : vector<20x128xbf16> to vector<1x128xbf16>
    %c384 = arith.constant 384 : index
    %c0_161 = arith.constant 0 : index
    %346 = vector.load %arg20[%c384, %c0_161] : memref<2560x128xbf16, #tpu.memory_space<vmem>>, vector<128x128xbf16>
    %cst_162 = arith.constant dense<0.000000e+00> : vector<1x128xf32>
    %347 = tpu.matmul %345, %346, %cst_162 {dimension_numbers = #tpu.dot_dimension_numbers<[1], [0], [0], [1], [0, 0, 1, 1], [], []>} : vector<1x128xbf16>, vector<128x128xbf16>, vector<1x128xf32> -> vector<1x128xf32>
    %348 = arith.addf %344, %347 : vector<1x128xf32>
    %349 = vector.extract_strided_slice %331 {offsets = [4, 0], sizes = [1, 128], strides = [1, 1]} : vector<20x128xbf16> to vector<1x128xbf16>
    %c512 = arith.constant 512 : index
    %c0_163 = arith.constant 0 : index
    %350 = vector.load %arg20[%c512, %c0_163] : memref<2560x128xbf16, #tpu.memory_space<vmem>>, vector<128x128xbf16>
    %cst_164 = arith.constant dense<0.000000e+00> : vector<1x128xf32>
    %351 = tpu.matmul %349, %350, %cst_164 {dimension_numbers = #tpu.dot_dimension_numbers<[1], [0], [0], [1], [0, 0, 1, 1], [], []>} : vector<1x128xbf16>, vector<128x128xbf16>, vector<1x128xf32> -> vector<1x128xf32>
    %352 = arith.addf %348, %351 : vector<1x128xf32>
    %353 = vector.extract_strided_slice %331 {offsets = [5, 0], sizes = [1, 128], strides = [1, 1]} : vector<20x128xbf16> to vector<1x128xbf16>
    %c640 = arith.constant 640 : index
    %c0_165 = arith.constant 0 : index
    %354 = vector.load %arg20[%c640, %c0_165] : memref<2560x128xbf16, #tpu.memory_space<vmem>>, vector<128x128xbf16>
    %cst_166 = arith.constant dense<0.000000e+00> : vector<1x128xf32>
    %355 = tpu.matmul %353, %354, %cst_166 {dimension_numbers = #tpu.dot_dimension_numbers<[1], [0], [0], [1], [0, 0, 1, 1], [], []>} : vector<1x128xbf16>, vector<128x128xbf16>, vector<1x128xf32> -> vector<1x128xf32>
    %356 = arith.addf %352, %355 : vector<1x128xf32>
    %357 = vector.extract_strided_slice %331 {offsets = [6, 0], sizes = [1, 128], strides = [1, 1]} : vector<20x128xbf16> to vector<1x128xbf16>
    %c768 = arith.constant 768 : index
    %c0_167 = arith.constant 0 : index
    %358 = vector.load %arg20[%c768, %c0_167] : memref<2560x128xbf16, #tpu.memory_space<vmem>>, vector<128x128xbf16>
    %cst_168 = arith.constant dense<0.000000e+00> : vector<1x128xf32>
    %359 = tpu.matmul %357, %358, %cst_168 {dimension_numbers = #tpu.dot_dimension_numbers<[1], [0], [0], [1], [0, 0, 1, 1], [], []>} : vector<1x128xbf16>, vector<128x128xbf16>, vector<1x128xf32> -> vector<1x128xf32>
    %360 = arith.addf %356, %359 : vector<1x128xf32>
    %361 = vector.extract_strided_slice %331 {offsets = [7, 0], sizes = [1, 128], strides = [1, 1]} : vector<20x128xbf16> to vector<1x128xbf16>
    %c896 = arith.constant 896 : index
    %c0_169 = arith.constant 0 : index
    %362 = vector.load %arg20[%c896, %c0_169] : memref<2560x128xbf16, #tpu.memory_space<vmem>>, vector<128x128xbf16>
    %cst_170 = arith.constant dense<0.000000e+00> : vector<1x128xf32>
    %363 = tpu.matmul %361, %362, %cst_170 {dimension_numbers = #tpu.dot_dimension_numbers<[1], [0], [0], [1], [0, 0, 1, 1], [], []>} : vector<1x128xbf16>, vector<128x128xbf16>, vector<1x128xf32> -> vector<1x128xf32>
    %364 = arith.addf %360, %363 : vector<1x128xf32>
    %365 = vector.extract_strided_slice %331 {offsets = [8, 0], sizes = [1, 128], strides = [1, 1]} : vector<20x128xbf16> to vector<1x128xbf16>
    %c1024 = arith.constant 1024 : index
    %c0_171 = arith.constant 0 : index
    %366 = vector.load %arg20[%c1024, %c0_171] : memref<2560x128xbf16, #tpu.memory_space<vmem>>, vector<128x128xbf16>
    %cst_172 = arith.constant dense<0.000000e+00> : vector<1x128xf32>
    %367 = tpu.matmul %365, %366, %cst_172 {dimension_numbers = #tpu.dot_dimension_numbers<[1], [0], [0], [1], [0, 0, 1, 1], [], []>} : vector<1x128xbf16>, vector<128x128xbf16>, vector<1x128xf32> -> vector<1x128xf32>
    %368 = arith.addf %364, %367 : vector<1x128xf32>
    %369 = vector.extract_strided_slice %331 {offsets = [9, 0], sizes = [1, 128], strides = [1, 1]} : vector<20x128xbf16> to vector<1x128xbf16>
    %c1152 = arith.constant 1152 : index
    %c0_173 = arith.constant 0 : index
    %370 = vector.load %arg20[%c1152, %c0_173] : memref<2560x128xbf16, #tpu.memory_space<vmem>>, vector<128x128xbf16>
    %cst_174 = arith.constant dense<0.000000e+00> : vector<1x128xf32>
    %371 = tpu.matmul %369, %370, %cst_174 {dimension_numbers = #tpu.dot_dimension_numbers<[1], [0], [0], [1], [0, 0, 1, 1], [], []>} : vector<1x128xbf16>, vector<128x128xbf16>, vector<1x128xf32> -> vector<1x128xf32>
    %372 = arith.addf %368, %371 : vector<1x128xf32>
    %373 = vector.extract_strided_slice %331 {offsets = [10, 0], sizes = [1, 128], strides = [1, 1]} : vector<20x128xbf16> to vector<1x128xbf16>
    %c1280 = arith.constant 1280 : index
    %c0_175 = arith.constant 0 : index
    %374 = vector.load %arg20[%c1280, %c0_175] : memref<2560x128xbf16, #tpu.memory_space<vmem>>, vector<128x128xbf16>
    %cst_176 = arith.constant dense<0.000000e+00> : vector<1x128xf32>
    %375 = tpu.matmul %373, %374, %cst_176 {dimension_numbers = #tpu.dot_dimension_numbers<[1], [0], [0], [1], [0, 0, 1, 1], [], []>} : vector<1x128xbf16>, vector<128x128xbf16>, vector<1x128xf32> -> vector<1x128xf32>
    %376 = arith.addf %372, %375 : vector<1x128xf32>
    %377 = vector.extract_strided_slice %331 {offsets = [11, 0], sizes = [1, 128], strides = [1, 1]} : vector<20x128xbf16> to vector<1x128xbf16>
    %c1408 = arith.constant 1408 : index
    %c0_177 = arith.constant 0 : index
    %378 = vector.load %arg20[%c1408, %c0_177] : memref<2560x128xbf16, #tpu.memory_space<vmem>>, vector<128x128xbf16>
    %cst_178 = arith.constant dense<0.000000e+00> : vector<1x128xf32>
    %379 = tpu.matmul %377, %378, %cst_178 {dimension_numbers = #tpu.dot_dimension_numbers<[1], [0], [0], [1], [0, 0, 1, 1], [], []>} : vector<1x128xbf16>, vector<128x128xbf16>, vector<1x128xf32> -> vector<1x128xf32>
    %380 = arith.addf %376, %379 : vector<1x128xf32>
    %381 = vector.extract_strided_slice %331 {offsets = [12, 0], sizes = [1, 128], strides = [1, 1]} : vector<20x128xbf16> to vector<1x128xbf16>
    %c1536 = arith.constant 1536 : index
    %c0_179 = arith.constant 0 : index
    %382 = vector.load %arg20[%c1536, %c0_179] : memref<2560x128xbf16, #tpu.memory_space<vmem>>, vector<128x128xbf16>
    %cst_180 = arith.constant dense<0.000000e+00> : vector<1x128xf32>
    %383 = tpu.matmul %381, %382, %cst_180 {dimension_numbers = #tpu.dot_dimension_numbers<[1], [0], [0], [1], [0, 0, 1, 1], [], []>} : vector<1x128xbf16>, vector<128x128xbf16>, vector<1x128xf32> -> vector<1x128xf32>
    %384 = arith.addf %380, %383 : vector<1x128xf32>
    %385 = vector.extract_strided_slice %331 {offsets = [13, 0], sizes = [1, 128], strides = [1, 1]} : vector<20x128xbf16> to vector<1x128xbf16>
    %c1664 = arith.constant 1664 : index
    %c0_181 = arith.constant 0 : index
    %386 = vector.load %arg20[%c1664, %c0_181] : memref<2560x128xbf16, #tpu.memory_space<vmem>>, vector<128x128xbf16>
    %cst_182 = arith.constant dense<0.000000e+00> : vector<1x128xf32>
    %387 = tpu.matmul %385, %386, %cst_182 {dimension_numbers = #tpu.dot_dimension_numbers<[1], [0], [0], [1], [0, 0, 1, 1], [], []>} : vector<1x128xbf16>, vector<128x128xbf16>, vector<1x128xf32> -> vector<1x128xf32>
    %388 = arith.addf %384, %387 : vector<1x128xf32>
    %389 = vector.extract_strided_slice %331 {offsets = [14, 0], sizes = [1, 128], strides = [1, 1]} : vector<20x128xbf16> to vector<1x128xbf16>
    %c1792 = arith.constant 1792 : index
    %c0_183 = arith.constant 0 : index
    %390 = vector.load %arg20[%c1792, %c0_183] : memref<2560x128xbf16, #tpu.memory_space<vmem>>, vector<128x128xbf16>
    %cst_184 = arith.constant dense<0.000000e+00> : vector<1x128xf32>
    %391 = tpu.matmul %389, %390, %cst_184 {dimension_numbers = #tpu.dot_dimension_numbers<[1], [0], [0], [1], [0, 0, 1, 1], [], []>} : vector<1x128xbf16>, vector<128x128xbf16>, vector<1x128xf32> -> vector<1x128xf32>
    %392 = arith.addf %388, %391 : vector<1x128xf32>
    %393 = vector.extract_strided_slice %331 {offsets = [15, 0], sizes = [1, 128], strides = [1, 1]} : vector<20x128xbf16> to vector<1x128xbf16>
    %c1920 = arith.constant 1920 : index
    %c0_185 = arith.constant 0 : index
    %394 = vector.load %arg20[%c1920, %c0_185] : memref<2560x128xbf16, #tpu.memory_space<vmem>>, vector<128x128xbf16>
    %cst_186 = arith.constant dense<0.000000e+00> : vector<1x128xf32>
    %395 = tpu.matmul %393, %394, %cst_186 {dimension_numbers = #tpu.dot_dimension_numbers<[1], [0], [0], [1], [0, 0, 1, 1], [], []>} : vector<1x128xbf16>, vector<128x128xbf16>, vector<1x128xf32> -> vector<1x128xf32>
    %396 = arith.addf %392, %395 : vector<1x128xf32>
    %397 = vector.extract_strided_slice %331 {offsets = [16, 0], sizes = [1, 128], strides = [1, 1]} : vector<20x128xbf16> to vector<1x128xbf16>
    %c2048 = arith.constant 2048 : index
    %c0_187 = arith.constant 0 : index
    %398 = vector.load %arg20[%c2048, %c0_187] : memref<2560x128xbf16, #tpu.memory_space<vmem>>, vector<128x128xbf16>
    %cst_188 = arith.constant dense<0.000000e+00> : vector<1x128xf32>
    %399 = tpu.matmul %397, %398, %cst_188 {dimension_numbers = #tpu.dot_dimension_numbers<[1], [0], [0], [1], [0, 0, 1, 1], [], []>} : vector<1x128xbf16>, vector<128x128xbf16>, vector<1x128xf32> -> vector<1x128xf32>
    %400 = arith.addf %396, %399 : vector<1x128xf32>
    %401 = vector.extract_strided_slice %331 {offsets = [17, 0], sizes = [1, 128], strides = [1, 1]} : vector<20x128xbf16> to vector<1x128xbf16>
    %c2176 = arith.constant 2176 : index
    %c0_189 = arith.constant 0 : index
    %402 = vector.load %arg20[%c2176, %c0_189] : memref<2560x128xbf16, #tpu.memory_space<vmem>>, vector<128x128xbf16>
    %cst_190 = arith.constant dense<0.000000e+00> : vector<1x128xf32>
    %403 = tpu.matmul %401, %402, %cst_190 {dimension_numbers = #tpu.dot_dimension_numbers<[1], [0], [0], [1], [0, 0, 1, 1], [], []>} : vector<1x128xbf16>, vector<128x128xbf16>, vector<1x128xf32> -> vector<1x128xf32>
    %404 = arith.addf %400, %403 : vector<1x128xf32>
    %405 = vector.extract_strided_slice %331 {offsets = [18, 0], sizes = [1, 128], strides = [1, 1]} : vector<20x128xbf16> to vector<1x128xbf16>
    %c2304 = arith.constant 2304 : index
    %c0_191 = arith.constant 0 : index
    %406 = vector.load %arg20[%c2304, %c0_191] : memref<2560x128xbf16, #tpu.memory_space<vmem>>, vector<128x128xbf16>
    %cst_192 = arith.constant dense<0.000000e+00> : vector<1x128xf32>
    %407 = tpu.matmul %405, %406, %cst_192 {dimension_numbers = #tpu.dot_dimension_numbers<[1], [0], [0], [1], [0, 0, 1, 1], [], []>} : vector<1x128xbf16>, vector<128x128xbf16>, vector<1x128xf32> -> vector<1x128xf32>
    %408 = arith.addf %404, %407 : vector<1x128xf32>
    %409 = vector.extract_strided_slice %331 {offsets = [19, 0], sizes = [1, 128], strides = [1, 1]} : vector<20x128xbf16> to vector<1x128xbf16>
    %c2432 = arith.constant 2432 : index
    %c0_193 = arith.constant 0 : index
    %410 = vector.load %arg20[%c2432, %c0_193] : memref<2560x128xbf16, #tpu.memory_space<vmem>>, vector<128x128xbf16>
    %cst_194 = arith.constant dense<0.000000e+00> : vector<1x128xf32>
    %411 = tpu.matmul %409, %410, %cst_194 {dimension_numbers = #tpu.dot_dimension_numbers<[1], [0], [0], [1], [0, 0, 1, 1], [], []>} : vector<1x128xbf16>, vector<128x128xbf16>, vector<1x128xf32> -> vector<1x128xf32>
    %412 = arith.addf %408, %411 : vector<1x128xf32>
    %c0_195 = arith.constant 0 : index
    %c0_196 = arith.constant 0 : index
    %c0_197 = arith.constant 0 : index
    %413 = vector.load %arg22[%c0_195, %c0_196, %c0_197] : memref<1x1x128xf32, #tpu.memory_space<vmem>>, vector<1x1x128xf32>
    %414 = vector.shape_cast %413 : vector<1x1x128xf32> to vector<1x128xf32>
    %415 = vector.shape_cast %412 : vector<1x128xf32> to vector<1x1x128xf32>
    tpu.vector_store %arg22[%c0_195, %c0_196, %c0_197], %415 {strides = array<i32>} : memref<1x1x128xf32, #tpu.memory_space<vmem>>, vector<1x1x128xf32>,
    return
  }
  func.func @transform_0(%arg0: i32) -> (i32, i32, i32) {
    %c0_i32 = arith.constant 0 : i32
    %c0_i32_0 = arith.constant 0 : i32
    %c0_i32_1 = arith.constant 0 : i32
    return %arg0, %c0_i32, %c0_i32_0 : i32, i32, i32
  }
  func.func @transform_1(%arg0: i32) -> (i32, i32, i32) {
    %c0_i32 = arith.constant 0 : i32
    %c0_i32_0 = arith.constant 0 : i32
    %c0_i32_1 = arith.constant 0 : i32
    return %arg0, %c0_i32, %c0_i32_0 : i32, i32, i32
  }
  func.func @transform_2(%arg0: i32) -> (i32, i32) {
    %c0_i32 = arith.constant 0 : i32
    %c0_i32_0 = arith.constant 0 : i32
    %c0_i32_1 = arith.constant 0 : i32
    return %c0_i32, %c0_i32_0 : i32, i32
  }
  func.func @transform_3(%arg0: i32) -> (i32, i32) {
    %c0_i32 = arith.constant 0 : i32
    %c0_i32_0 = arith.constant 0 : i32
    %c0_i32_1 = arith.constant 0 : i32
    return %c0_i32, %c0_i32_0 : i32, i32
  }
  func.func @transform_4(%arg0: i32) -> (i32, i32) {
    %c0_i32 = arith.constant 0 : i32
    %c0_i32_0 = arith.constant 0 : i32
    %c0_i32_1 = arith.constant 0 : i32
    return %c0_i32, %c0_i32_0 : i32, i32
  }
  func.func @transform_5(%arg0: i32) -> (i32, i32) {
    %c0_i32 = arith.constant 0 : i32
    %c0_i32_0 = arith.constant 0 : i32
    %c0_i32_1 = arith.constant 0 : i32
    return %c0_i32, %c0_i32_0 : i32, i32
  }
  func.func @transform_6(%arg0: i32) -> (i32, i32) {
    %c0_i32 = arith.constant 0 : i32
    %c0_i32_0 = arith.constant 0 : i32
    %c0_i32_1 = arith.constant 0 : i32
    return %c0_i32, %c0_i32_0 : i32, i32
  }
  func.func @transform_7(%arg0: i32) -> (i32, i32, i32) {
    %c0_i32 = arith.constant 0 : i32
    %c0_i32_0 = arith.constant 0 : i32
    %c0_i32_1 = arith.constant 0 : i32
    %c0_i32_2 = arith.constant 0 : i32
    return %c0_i32, %c0_i32_0, %c0_i32_1 : i32, i32, i32
  }
  func.func @transform_8(%arg0: i32) -> (i32, i32, i32) {
    %c0_i32 = arith.constant 0 : i32
    %c0_i32_0 = arith.constant 0 : i32
    %c0_i32_1 = arith.constant 0 : i32
    %c0_i32_2 = arith.constant 0 : i32
    return %c0_i32, %c0_i32_0, %c0_i32_1 : i32, i32, i32
  }
  func.func @transform_9(%arg0: i32) -> (i32, i32, i32) {
    %c0_i32 = arith.constant 0 : i32
    %c0_i32_0 = arith.constant 0 : i32
    %c0_i32_1 = arith.constant 0 : i32
    %c0_i32_2 = arith.constant 0 : i32
    return %c0_i32, %c0_i32_0, %c0_i32_1 : i32, i32, i32
  }
  func.func @transform_10(%arg0: i32) -> (i32, i32, i32) {
    %c0_i32 = arith.constant 0 : i32
    %c0_i32_0 = arith.constant 0 : i32
    %c0_i32_1 = arith.constant 0 : i32
    %c0_i32_2 = arith.constant 0 : i32
    return %c0_i32, %c0_i32_0, %c0_i32_1 : i32, i32, i32
  }
  func.func @transform_11(%arg0: i32) -> (i32, i32, i32) {
    %c0_i32 = arith.constant 0 : i32
    %c0_i32_0 = arith.constant 0 : i32
    %c0_i32_1 = arith.constant 0 : i32
    %c0_i32_2 = arith.constant 0 : i32
    return %c0_i32, %c0_i32_0, %c0_i32_1 : i32, i32, i32
  }
  func.func @transform_12(%arg0: i32) -> (i32, i32, i32) {
    %c0_i32 = arith.constant 0 : i32
    %c0_i32_0 = arith.constant 0 : i32
    %c0_i32_1 = arith.constant 0 : i32
    %c0_i32_2 = arith.constant 0 : i32
    return %c0_i32, %c0_i32_0, %c0_i32_1 : i32, i32, i32
  }
  func.func @transform_13(%arg0: i32) -> (i32, i32, i32) {
    %c0_i32 = arith.constant 0 : i32
    %c0_i32_0 = arith.constant 0 : i32
    %c0_i32_1 = arith.constant 0 : i32
    %c0_i32_2 = arith.constant 0 : i32
    return %c0_i32, %c0_i32_0, %c0_i32_1 : i32, i32, i32
  }
  func.func @transform_14(%arg0: i32) -> (i32, i32, i32) {
    %c0_i32 = arith.constant 0 : i32
    %c0_i32_0 = arith.constant 0 : i32
    %c0_i32_1 = arith.constant 0 : i32
    %c0_i32_2 = arith.constant 0 : i32
    return %c0_i32, %c0_i32_0, %c0_i32_1 : i32, i32, i32
  }
  func.func @transform_15(%arg0: i32) -> (i32, i32, i32) {
    %c0_i32 = arith.constant 0 : i32
    %c0_i32_0 = arith.constant 0 : i32
    %c0_i32_1 = arith.constant 0 : i32
    %c0_i32_2 = arith.constant 0 : i32
    return %c0_i32, %c0_i32_0, %c0_i32_1 : i32, i32, i32
  }
  func.func @transform_16(%arg0: i32) -> (i32, i32, i32) {
    %c0_i32 = arith.constant 0 : i32
    %c0_i32_0 = arith.constant 0 : i32
    %c0_i32_1 = arith.constant 0 : i32
    %c0_i32_2 = arith.constant 0 : i32
    return %c0_i32, %c0_i32_0, %c0_i32_1 : i32, i32, i32
  }
  func.func @transform_17(%arg0: i32) -> (i32, i32, i32) {
    %c0_i32 = arith.constant 0 : i32
    %c0_i32_0 = arith.constant 0 : i32
    %c0_i32_1 = arith.constant 0 : i32
    %c0_i32_2 = arith.constant 0 : i32
    return %c0_i32, %c0_i32_0, %c0_i32_1 : i32, i32, i32
  }
  func.func @transform_18(%arg0: i32) -> (i32, i32, i32) {
    %c0_i32 = arith.constant 0 : i32
    %c0_i32_0 = arith.constant 0 : i32
    %c0_i32_1 = arith.constant 0 : i32
    %c0_i32_2 = arith.constant 0 : i32
    return %c0_i32, %c0_i32_0, %c0_i32_1 : i32, i32, i32
  }
  func.func @transform_19(%arg0: i32) -> (i32, i32) {
    %c0_i32 = arith.constant 0 : i32
    %c0_i32_0 = arith.constant 0 : i32
    %c0_i32_1 = arith.constant 0 : i32
    return %c0_i32, %c0_i32_0 : i32, i32
  }
  func.func @transform_20(%arg0: i32) -> (i32, i32) {
    %c0_i32 = arith.constant 0 : i32
    %c0_i32_0 = arith.constant 0 : i32
    %c0_i32_1 = arith.constant 0 : i32
    return %c0_i32, %c0_i32_0 : i32, i32
  }
  func.func @transform_21(%arg0: i32) -> (i32, i32, i32) {
    %c0_i32 = arith.constant 0 : i32
    %c0_i32_0 = arith.constant 0 : i32
    %c0_i32_1 = arith.constant 0 : i32
    return %arg0, %c0_i32, %c0_i32_0 : i32, i32, i32
  }
}

</mosaic_0001>

<bundles_post_ra>
// kernel: tpu_custom_call.1
= control target key start
LH: loop header
LB: loop body
LE: loop exit
PB: predicated region body
PF: predicated region fallthrough
CT: control target
= control target key end

     0   :  { %s10256_s0 = inlined_call_operand.hbm [shape: f32[2,4,8], index: 0, kind: input, shape index: {}]   ;;  %s10257_s1 = inlined_call_operand.hbm [shape: f32[2,4,128], index: 1, kind: input, shape index: {}]   ;;  %s10258_s2 = inlined_call_operand.hbm [shape: f32[20,128], index: 2, kind: input, shape index: {}]   ;;  %s10259_s3 = inlined_call_operand.hbm [shape: bf16[8,128], index: 3, kind: input, shape index: {}]   ;;  %s10260_s4 = inlined_call_operand.hbm [shape: f32[1,128], index: 4, kind: input, shape index: {}]   ;;  %s10261_s5 = inlined_call_operand.hbm [shape: bf16[128,512], index: 5, kind: input, shape index: {}]   ;;  %s10262_s6 = inlined_call_operand.hbm [shape: f32[1,512], index: 6, kind: input, shape index: {}]   ;;  %s10263_s7 = inlined_call_operand.hbm [shape: bf16[2,128,384], index: 7, kind: input, shape index: {}]   ;;  %s10264_s8 = inlined_call_operand.vmem [shape: f32[2,1,384], index: 8, kind: input, shape index: {}]   ;;  %s10265_s9 = inlined_call_operand.hbm [shape: bf16[2,128,128], index: 9, kind: input, shape index: {}]   ;;  %s10266_s10 = inlined_call_operand.hbm [shape: f32[2,1,128], index: 10, kind: input, shape index: {}]   ;;  %s10267_s11 = inlined_call_operand.hbm [shape: f32[2,1,128], index: 11, kind: input, shape index: {}]   ;;  %s10268_s12 = inlined_call_operand.hbm [shape: f32[2,1,128], index: 12, kind: input, shape index: {}]   ;;  %s10269_s13 = inlined_call_operand.hbm [shape: bf16[2,128,384], index: 13, kind: input, shape index: {}]   ;;  %s10270_s14 = inlined_call_operand.vmem [shape: f32[2,1,384], index: 14, kind: input, shape index: {}]   ;;  %s10271_s15 = inlined_call_operand.hbm [shape: bf16[2,384,128], index: 15, kind: input, shape index: {}]   ;;  %s10272_s16 = inlined_call_operand.vmem [shape: f32[2,1,128], index: 16, kind: input, shape index: {}]   ;;  %s10273_s17 = inlined_call_operand.vmem [shape: f32[2,1,128], index: 17, kind: input, shape index: {}]   ;;  %s10274_s18 = inlined_call_operand.hbm [shape: f32[2,1,128], index: 18, kind: input, shape index: {}]   ;;  %s10275_s19 = inlined_call_operand.hbm [shape: bf16[2560,128], index: 19, kind: input, shape index: {}]   ;;  %s10276_s20 = inlined_call_operand.vmem [shape: f32[1,128], index: 20, kind: input, shape index: {}]   ;;  %s10277_s21 = inlined_call_operand.hbm [shape: f32[2,1,128], index: 21, kind: output, shape index: {}]  }
   0x1   :  { %10292 = sst [smem:[#allocation41_spill]] %s10256_s0 }
   0x2   :  { %10293 = sst [smem:[#allocation42_spill]] %s10257_s1 }
   0x3   :  { %10294 = sst [smem:[#allocation43_spill]] %s10258_s2 }
   0x4   :  { %10295 = sst [smem:[#allocation44_spill]] %s10259_s3 }
   0x5   :  { %10296 = sst [smem:[#allocation45_spill]] %s10260_s4 }
   0x6   :  { %10297 = sst [smem:[#allocation46_spill]] %s10261_s5 }
   0x7   :  { %10298 = sst [smem:[#allocation47_spill]] %s10262_s6 }
   0x8   :  { %10299 = sst [smem:[#allocation48_spill]] %s10263_s7 }
   0x9   :  { %10300 = sst [smem:[#allocation49_spill]] %s10264_s8 }
   0xa   :  { %10301 = sst [smem:[#allocation50_spill]] %s10265_s9 }
   0xb   :  { %10302 = sst [smem:[#allocation51_spill]] %s10266_s10 }
   0xc   :  { %10303 = sst [smem:[#allocation52_spill]] %s10267_s11 }
   0xd   :  { %10304 = sst [smem:[#allocation53_spill]] %s10268_s12 }
   0xe   :  { %10305 = sst [smem:[#allocation54_spill]] %s10269_s13 }
   0xf   :  { %10306 = sst [smem:[#allocation55_spill]] %s10270_s14 }
  0x10   :  { %10307 = sst [smem:[#allocation56_spill]] %s10271_s15 }
  0x11   :  { %10308 = sst [smem:[#allocation57_spill]] %s10272_s16 }
  0x12   :  { %10309 = sst [smem:[#allocation58_spill]] %s10273_s17 }
  0x13   :  { %10310 = sst [smem:[#allocation59_spill]] %s10274_s18 }
  0x14   :  { %10311 = sst [smem:[#allocation60_spill]] %s10276_s20 }
  0x15   :  { %10312 = sst [smem:[#allocation61_spill]] %s10277_s21 }
  0x16   :  { %26 = vsyncpa [#allocation3], 0 }
  0x17   :  { %28 = vsyncpa [#allocation3 + $0x1], 0 }
  0x18   :  { %29 = vsyncpa [#allocation6], 0 }
  0x19   :  { %31 = vsyncpa [#allocation6 + $0x1], 0 }
  0x1a   :  { %32 = vsyncpa [#allocation9], 0 }
  0x1b   :  { %33 = vsyncpa [#allocation12], 0 }
  0x1c   :  { %34 = vsyncpa [#allocation15], 0 }
  0x1d   :  { %35 = vsyncpa [#allocation18], 0 }
  0x1e   :  { %36 = vsyncpa [#allocation21], 0 }
  0x1f   :  { %37 = vsyncpa [#allocation24], 0 }
  0x20   :  { %38 = vsyncpa [#allocation27], 0 }
  0x21   :  { %39 = vsyncpa [#allocation4], 0 }
  0x22   :  { %41 = vsyncpa [#allocation4 + $0x1], 0  ;;  %s9247_s2 = smov 0   ;;  %s9249_s25 = smov 0  }
  0x23   :  { %s9251_s26 = smov 0   ;;  %s9253_s27 = smov 0  }
  0x24 LB: > { %s10313_s29 = sld [smem:[#allocation43_spill]]  ;;  %s9271_s4 = sadd.s32 4294967295, %s9108_s27   ;;  %s9108_s27 = sphi %s9253_s27, %s10361_s27   ;;  %s9104_s26 = sphi %s9251_s26, %s10360_s26   ;;  %s9100_s25 = sphi %s9249_s25, %s10359_s25   ;;  %s9096_s2 = sphi %s9247_s2, %s10358_s2  }
  0x25   : > { %p6320_p0 = scmp.ge.s32.totalorder %s9108_s27, 1  ;;  %p68_p1 = scmp.eq.s32.totalorder %s9271_s4, 0 }
  0x26   : > { %p529_p2 = scmp.lt.s32.totalorder %s9108_s27, 3  ;;  %s9110_s5 = smov [#allocation7]  }
  0x27   : > { %s542_s22 = sshll.u32 %s9110_s5, 4  ;;  %s10316_s24 = sld [smem:[#allocation44_spill]]  ;;  %s543_s22 = int_to_ptr.vmem [resolvable:$true] %s542_s22 }
  0x28   : > { %p9276_p3 = pnand %p6320_p0, %p529_p2  ;;  %s10318_s20 = sld [smem:[#allocation46_spill]] }
  0x29   : > { %s9111_s17 = smov [#allocation8]   ;;  %s9112_s14 = smov 128  }
  0x2a   : > { %s540_s0 = sshll.u32 %s10313_s29, 4  ;;  %p8218_p4 = pneg %p9276_p3  ;;  %s541_s0 = int_to_ptr.hbm [resolvable:$true] %s540_s0 }
  0x2b   : > { %s10314_s30 = scalar_select %p9276_p3, 1, 0 }
  0x2c   : > { %p9288_p6 = pnand %p8218_p4, %p68_p1  ;;  %s557_s16 = sshll.u32 %s9111_s17, 4  ;;  %s558_s16 = int_to_ptr.vmem [resolvable:$true] %s557_s16 }
  0x2d   : > { %10315 = sst [smem:[#allocation40_spill]] %s10314_s30  ;;  %s555_s3 = sshll.u32 %s10316_s24, 4  ;;  %s556_s3 = int_to_ptr.hbm [resolvable:$true] %s555_s3 }
  0x2e   : > { %s578_s5 = sshll.u32 %s10318_s20, 4  ;;  %s9113_s8 = smov 8   ;;  %s579_s5 = int_to_ptr.hbm [resolvable:$true] %s578_s5 }
  0x2f   : > { %8221 = dma.hbm_to_vmem [thread:$0]  (!%p9288_p6), %s541_s0, 384, %s543_s22, [#allocation6], %s9112_s14, %s9112_s14, %s9113_s8  }
  0x30   : > { %8224 = dma.hbm_to_vmem [thread:$0]  (!%p9288_p6), %s556_s3, 64, %s558_s16, [#allocation9]  }
  0x31   : > { %s9114_s23 = smov [#allocation11]   ;;  %s10319_s7 = sld [smem:[#allocation48_spill]] }
  0x32   : > { %s580_s1 = sshll.u32 %s9114_s23, 4  ;;  %s9115_s29 = smov 256   ;;  %s581_s1 = int_to_ptr.vmem [resolvable:$true] %s580_s1 }
  0x33   : > { %s10288_s20 = smov 16   ;;  %s9117_s8 = smov [#allocation14]  }
  0x34   : > { %8230 = dma.hbm_to_vmem [thread:$0]  (!%p9288_p6), %s579_s5, 4096, %s581_s1, [#allocation12], %s9115_s29, %s9115_s29, %s10288_s20  }
  0x35   : > { %s606_s14 = sshll.u32 %s9117_s8, 4  ;;  %s10286_s17 = smov 192   ;;  %s607_s14 = int_to_ptr.vmem [resolvable:$true] %s606_s14 }
  0x36   : > { %s10287_s16 = smov 12   ;;  %s10320_s10 = sld [smem:[#allocation51_spill]] }
  0x37   : > { %s604_s21 = sshll.u32 %s10319_s7, 4  ;;  %s9120_s3 = smov [#allocation17]   ;;  %s605_s21 = int_to_ptr.hbm [resolvable:$true] %s604_s21 }
  0x38   : > { %8236 = dma.hbm_to_vmem [thread:$0]  (!%p9288_p6), %s605_s21, 6144, %s607_s14, [#allocation15], %s10286_s17, %s10286_s17, %s10287_s16  }
  0x39   : > { %s637_s23 = sshll.u32 %s9120_s3, 4  ;;  %s10290_s5 = smov 1   ;;  %s638_s23 = int_to_ptr.vmem [resolvable:$true] %s637_s23 }
  0x3a   : > { %s10321_s12 = sld [smem:[#allocation53_spill]]  ;;  %s9122_s21 = smov [#allocation20]  }
  0x3b   : > { %s665_s8 = sshll.u32 %s9122_s21, 4  ;;  %s10322_s15 = sld [smem:[#allocation56_spill]]  ;;  %s666_s8 = int_to_ptr.vmem [resolvable:$true] %s665_s8 }
  0x3c   : > { %s635_s22 = sshll.u32 %s10320_s10, 4  ;;  %s10323_s24 = sld [smem:[#allocation45_spill]]  ;;  %s636_s22 = int_to_ptr.hbm [resolvable:$true] %s635_s22 }
  0x3d   : > { %8242 = dma.hbm_to_vmem [thread:$0]  (!%p9288_p6), %s636_s22, 32, %s638_s23, [#allocation18], %s10288_s20, %s10288_s20, %s10290_s5  }
  0x3e   : > { %s9123_s22 = smov [#allocation23]   ;;  %s9124_s21 = smov 64  }
  0x3f   : > { %s696_s3 = sshll.u32 %s9123_s22, 4  ;;  %s9125_s16 = smov 4   ;;  %s697_s3 = int_to_ptr.vmem [resolvable:$true] %s696_s3 }
  0x40   : > { %s663_s29 = sshll.u32 %s10321_s12, 4  ;;  %s10324_s6 = sld [smem:[#allocation47_spill]]  ;;  %s664_s29 = int_to_ptr.hbm [resolvable:$true] %s663_s29 }
  0x41   : > { %8248 = dma.hbm_to_vmem [thread:$0]  (!%p9288_p6), %s664_s29, 32, %s666_s8, [#allocation21], %s10288_s20, %s10288_s20, %s10290_s5  }
  0x42   : > { %s694_s30 = sshll.u32 %s10322_s15, 4  ;;  %s567_s17 = sshll.u32 %s10323_s24, 4  ;;  %s695_s30 = int_to_ptr.hbm [resolvable:$true] %s694_s30  ;;  %s568_s17 = int_to_ptr.hbm [resolvable:$true] %s567_s17 }
  0x43   : > { %8254 = dma.hbm_to_vmem [thread:$0]  (!%p9288_p6), %s695_s30, 6144, %s697_s3, [#allocation24], %s9124_s21, %s9124_s21, %s9125_s16  }
  0x44   : > { %s9126_s0 = smov [#allocation10]   ;;  %s9127_s23 = smov [#allocation13]  }
  0x45   : > { %s569_s22 = sshll.u32 %s9126_s0, 4  ;;  %s595_s1 = sshll.u32 %s9127_s23, 4  ;;  %s570_s22 = int_to_ptr.vmem [resolvable:$true] %s569_s22  ;;  %s596_s1 = int_to_ptr.vmem [resolvable:$true] %s595_s1 }
  0x46   : > { %s593_s14 = sshll.u32 %s10324_s6, 4  ;;  %s10325_s9 = sld [smem:[#allocation50_spill]]  ;;  %s594_s14 = int_to_ptr.hbm [resolvable:$true] %s593_s14 }
  0x47   : > { %8227 = dma.hbm_to_vmem [thread:$0]  (!%p9288_p6), %s568_s17, 16, %s570_s22, [#allocation9]  }
  0x48   : > { %8233 = dma.hbm_to_vmem [thread:$0]  (!%p9288_p6), %s594_s14, 64, %s596_s1, [#allocation12]  }
  0x49   : > { %s10326_s11 = sld [smem:[#allocation52_spill]]  ;;  %s9128_s8 = smov [#allocation16]  }
  0x4a   : > { %s623_s0 = sshll.u32 %s9128_s8, 4  ;;  %s9129_s20 = smov [#allocation19]   ;;  %s624_s0 = int_to_ptr.vmem [resolvable:$true] %s623_s0 }
  0x4b   : > { %s651_s17 = sshll.u32 %s9129_s20, 4  ;;  %s10327_s13 = sld [smem:[#allocation54_spill]]  ;;  %s652_s17 = int_to_ptr.vmem [resolvable:$true] %s651_s17 }
  0x4c   : > { %s621_s5 = sshll.u32 %s10325_s9, 4  ;;  %s10328_s1 = smov 1   ;;  %s622_s5 = int_to_ptr.hbm [resolvable:$true] %s621_s5 }
  0x4d   : > { %8239 = dma.hbm_to_vmem [thread:$0]  (!%p9288_p6), %s622_s5, 2048, %s624_s0, [#allocation15], %s9124_s21, %s9124_s21, %s9125_s16  }
  0x4e   : > { %s10329_s24 = smov 16   ;;  %s10330_s18 = sld [smem:[#allocation59_spill]] }
  0x4f   : > { %s649_s29 = sshll.u32 %s10326_s11, 4  ;;  %s9130_s5 = smov [#allocation22]   ;;  %s650_s29 = int_to_ptr.hbm [resolvable:$true] %s649_s29 }
  0x50   : > { %8245 = dma.hbm_to_vmem [thread:$0]  (!%p9288_p6), %s650_s29, 32, %s652_s17, [#allocation18], %s10329_s24, %s10329_s24, %s10328_s1  }
  0x51   : > { %s677_s14 = sshll.u32 %s10327_s13, 4  ;;  %s679_s0 = sshll.u32 %s9130_s5, 4  ;;  %s678_s14 = int_to_ptr.hbm [resolvable:$true] %s677_s14  ;;  %s680_s0 = int_to_ptr.vmem [resolvable:$true] %s679_s0 }
  0x52   : > { %s10331_s20 = smov 12   ;;  %s10332_s22 = smov 192  }
  0x53   : > { %8251 = dma.hbm_to_vmem [thread:$0]  (!%p9288_p6), %s678_s14, 6144, %s680_s0, [#allocation21], %s10332_s22, %s10332_s22, %s10331_s20  }
  0x54   : > { %s714_s8 = sshll.u32 %s10330_s18, 4  ;;  %s9131_s29 = smov [#allocation25]   ;;  %s715_s8 = int_to_ptr.hbm [resolvable:$true] %s714_s8 }
  0x55   : > { %s716_s17 = sshll.u32 %s9131_s29, 4  ;;  %s728_s3 = sshll.u32 %s10275_s19, 4  ;;  %s717_s17 = int_to_ptr.vmem [resolvable:$true] %s716_s17  ;;  %s729_s3 = int_to_ptr.hbm [resolvable:$true] %s728_s3 }
  0x56   : > { %8257 = dma.hbm_to_vmem [thread:$0]  (!%p9288_p6), %s715_s8, 32, %s717_s17, [#allocation24], %s10329_s24, %s10329_s24, %s10328_s1  }
  0x57   : > { %s9132_s14 = smov [#allocation26]   ;;  %s6319_s0 = sadd.s32 4294967294, %s9108_s27  }
  0x58   : > { %s730_s5 = sshll.u32 %s9132_s14, 4  ;;  %s9386_s20 = sadd.s32 1, %s9108_s27   ;;  %s731_s5 = int_to_ptr.vmem [resolvable:$true] %s730_s5 }
  0x59   : > { %8260 = dma.hbm_to_vmem [thread:$0]  (!%p9288_p6), %s729_s3, 20480, %s731_s5, [#allocation27], %s9124_s21, %s9124_s21, %s9125_s16  }
  0x5a   : > { %s54_s22 = sadd.s32 1, %s9104_s26  ;;  %s51_s29 = ssub.s32 %s9108_s27, %s9386_s20 }
  0x5b   : > { %p61_p7 = scmp.ne.s32.totalorder %s9104_s26, %s9100_s25  ;;  %p52_p8 = scmp.eq.s32.totalorder %s51_s29, 0 }
  0x5c   : > { %p62_p9 = scmp.eq.s32.totalorder %s9108_s27, 0  ;;  %p67_p10 = scmp.ne.s32.totalorder %s9100_s25, %s9096_s2 }
  0x5d   : > { %p516_p11 = scmp.eq.s32.totalorder %s9271_s4, 1  ;;  %p522_p2 = scmp.eq.s32.totalorder %s6319_s0, 1 }
  0x5e   : > { %s9398_s1 = scalar_select %p52_p8, %s9104_s26, %s54_s22  }
  0x5f   : > { %p9400_p12 = por %p62_p9, %p61_p7  ;;  %p9406_p13 = por %p68_p1, %p67_p10 }
  0x60   : > { %p9410_p0 = por %p516_p11, %p61_p7  ;;  %p8286_p4 = scmp.lt.s32.totalorder %s9108_s27, 2 }
  0x61   : > { %s747_s24 = sand.u32 1, %s9104_s26   ;;  %p9416_p6 = por %p522_p2, %p67_p10 }
  0x62   : > { %s6336_s17 = sshll.u32 %s747_s24, 2  ;;  %s6337_s23 = sshll.u32 %s9108_s27, 2 }
  0x63   : > { %s10337_s14 = sld [smem:[#allocation41_spill]]  ;;  %s751_s29 = scalar_lea.vmem [#allocation2], %s6336_s17 }
  0x64   : > { %s759_s6 = sshll.u32 %s751_s29, 4  ;;  %p9426_p7 = pnand %p8286_p4, %p9400_p12  ;;  %s760_s6 = int_to_ptr.vmem [resolvable:$true] %s759_s6 }
  0x65   : > { %s10339_s10 = sld [smem:[#allocation42_spill]]  ;;  %s766_s12 = sand.u32 1, %s9108_s27  }
  0x66   : > { %s748_s13 = scalar_lea.sflag [#allocation3], %s747_s24  ;;  %p8950_p9 = pneg %p9426_p7 }
  0x69   : > { %s755_s5 = scalar_lea.hbm %s10337_s14, %s6337_s23  ;;  %s8953_s29 = scalar_lea.hbm %s10337_s14, 8 }
  0x6a   : > { %s757_s22 = sshll.u32 %s755_s5, 4  ;;  %s758_s22 = int_to_ptr.hbm [resolvable:$true] %s757_s22 }
  0x6b   : > { %s774_s11 = scalar_lea.hbm %s10339_s10, %s6337_s23  ;;  %s8946_s30 = sshra.s32 %s758_s22, 4  ;;  %s8947_s30 = int_to_ptr.hbm [resolvable:$true] %s8946_s30 }
  0x6c   : > { %s8948_s3 = scalar_lea.hbm %s8947_s30, 4  ;;  %p8954_p12 = scmp.lt.s32.totalorder %s8947_s30, %s10337_s14 }
  0x6d   : > { %p8949_p8 = scmp.ne.s32.totalorder %s8947_s30, %s8948_s3  ;;  %p8955_p2 = scmp.lt.s32.totalorder %s8953_s29, %s8948_s3 }
  0x6f   : > { %p8951_p10 = pnand %p8950_p9, %p8949_p8  ;;  %p8956_p4 = por %p8955_p2, %p8954_p12 }
  0x71   : > { %p8952_p11 = pneg %p8951_p10 }
  0x73   : > { %p8957_p5 = pnand %p8956_p4, %p8952_p11 }
  0x75   : > { %8960 = shalt.err (!%p8957_p5)
}
  0x76   : > { %8264 = dma.hbm_to_vmem [thread:$0]  (!%p9426_p7), %s758_s22, 64, %s760_s6, %s748_s13  }
  0x77   : > { %s776_s24 = sshll.u32 %s774_s11, 4  ;;  %s770_s23 = scalar_lea.vmem [#allocation5], %s6336_s17  ;;  %s777_s24 = int_to_ptr.hbm [resolvable:$true] %s776_s24 }
  0x78   : > { %s778_s15 = sshll.u32 %s770_s23, 4  ;;  %s767_s18 = scalar_lea.sflag [#allocation6], %s766_s12  ;;  %s779_s15 = int_to_ptr.vmem [resolvable:$true] %s778_s15 }
  0x79   : > { %s8976_s28 = sshra.s32 %s777_s24, 4  ;;  %s8983_s29 = scalar_lea.hbm %s10339_s10, 8  ;;  %s8977_s28 = int_to_ptr.hbm [resolvable:$true] %s8976_s28 }
  0x7a   : > { %s8978_s5 = scalar_lea.hbm %s8977_s28, 4  ;;  %p8984_p5 = scmp.lt.s32.totalorder %s8977_s28, %s10339_s10 }
  0x7b   : > { %p8979_p8 = scmp.ne.s32.totalorder %s8977_s28, %s8978_s5  ;;  %p8985_p11 = scmp.lt.s32.totalorder %s8983_s29, %s8978_s5 }
  0x7d   : > { %p8981_p10 = pnand %p8979_p8, %p8950_p9  ;;  %p8986_p2 = por %p8985_p11, %p8984_p5 }
  0x7f   : > { %p8982_p12 = pneg %p8981_p10 }
  0x81   : > { %p8987_p4 = pnand %p8986_p2, %p8982_p12 }
  0x83   : > { %8990 = shalt.err (!%p8987_p4)
}
  0x84   : > { %8267 = dma.hbm_to_vmem [thread:$0]  (!%p9426_p7), %s777_s24, 64, %s779_s15, %s767_s18  }
  0x85   : > { %787 = sbr.rel (%p9276_p3) target bundleno = 4772 (0x12a4), region = 104  ;;  %s9461_s12 = sand.u32 (!%p9276_p3), 1, %s9100_s25  }
  0x86   : > { %s6341_s13 = sshll.u32 (!%p9276_p3), %s9461_s12, 2  ;;  %s790_s17 = scalar_lea.sflag (!%p9276_p3), [#allocation3], %s9461_s12 }
  0x87   : > { %s793_s22 = scalar_lea.vmem (!%p9276_p3), [#allocation2], %s6341_s13 }
  0x8a   : > { %9051 = dma.done.wait (%p9406_p13), %s790_s17, 64  }
  0x8b   : > { %9053 = vsyncadd (%p9406_p13), %s790_s17, 4294967232  ;;  %s799_s15 = sand.u32 1, %s9271_s4   ;;  %s9470_s0 = scalar_lea.vmem [#allocation5], %s6341_s13 }
  0x8c   : > { %s800_s18 = scalar_lea.sflag [#allocation6], %s799_s15 }
  0x8d   : > { %9055 = dma.done.wait (%p9406_p13), %s800_s18, 64  }
  0x8e   : > { %9057 = vsyncadd (%p9406_p13), %s800_s18, 4294967232 }
  0x8f   : > { %9059 = dma.done.wait (%p68_p1), [#allocation6], 384  }
  0x90   : > { %9061 = vsyncadd (%p68_p1), [#allocation6], 4294966912 }
  0x91   : > { %9063 = dma.done.wait (%p68_p1), [#allocation9], 80  }
  0x92   : > { %9065 = vsyncadd (%p68_p1), [#allocation9], 4294967216 }
  0x93   : > { %9067 = dma.done.wait (%p68_p1), [#allocation12], 4160  }
  0x94   : > { %9069 = vsyncadd (%p68_p1), [#allocation12], 4294963136 }
  0x95   : > { %9071 = dma.done.wait (%p68_p1), [#allocation15], 8192  }
  0x96   : > { %9073 = vsyncadd (%p68_p1), [#allocation15], 4294959104 }
  0x97   : > { %9075 = dma.done.wait (%p68_p1), [#allocation18], 64  }
  0x98   : > { %9077 = vsyncadd (%p68_p1), [#allocation18], 4294967232 }
  0x99   : > { %9079 = dma.done.wait (%p68_p1), [#allocation21], 6176  }
  0x9a   : > { %9081 = vsyncadd (%p68_p1), [#allocation21], 4294961120 }
  0x9b   : > { %9083 = dma.done.wait (%p68_p1), [#allocation24], 6176  }
  0x9c   : > { %9085 = vsyncadd (%p68_p1), [#allocation24], 4294961120 }
  0x9d   : > { %9087 = dma.done.wait (%p68_p1), [#allocation27], 20480  }
  0x9e   : > { %9089 = vsyncadd (%p68_p1), [#allocation27], 4294946816  ;;  %vm949_vm0 = vcmask 1043456   ;;  %v940_v0 = vld [vmem:[#allocation8] sm:$0xf]  ;;  %vm945_vm1 = vcmask 64512  }
  0x9f   : > { %v938_v1 = vld [vmem:[%s793_s22] sm:$0xf]  ;;  %v6472_v2 = vld [vmem:[#allocation11 + $0xe0] sm:$0xf]  ;;  %v951_v3 = vsel %vm949_vm0, %v940_v0, 0  ;;  %s10341_s24 = sld [smem:[#allocation49_spill]] }
  0xa0   : > { %v939_v4 = vpack.c.bf16 %v938_v1, %v938_v1  ;;  %v7834_v5 = vld [vmem:[#allocation11 + $0xec] sm:$0xf0]  ;;  %v7832_v6 = vld [vmem:[#allocation11 + $0xe4] sm:$0xf]  ;;  %960 = vmatpush.bf16.msra.mxu0 %v951_v3  ;;  %v6474_v8 = vld [vmem:[#allocation11 + $0xf0] sm:$0xf0] }
  0xa1   : > { %v6473_v7 = vor.u32 %v7834_v5, %v6472_v2  ;;  %v6480_v9 = vld [vmem:[#allocation11 + $0xe8] sm:$0xf]  ;;  %v7835_v10 = vld [vmem:[#allocation11 + $0xf4] sm:$0xf0]  ;;  %v6477_v11 = vor.u32 %v7832_v6, %v6474_v8  ;;  %v7833_v13 = vld [vmem:[#allocation11 + $0xec] sm:$0xf] }
  0xa2   : > { %v6481_v12 = vor.u32 %v7835_v10, %v6480_v9  ;;  %v6482_v14 = vld [vmem:[#allocation11 + $0xf8] sm:$0xf0]  ;;  %v6456_v15 = vld [vmem:[#allocation11 + $0xc0] sm:$0xf]  ;;  %v7830_v17 = vld [vmem:[#allocation11 + $0xcc] sm:$0xf0] }
  0xa3   : > { %1170 = vmatpush.bf16.msra.mxu1 %v6473_v7  ;;  %v6485_v16 = vor.u32 %v7833_v13, %v6482_v14  ;;  %v7828_v18 = vld [vmem:[#allocation11 + $0xc4] sm:$0xf]  ;;  %v6458_v19 = vld [vmem:[#allocation11 + $0xd0] sm:$0xf0]  ;;  %6357 = vmatmul.msk.bf16.vlgmr.msra.gmra.mxu0 %vm945_vm1, %v939_v4  ;;  %v6457_v20 = vor.u32 %v7830_v17, %v6456_v15  ;;  %v6464_v22 = vld [vmem:[#allocation11 + $0xc8] sm:$0xf] }
  0xa4   : > { %1183 = vmatpush.bf16.msra.mxu2 %v6477_v11  ;;  %v6461_v21 = vor.u32 %v7828_v18, %v6458_v19  ;;  %v7831_v23 = vld [vmem:[#allocation11 + $0xd4] sm:$0xf0]  ;;  %v7829_v24 = vld [vmem:[#allocation11 + $0xcc] sm:$0xf]  ;;  %1196 = vmatpush.bf16.msra.mxu3 %v6481_v12  ;;  %v6466_v26 = vld [vmem:[#allocation11 + $0xd8] sm:$0xf0] }
  0xa5   : > { %1209 = vmatpush.bf16.msrb.mxu0 %v6485_v16  ;;  %v6465_v25 = vor.u32 %v7831_v23, %v6464_v22  ;;  %v6440_v27 = vld [vmem:[#allocation11 + $0xa0] sm:$0xf]  ;;  %v7826_v28 = vld [vmem:[#allocation11 + $0xac] sm:$0xf0]  ;;  %v6469_v29 = vor.u32 %v7829_v24, %v6466_v26  ;;  %v7824_v30 = vld [vmem:[#allocation11 + $0xa4] sm:$0xf] }
  0xa6   : > { %v6442_v31 = vld [vmem:[#allocation11 + $0xb0] sm:$0xf0]  ;;  %v6448_v32 = vld [vmem:[#allocation11 + $0xa8] sm:$0xf]  ;;  %v6441_v33 = vor.u32 %v7826_v28, %v6440_v27  ;;  %v7827_v34 = vld [vmem:[#allocation11 + $0xb4] sm:$0xf0] }
  0xa7   : > { %1171 = vmatpush.bf16.msra.mxu1 %v6457_v20  ;;  %v7825_v35 = vld [vmem:[#allocation11 + $0xac] sm:$0xf]  ;;  %v6450_v36 = vld [vmem:[#allocation11 + $0xb8] sm:$0xf0]  ;;  %v6445_v37 = vor.u32 %v7824_v30, %v6442_v31  ;;  %v6424_v38 = vld [vmem:[#allocation11 + $0x80] sm:$0xf]  ;;  %v6449_v40 = vor.u32 %v7827_v34, %v6448_v32 }
  0xa8   : > { %1184 = vmatpush.bf16.msra.mxu2 %v6461_v21  ;;  %v7822_v39 = vld [vmem:[#allocation11 + $0x8c] sm:$0xf0]  ;;  %1197 = vmatpush.bf16.msra.mxu3 %v6465_v25  ;;  %v6453_v41 = vor.u32 %v7825_v35, %v6450_v36  ;;  %v7820_v42 = vld [vmem:[#allocation11 + $0x84] sm:$0xf]  ;;  %v6426_v43 = vld [vmem:[#allocation11 + $0x90] sm:$0xf0] }
  0xa9   : > { %1210 = vmatpush.bf16.msrb.mxu0 %v6469_v29  ;;  %v6432_v44 = vld [vmem:[#allocation11 + $0x88] sm:$0xf]  ;;  %v7823_v45 = vld [vmem:[#allocation11 + $0x94] sm:$0xf0]  ;;  %v7821_v46 = vld [vmem:[#allocation11 + $0x8c] sm:$0xf]  ;;  %v6425_v48 = vor.u32 %v7822_v39, %v6424_v38  ;;  %v6429_v49 = vor.u32 %v7820_v42, %v6426_v43 }
  0xaa   : > { %v6434_v47 = vld [vmem:[#allocation11 + $0x98] sm:$0xf0]  ;;  %v6408_v50 = vld [vmem:[#allocation11 + $0x60] sm:$0xf]  ;;  %v7818_v51 = vld [vmem:[#allocation11 + $0x6c] sm:$0xf0]  ;;  %v6433_v53 = vor.u32 %v7823_v45, %v6432_v44 }
  0xab   : > { %1172 = vmatpush.bf16.msra.mxu1 %v6441_v33  ;;  %v7816_v52 = vld [vmem:[#allocation11 + $0x64] sm:$0xf]  ;;  %v6437_v54 = vor.u32 %v7821_v46, %v6434_v47  ;;  %v6410_v55 = vld [vmem:[#allocation11 + $0x70] sm:$0xf0]  ;;  %v6416_v56 = vld [vmem:[#allocation11 + $0x68] sm:$0xf]  ;;  %v6409_v61 = vor.u32 %v7818_v51, %v6408_v50 }
  0xac   : > { %1185 = vmatpush.bf16.msra.mxu2 %v6445_v37  ;;  %1198 = vmatpush.bf16.msra.mxu3 %v6449_v40  ;;  %v7819_v57 = vld [vmem:[#allocation11 + $0x74] sm:$0xf0]  ;;  %v7817_v58 = vld [vmem:[#allocation11 + $0x6c] sm:$0xf]  ;;  %v6418_v59 = vld [vmem:[#allocation11 + $0x78] sm:$0xf0]  ;;  %v6413_v1 = vor.u32 %v7816_v52, %v6410_v55 }
  0xad   : > { %1211 = vmatpush.bf16.msrb.mxu0 %v6453_v41  ;;  %v6392_v60 = vld [vmem:[#allocation11 + $0x40] sm:$0xf]  ;;  %v7814_v62 = vld [vmem:[#allocation11 + $0x4c] sm:$0xf0]  ;;  %v7812_v63 = vld [vmem:[#allocation11 + $0x44] sm:$0xf]  ;;  %v6417_v6 = vor.u32 %v7819_v57, %v6416_v56  ;;  %v6421_v7 = vor.u32 %v7817_v58, %v6418_v59 }
  0xae   : > { %v6394_v0 = vld [vmem:[#allocation11 + $0x50] sm:$0xf0]  ;;  %v6400_v2 = vld [vmem:[#allocation11 + $0x48] sm:$0xf]  ;;  %v7815_v3 = vld [vmem:[#allocation11 + $0x54] sm:$0xf0]  ;;  %v6393_v8 = vor.u32 %v7814_v62, %v6392_v60 }
  0xaf   : > { %1173 = vmatpush.bf16.msra.mxu1 %v6425_v48  ;;  %v7813_v4 = vld [vmem:[#allocation11 + $0x4c] sm:$0xf]  ;;  %v6402_v5 = vld [vmem:[#allocation11 + $0x58] sm:$0xf0]  ;;  %v6397_v9 = vor.u32 %v7812_v63, %v6394_v0  ;;  %v6401_v10 = vor.u32 %v7815_v3, %v6400_v2  ;;  %v6376_v12 = vld [vmem:[#allocation11 + $0x20] sm:$0xf] }
  0xb0   : > { %1186 = vmatpush.bf16.msra.mxu2 %v6429_v49  ;;  %1199 = vmatpush.bf16.msra.mxu3 %v6433_v53  ;;  %v6405_v11 = vor.u32 %v7813_v4, %v6402_v5  ;;  %v7810_v13 = vld [vmem:[#allocation11 + $0x2c] sm:$0xf0]  ;;  %v7808_v14 = vld [vmem:[#allocation11 + $0x24] sm:$0xf]  ;;  %v6378_v16 = vld [vmem:[#allocation11 + $0x30] sm:$0xf0] }
  0xb1   : > { %1212 = vmatpush.bf16.msrb.mxu0 %v6437_v54  ;;  %v6377_v15 = vor.u32 %v7810_v13, %v6376_v12  ;;  %v6384_v17 = vld [vmem:[#allocation11 + $0x28] sm:$0xf]  ;;  %v7811_v18 = vld [vmem:[#allocation11 + $0x34] sm:$0xf0]  ;;  %v6381_v19 = vor.u32 %v7808_v14, %v6378_v16  ;;  %v7809_v21 = vld [vmem:[#allocation11 + $0x2c] sm:$0xf] }
  0xb2   : > { %v6385_v20 = vor.u32 %v7811_v18, %v6384_v17  ;;  %v6386_v22 = vld [vmem:[#allocation11 + $0x38] sm:$0xf0]  ;;  %v6360_v24 = vld [vmem:[#allocation11] sm:$0xf]  ;;  %v7806_v25 = vld [vmem:[#allocation11 + $0xc] sm:$0xf0] }
  0xb3   : > { %1174 = vmatpush.bf16.msra.mxu1 %v6409_v61  ;;  %v6389_v23 = vor.u32 %v7809_v21, %v6386_v22  ;;  %v7804_v26 = vld [vmem:[#allocation11 + $0x4] sm:$0xf]  ;;  %v6361_v27 = vor.u32 %v7806_v25, %v6360_v24  ;;  %v6362_v28 = vld [vmem:[#allocation11 + $0x10] sm:$0xf0]  ;;  %v6368_v29 = vld [vmem:[#allocation11 + $0x8] sm:$0xf] }
  0xb4   : > { %1187 = vmatpush.bf16.msra.mxu2 %v6413_v1  ;;  %1200 = vmatpush.bf16.msra.mxu3 %v6417_v6  ;;  %v7807_v30 = vld [vmem:[#allocation11 + $0x14] sm:$0xf0]  ;;  %v6365_v31 = vor.u32 %v7804_v26, %v6362_v28  ;;  %v7805_v33 = vld [vmem:[#allocation11 + $0xc] sm:$0xf]  ;;  %v6370_v34 = vld [vmem:[#allocation11 + $0x18] sm:$0xf0] }
  0xb5   : > { %1213 = vmatpush.bf16.msrb.mxu0 %v6421_v7  ;;  %v6369_v32 = vor.u32 %v7807_v30, %v6368_v29  ;;  %v6373_v35 = vor.u32 %v7805_v33, %v6370_v34  ;;  %v6572_v36 = vld [vmem:[#allocation14 + $0xa8] sm:$0xf]  ;;  %v7858_v37 = vld [vmem:[#allocation14 + $0xb0] sm:$0xf0]  ;;  %v7857_v38 = vld [vmem:[#allocation14 + $0xac] sm:$0xf] }
  0xb6   : > { %v6573_v39 = vor.u32 %v7858_v37, %v6572_v36  ;;  %v6574_v40 = vld [vmem:[#allocation14 + $0xb4] sm:$0xf0]  ;;  %v6580_v41 = vld [vmem:[#allocation14 + $0xb0] sm:$0xf]  ;;  %v7859_v42 = vld [vmem:[#allocation14 + $0xb8] sm:$0xf0] }
  0xb7   : > { %1175 = vmatpush.bf16.msra.mxu1 %v6393_v8  ;;  %v6577_v43 = vor.u32 %v7857_v38, %v6574_v40  ;;  %v6581_v44 = vor.u32 %v7859_v42, %v6580_v41  ;;  %v6560_v45 = vld [vmem:[#allocation14 + $0x90] sm:$0xf]  ;;  %v7855_v46 = vld [vmem:[#allocation14 + $0x98] sm:$0xf0]  ;;  %v7854_v47 = vld [vmem:[#allocation14 + $0x94] sm:$0xf] }
  0xb8   : > { %1188 = vmatpush.bf16.msra.mxu2 %v6397_v9  ;;  %1201 = vmatpush.bf16.msra.mxu3 %v6401_v10  ;;  %v6561_v48 = vor.u32 %v7855_v46, %v6560_v45  ;;  %v6562_v49 = vld [vmem:[#allocation14 + $0x9c] sm:$0xf0]  ;;  %v6568_v50 = vld [vmem:[#allocation14 + $0x98] sm:$0xf]  ;;  %v7856_v51 = vld [vmem:[#allocation14 + $0xa0] sm:$0xf0] }
  0xb9   : > { %1214 = vmatpush.bf16.msrb.mxu0 %v6405_v11  ;;  %v6565_v52 = vor.u32 %v7854_v47, %v6562_v49  ;;  %v6569_v53 = vor.u32 %v7856_v51, %v6568_v50  ;;  %v6548_v54 = vld [vmem:[#allocation14 + $0x78] sm:$0xf]  ;;  %v7852_v55 = vld [vmem:[#allocation14 + $0x80] sm:$0xf0]  ;;  %v7851_v56 = vld [vmem:[#allocation14 + $0x7c] sm:$0xf] }
  0xba   : > { %v6550_v57 = vld [vmem:[#allocation14 + $0x84] sm:$0xf0]  ;;  %v6556_v58 = vld [vmem:[#allocation14 + $0x80] sm:$0xf]  ;;  %v7853_v59 = vld [vmem:[#allocation14 + $0x88] sm:$0xf0]  ;;  %v6549_v60 = vor.u32 %v7852_v55, %v6548_v54 }
  0xbb   : > { %1176 = vmatpush.bf16.msra.mxu1 %v6377_v15  ;;  %v6553_v61 = vor.u32 %v7851_v56, %v6550_v57  ;;  %v6557_v62 = vor.u32 %v7853_v59, %v6556_v58  ;;  %v6536_v63 = vld [vmem:[#allocation14 + $0x60] sm:$0xf]  ;;  %v7849_v0 = vld [vmem:[#allocation14 + $0x68] sm:$0xf0]  ;;  %v7848_v1 = vld [vmem:[#allocation14 + $0x64] sm:$0xf] }
  0xbc   : > { %1189 = vmatpush.bf16.msra.mxu2 %v6381_v19  ;;  %1202 = vmatpush.bf16.msra.mxu3 %v6385_v20  ;;  %v6538_v2 = vld [vmem:[#allocation14 + $0x6c] sm:$0xf0]  ;;  %v6544_v3 = vld [vmem:[#allocation14 + $0x68] sm:$0xf]  ;;  %v7850_v4 = vld [vmem:[#allocation14 + $0x70] sm:$0xf0]  ;;  %v6537_v5 = vor.u32 %v7849_v0, %v6536_v63 }
  0xbd   : > { %1215 = vmatpush.bf16.msrb.mxu0 %v6389_v23  ;;  %v6541_v6 = vor.u32 %v7848_v1, %v6538_v2  ;;  %v6545_v7 = vor.u32 %v7850_v4, %v6544_v3  ;;  %v8391_v8 = vld [vmem:[#allocation10] ss:$0 sm:$0xff]  ;;  %v6524_v14 = vld [vmem:[#allocation14 + $0x48] sm:$0xf]  ;;  %v7846_v15 = vld [vmem:[#allocation14 + $0x50] sm:$0xf0] }
  0xbe   : > { %v7845_v16 = vld [vmem:[#allocation14 + $0x4c] sm:$0xf]  ;;  %v6525_v17 = vor.u32 %v7846_v15, %v6524_v14  ;;  %v6526_v18 = vld [vmem:[#allocation14 + $0x54] sm:$0xf0]  ;;  %v6532_v19 = vld [vmem:[#allocation14 + $0x50] sm:$0xf] }
  0xbf   : > { %1177 = vmatpush.bf16.msra.mxu1 %v6361_v27  ;;  %v6529_v20 = vor.u32 %v7845_v16, %v6526_v18  ;;  %v7847_v21 = vld [vmem:[#allocation14 + $0x58] sm:$0xf0]  ;;  %v6512_v23 = vld [vmem:[#allocation14 + $0x30] sm:$0xf]  ;;  %v7842_v26 = vld [vmem:[#allocation14 + $0x34] sm:$0xf] }
  0xc0   : > { %1190 = vmatpush.bf16.msra.mxu2 %v6365_v31  ;;  %1203 = vmatpush.bf16.msra.mxu3 %v6369_v32  ;;  %v6533_v22 = vor.u32 %v7847_v21, %v6532_v19  ;;  %v7843_v24 = vld [vmem:[#allocation14 + $0x38] sm:$0xf0]  ;;  %v6514_v27 = vld [vmem:[#allocation14 + $0x3c] sm:$0xf0]  ;;  %v6520_v28 = vld [vmem:[#allocation14 + $0x38] sm:$0xf] }
  0xc1   : > { %1216 = vmatpush.bf16.msrb.mxu0 %v6373_v35  ;;  %v6513_v25 = vor.u32 %v7843_v24, %v6512_v23  ;;  %v6517_v29 = vor.u32 %v7842_v26, %v6514_v27  ;;  %v7844_v30 = vld [vmem:[#allocation14 + $0x40] sm:$0xf0]  ;;  %v6500_v32 = vld [vmem:[#allocation14 + $0x18] sm:$0xf]  ;;  %v7839_v34 = vld [vmem:[#allocation14 + $0x1c] sm:$0xf] }
  0xc2   : > { %v6521_v31 = vor.u32 %v7844_v30, %v6520_v28  ;;  %v7840_v33 = vld [vmem:[#allocation14 + $0x20] sm:$0xf0]  ;;  %v6502_v36 = vld [vmem:[#allocation14 + $0x24] sm:$0xf0]  ;;  %v6508_v37 = vld [vmem:[#allocation14 + $0x20] sm:$0xf] }
  0xc3   : > { %1407 = vmatpush.bf16.msrb.mxu1 %v6573_v39  ;;  %v6501_v35 = vor.u32 %v7840_v33, %v6500_v32  ;;  %v7841_v38 = vld [vmem:[#allocation14 + $0x28] sm:$0xf0]  ;;  %v6505_v39 = vor.u32 %v7839_v34, %v6502_v36  ;;  %v6488_v41 = vld [vmem:[#allocation14] sm:$0xf]  ;;  %v6490_v45 = vld [vmem:[#allocation14 + $0xc] sm:$0xf0] }
  0xc4   : > { %1425 = vmatpush.bf16.msrb.mxu2 %v6577_v43  ;;  %1443 = vmatpush.bf16.msrb.mxu3 %v6581_v44  ;;  %v6509_v40 = vor.u32 %v7841_v38, %v6508_v37  ;;  %v7837_v42 = vld [vmem:[#allocation14 + $0x8] sm:$0xf0]  ;;  %v7836_v43 = vld [vmem:[#allocation14 + $0x4] sm:$0xf]  ;;  %v6496_v46 = vld [vmem:[#allocation14 + $0x8] sm:$0xf] }
  0xc5   : > { %v6489_v44 = vor.u32 %v7837_v42, %v6488_v41  ;;  %v7838_v47 = vld [vmem:[#allocation14 + $0x10] sm:$0xf0]  ;;  %v1000_v50 = vld [vmem:[#allocation13] sm:$0xf]  ;;  %v1232_v4 = vld [vmem:[#allocation7 + $0x8] sm:$0xff]  ;;  %s9133_s23 = smov 96  }
  0xc6   : > { %v6497_v49 = vor.u32 %v7838_v47, %v6496_v46  ;;  %v1002_v51 = vperm.slane %v1000_v50, 0  ;;  %v1004_v55 = vperm.slane %v1000_v50, 2  ;;  %v1003_v57 = vperm.slane %v1000_v50, 1  ;;  %v1222_v59 = vld [vmem:[%s9470_s0] sm:$0xf]  ;;  %v1231_v3 = vld [vmem:[#allocation7] sm:$0xff] }
  0xc7   : > { %1408 = vmatpush.bf16.msrb.mxu1 %v6561_v48  ;;  %v6493_v48 = vor.u32 %v7836_v43, %v6490_v45  ;;  %v1271_v16 = vld [vmem:[%s10341_s24] sm:$0x7]  ;;  %vm1489_vm2 = vcmask 261120   ;;  %s9134_s28 = smov 64   ;;  %s9135_s5 = smov 32   ;;  %vm1611_vm3 = vcmask 1041408  }
  0xc8   : > { %1426 = vmatpush.bf16.msrb.mxu2 %v6565_v52  ;;  %1444 = vmatpush.bf16.msrb.mxu3 %v6569_v53  ;;  %v1274_v36 = vperm.slane %v1271_v16, 1  ;;  %v1275_v38 = vperm.slane %v1271_v16, 2  ;;  %vm1520_vm4 = vcmask 162816   ;;  %vm1527_vm5 = vcmask 158720   ;;  %s10348_s29 = sld [smem:[#allocation55_spill]]  ;;  %s936_s18 = scalar_lea.vmem [#allocation28], %s9461_s12 }
  0xc9   : > { %s10349_s11 = sld [smem:[#allocation57_spill]]  ;;  %s6095_s0 = sshll.u32 %s936_s18, 4  ;;  %s6096_s0 = int_to_ptr.vmem [resolvable:$true] %s6095_s0 }
  0xca   : > { %s10350_s22 = sld [smem:[#allocation58_spill]]  ;;  %s6085_s9 = scalar_lea.sflag [#allocation4], %s9461_s12 }
  0xcb   : > { %1409 = vmatpush.bf16.msrb.mxu1 %v6549_v60  ;;  %s10355_s7 = sld [smem:[#allocation60_spill]] }
  0xcc   : > { %1427 = vmatpush.bf16.msrb.mxu2 %v6553_v61  ;;  %1445 = vmatpush.bf16.msrb.mxu3 %v6557_v62  ;;  %s10356_s17 = sld [smem:[#allocation61_spill]] }
  0xcf   : > { %1410 = vmatpush.bf16.msrb.mxu1 %v6537_v5 }
  0xd0   : > { %1428 = vmatpush.bf16.msrb.mxu2 %v6541_v6  ;;  %1446 = vmatpush.bf16.msrb.mxu3 %v6545_v7 }
  0xd2   : > { %s6093_s15 = scalar_lea.hbm %s10356_s17, %s9271_s4  ;;  %s9026_s30 = scalar_lea.hbm %s10356_s17, 2 }
  0xd3   : > { %1411 = vmatpush.bf16.msrb.mxu1 %v6525_v17  ;;  %v1273_v17 = vperm.slane %v1271_v16, 0  ;;  %s6097_s16 = sshll.u32 %s6093_s15, 4  ;;  %s6098_s16 = int_to_ptr.hbm [resolvable:$true] %s6097_s16 }
  0xd4   : > { %1429 = vmatpush.bf16.msrb.mxu2 %v6529_v20  ;;  %1447 = vmatpush.bf16.msrb.mxu3 %v6533_v22 }
  0xd7   : > { %1412 = vmatpush.bf16.msrb.mxu1 %v6513_v25 }
  0xd8   : > { %1430 = vmatpush.bf16.msrb.mxu2 %v6517_v29  ;;  %1448 = vmatpush.bf16.msrb.mxu3 %v6521_v31 }
  0xdb   : > { %1413 = vmatpush.bf16.msrb.mxu1 %v6501_v35 }
  0xdc   : > { %1431 = vmatpush.bf16.msrb.mxu2 %v6505_v39  ;;  %1449 = vmatpush.bf16.msrb.mxu3 %v6509_v40 }
  0xdf   : > { %1414 = vmatpush.bf16.msrb.mxu1 %v6489_v44 }
  0xe0   : > { %1432 = vmatpush.bf16.msrb.mxu2 %v6493_v48  ;;  %1450 = vmatpush.bf16.msrb.mxu3 %v6497_v49 }
 0x120   : > { %v962_v9 = vpop.f32.mrf.mxu0 }
 0x121   : > { %v963_v10 = vadd.f32 %v8391_v8, %v962_v9 }
 0x123   : > { %v966_v11 = vmax.f32 %v963_v10, 0.0 }
 0x125   : > { %v967_v12 = vpack.c.bf16 %v966_v11, %v966_v11  ;;  %v1005_v11 = vperm.slane %v1000_v50, 3 }
 0x127   : > { %1178 = vmatmul.bf16.vlgmr.msra.gmra.mxu1 %v967_v12  ;;  %1191 = vmatmul.bf16.vlgmr.msra.gmra.mxu2 %v967_v12 }
 0x128   : > { %1204 = vmatmul.bf16.vlgmr.msra.gmra.mxu3 %v967_v12  ;;  %1217 = vmatmul.bf16.vlgmr.msrb.gmra.mxu0 %v967_v12  ;;  %v964_v13 = vpop.f32.mrf.mxu0 }
 0x129   : > { %v1233_v13 = vld [vmem:[#allocation7 + $0x10] sm:$0xf] }
 0x1a4   : > { %v1179_v52 = vpop.f32.mrf.mxu1 }
 0x1a5   : > { %v1218_v53 = vpop.f32.mrf.mxu0  ;;  %v1180_v54 = vadd.f32 %v1179_v52, %v1002_v51 }
 0x1a6   : > { %v1219_v12 = vadd.f32 %v1218_v53, %v1005_v11 }
 0x1a7   : > { %v1224_v56 = vrot.slane %v1180_v54, 4 }
 0x1a8   : > { %v9519_v14 = vadd.f32 %v1233_v13, %v1219_v12 }
 0x1a9   : > { %v1229_v0 = vsel %vm949_vm0, %v1222_v59, %v1224_v56 }
 0x1aa   : > { %v1192_v58 = vpop.f32.mrf.mxu2  ;;  %v9513_v6 = vadd.f32 %v1231_v3, %v1229_v0  ;;  %v1238_v15 = vpack.c.bf16 %v9519_v14, %v9519_v14 }
 0x1ab   : > { %v1205_v60 = vpop.f32.mrf.mxu3  ;;  %v1193_v1 = vadd.f32 %v1192_v58, %v1003_v57 }
 0x1ac   : > { %v1206_v61 = vadd.f32 %v1205_v60, %v1004_v55  ;;  %v1181_v62 = vpop.f32.mrf.mxu1 }
 0x1ad   : > { %v1220_v63 = vpop.f32.mrf.mxu0 }
 0x1ae   : > { %v1227_v2 = vrot.slane %v1206_v61, 4 }
 0x1b0   : > { %v1230_v5 = vsel %vm949_vm0, %v1193_v1, %v1227_v2 }
 0x1b1   : > { %v9515_v7 = vadd.f32 %v1232_v4, %v1230_v5 }
 0x1b2   : > { %v1194_v8 = vpop.f32.mrf.mxu2 }
 0x1b3   : > { %v1207_v9 = vpop.f32.mrf.mxu3  ;;  %v1237_v10 = vpack.c.bf16 %v9515_v7, %v9513_v6 }
 0x1b5   : > { %1415 = vmatmul.bf16.vlgmr.msrb.gmra.mxu1 %v1237_v10  ;;  %1433 = vmatmul.bf16.vlgmr.msrb.gmra.mxu2 %v1237_v10 }
 0x1b6   : > { %1451 = vmatmul.bf16.vlgmr.msrb.gmra.mxu3 %v1237_v10 }
 0x1c5   : > { %1420 = vmatmul.bf16.gmra.mxu1 %v1238_v15  ;;  %1438 = vmatmul.bf16.gmra.mxu2 %v1238_v15 }
 0x1c6   : > { %1456 = vmatmul.bf16.gmra.mxu3 %v1238_v15 }
 0x232   : > { %v1416_v18 = vpop.f32.mrf.mxu1 }
 0x233   : > { %v1417_v19 = vadd.f32 %v1416_v18, %v1273_v17 }
 0x235   : > { %v1461_v21 = vmul.f32 0.17677669, %v1417_v19 }
 0x237   : > { %v1464_v25 = vpack.c.bf16 %v1461_v21, %v1461_v21 }
 0x238   : > { %v1434_v20 = vpop.f32.mrf.mxu2 }
 0x239   : > { %v1452_v22 = vpop.f32.mrf.mxu3  ;;  %v1476_v29 = vunpack.c.l.b16 %v1464_v25  ;;  %v1435_v46 = vadd.f32 %v1434_v20, %v1274_v36 }
 0x23a   : > { %v1418_v23 = vpop.f32.mrf.mxu1  ;;  %v1453_v61 = vadd.f32 %v1452_v22, %v1275_v38 }
 0x23b   : > { %v1419_v24 = vadd.f32 %v1418_v23, %v1273_v17  ;;  %v1467_v52 = vpack.c.bf16 %v1435_v46, %v1435_v46 }
 0x23c   : > { %v1470_v1 = vpack.c.bf16 %v1453_v61, %v1453_v61 }
 0x23d   : > { %v1462_v26 = vmul.f32 0.17677669, %v1419_v24  ;;  %v1484_v60 = vunpack.c.l.b16 %v1467_v52 }
 0x23e   : > { %v1599_v5 = vunpack.c.l.b16 %v1470_v1 }
 0x23f   : > { %v1465_v27 = vpack.c.bf16 %v1462_v26, %v1462_v26 }
 0x240   : > { %v1436_v28 = vpop.f32.mrf.mxu2 }
 0x241   : > { %v1477_v30 = vunpack.c.l.b16 %v1465_v27  ;;  %v1454_v31 = vpop.f32.mrf.mxu3  ;;  %v1437_v40 = vadd.f32 %v1436_v28, %v1274_v36 }
 0x242   : > { %v1421_v32 = vpop.f32.mrf.mxu1  ;;  %v1455_v56 = vadd.f32 %v1454_v31, %v1275_v38 }
 0x243   : > { %v1479_v33 = vpack.c.b16 %v1477_v30, %v1476_v29  ;;  %v1422_v34 = vadd.f32 %v1421_v32, %v1273_v17  ;;  %v1468_v49 = vpack.c.bf16 %v1437_v40, %v1437_v40 }
 0x244   : > { %v1471_v63 = vpack.c.bf16 %v1455_v56, %v1455_v56 }
 0x245   : > { %v1463_v35 = vmul.f32 0.17677669, %v1422_v34  ;;  %1633 = vrot.lane.b32.xlu1 %v1479_v33, %s9133_s23  ;;  %v1485_v55 = vunpack.c.l.b16 %v1468_v49 }
 0x246   : > { %v1600_v2 = vunpack.c.l.b16 %v1471_v63 }
 0x247   : > { %v1466_v37 = vpack.c.bf16 %v1463_v35, %v1463_v35  ;;  %v1487_v62 = vpack.c.b16 %v1485_v55, %v1484_v60 }
 0x248   : > { %v1439_v39 = vpop.f32.mrf.mxu2  ;;  %v9539_v8 = vpack.c.b16 %v1600_v2, %v1599_v5 }
 0x249   : > { %v1478_v41 = vunpack.c.l.b16 %v1466_v37  ;;  %v1440_v42 = vadd.f32 %v1439_v39, %v1274_v36  ;;  %v1457_v43 = vpop.f32.mrf.mxu3  ;;  %v1497_v3 = vsel %vm1489_vm2, %v1487_v62, 0 }
 0x24a   : > { %v1458_v44 = vadd.f32 %v1457_v43, %v1275_v38  ;;  %v1423_v45 = vpop.f32.mrf.mxu1 }
 0x24b   : > { %v1480_v47 = vpack.c.b16 %v1478_v41, %v1478_v41  ;;  %v1469_v48 = vpack.c.bf16 %v1440_v42, %v1440_v42 }
 0x24c   : > { %v1472_v51 = vpack.c.bf16 %v1458_v44, %v1458_v44 }
 0x24d   : > { %v1486_v50 = vunpack.c.l.b16 %v1469_v48  ;;  %1635 = vrot.lane.b32.xlu2 %v1480_v47, %s9133_s23 }
 0x24e   : > { %v1601_v59 = vunpack.c.l.b16 %v1472_v51 }
 0x24f   : > { %v1488_v53 = vpack.c.b16 %v1486_v50, %v1486_v50 }
 0x250   : > { %v1441_v54 = vpop.f32.mrf.mxu2  ;;  %v9532_v0 = vpack.c.b16 %v1601_v59, %v1601_v59 }
 0x251   : > { %v1459_v57 = vpop.f32.mrf.mxu3  ;;  %1639 = vrot.lane.b32.xlu0 %v1488_v53, %s9133_s23  ;;  %1783 = vrot.lane.b32.xlu1 %v1488_v53, %s9134_s28  ;;  %v1500_v58 = vsel %vm1489_vm2, %v1488_v53, 0 }
 0x252   : > { %1508 = vmatpush.bf16.xpose.msra.mxu0 %v1500_v58  ;;  %v1613_v4 = vsel %vm1611_vm3, %v9532_v0, 0 }
 0x255   : > { %1927 = vrot.lane.b32.xlu2 %v1488_v53, %s9135_s5 }
 0x259   : > { %1637 = vrot.lane.b32.xlu0 %v1487_v62, %s9133_s23  ;;  %1925 = vrot.lane.b32.xlu1 %v1487_v62, %s9135_s5 }
 0x25a   : > { %1509 = vmatpush.bf16.xpose.msra.mxu0 %v1497_v3 }
 0x25d   : > { %1777 = vrot.lane.b32.xlu2 %v1479_v33, %s9134_s28 }
 0x261   : > { %1781 = vrot.lane.b32.xlu0 %v1487_v62, %s9134_s28  ;;  %1779 = vrot.lane.b32.xlu1 %v1480_v47, %s9134_s28 }
 0x262   : > { %1621 = vmatpush.bf16.msrb.mxu0 %v1613_v4 }
 0x263   : > { %6582 = vmatmul.msk.bf16.vlgmr.msra.gmra.mxu0 %vm1489_vm2, %v1479_v33 }
 0x265   : > { %1923 = vrot.lane.b32.xlu2 %v1480_v47, %s9135_s5 }
 0x266   : > { %1622 = vmatpush.bf16.msrb.mxu0 %v9539_v8 }
 0x269   : > { %1921 = vrot.lane.b32.xlu0 %v1479_v33, %s9135_s5 }
 0x273   : > { %6583 = vmatmul.msk.bf16.gmra.mxu0 %vm1489_vm2, %v1480_v47 }
 0x2a7   : > { %v1636_v10 = vpop.permute.xlu2 %1635 }
 0x2af   : > { %v1928_v16 = vpop.permute.xlu2 %1927 }
 0x2b0   : > { %v1939_v19 = vsel %vm1489_vm2, %v1928_v16, 0 }
 0x2b7   : > { %v1634_v9 = vpop.permute.xlu1 %1633  ;;  %v1778_v24 = vpop.permute.xlu2 %1777 }
 0x2bf   : > { %v1924_v34 = vpop.permute.xlu2 %1923 }
 0x2c3   : > { %v1640_v11 = vpop.permute.xlu0 %1639  ;;  %v1784_v12 = vpop.permute.xlu1 %1783 }
 0x2c4   : > { %v1651_v13 = vsel %vm1489_vm2, %v1640_v11, 0  ;;  %v1795_v15 = vsel %vm1489_vm2, %v1784_v12, 0 }
 0x2c5   : > { %1659 = vmatpush.bf16.xpose.msra.mxu1 %v1651_v13  ;;  %1803 = vmatpush.bf16.xpose.msra.mxu3 %v1795_v15 }
 0x2cb   : > { %v1638_v17 = vpop.permute.xlu0 %1637  ;;  %v1926_v20 = vpop.permute.xlu1 %1925 }
 0x2cc   : > { %v1648_v18 = vsel %vm1489_vm2, %v1638_v17, 0  ;;  %v1936_v23 = vsel %vm1489_vm2, %v1926_v20, 0 }
 0x2cd   : > { %1660 = vmatpush.bf16.xpose.msra.mxu1 %v1648_v18 }
 0x2d3   : > { %v1782_v21 = vpop.permute.xlu0 %1781  ;;  %v1780_v29 = vpop.permute.xlu1 %1779 }
 0x2d4   : > { %v1792_v22 = vsel %vm1489_vm2, %v1782_v21, 0  ;;  %6586 = vmatmul.msk.bf16.vlgmr.msra.gmra.mxu1 %vm1489_vm2, %v1634_v9 }
 0x2d5   : > { %1947 = vmatpush.bf16.xpose.msrb.mxu1 %v1939_v19  ;;  %1804 = vmatpush.bf16.xpose.msra.mxu3 %v1792_v22 }
 0x2db   : > { %v1922_v32 = vpop.permute.xlu0 %1921 }
 0x2dc   : > { %6590 = vmatmul.msk.bf16.vlgmr.msra.gmra.mxu3 %vm1489_vm2, %v1778_v24 }
 0x2dd   : > { %1948 = vmatpush.bf16.xpose.msrb.mxu1 %v1936_v23 }
 0x2e0   : > { %v1511_v25 = vpop.f32.mrf.mxu0 }
 0x2e1   : > { %v1521_v26 = vsel %vm1520_vm4, %v1511_v25, -inf }
 0x2e2   : > { %1522 = vmax.xlane.f32.xlu2 %v1521_v26 }
 0x2e4   : > { %6587 = vmatmul.msk.bf16.gmra.mxu1 %vm1489_vm2, %v1636_v10 }
 0x2e8   : > { %v1513_v27 = vpop.f32.mrf.mxu0 }
 0x2e9   : > { %v1524_v28 = vsel %vm1520_vm4, %v1513_v27, -inf }
 0x2ea   : > { %1525 = vmax.xlane.f32.xlu2 %v1524_v28 }
 0x2ec   : > { %6591 = vmatmul.msk.bf16.gmra.mxu3 %vm1489_vm2, %v1780_v29 }
 0x2f0   : > { %v1516_v30 = vpop.f32.mrf.mxu0 }
 0x2f1   : > { %v1528_v31 = vsel %vm1527_vm5, %v1516_v30, -inf }
 0x2f2   : > { %1529 = vmax.xlane.f32.xlu1 %v1528_v31 }
 0x2f4   : > { %6594 = vmatmul.msk.bf16.vlgmr.msrb.gmra.mxu1 %vm1489_vm2, %v1922_v32 }
 0x2f8   : > { %v1518_v33 = vpop.f32.mrf.mxu0 }
 0x304   : > { %6595 = vmatmul.msk.bf16.gmra.mxu1 %vm1489_vm2, %v1924_v34 }
 0x351   : > { %v1662_v35 = vpop.f32.mrf.mxu1 }
 0x352   : > { %v1671_v36 = vsel %vm1520_vm4, %v1662_v35, -inf }
 0x353   : > { %1672 = vmax.xlane.f32.xlu0 %v1671_v36 }
 0x355   : > { %v1523_v37 = vpop.xlane.xlu2 %1522 }
 0x356   : > { %v1531_v38 = vsub.f32 %v1511_v25, %v1523_v37 }
 0x358   : > { %v1534_v39 = vmul.f32 1.442695, %v1531_v38 }
 0x359   : > { %v9565_v40 = vpop.f32.mrf.mxu1 }
 0x35a   : > { %8404 = vpow2.f32 %v1534_v39  ;;  %v1674_v54 = vsel %vm1520_vm4, %v9565_v40, -inf }
 0x35d   : > { %v1526_v41 = vpop.xlane.xlu2 %1525 }
 0x35e   : > { %v1532_v42 = vsub.f32 %v1513_v27, %v1526_v41 }
 0x35f   : > { %v1806_v45 = vpop.f32.mrf.mxu3 }
 0x360   : > { %v9567_v43 = vpop.eup %8404  ;;  %v1536_v44 = vmul.f32 1.442695, %v1532_v42  ;;  %v1815_v47 = vsel %vm1520_vm4, %v1806_v45, -inf }
 0x361   : > { %v1540_v46 = vsel %vm1520_vm4, %v9567_v43, 0.0  ;;  %v9572_v48 = vpop.f32.mrf.mxu1  ;;  %1816 = vmax.xlane.f32.xlu1 %v1815_v47 }
 0x362   : > { %8406 = vpow2.f32 %v1536_v44  ;;  %1541 = vadd.xlane.f32.xlu2 %v1540_v46  ;;  %v1677_v49 = vsel %vm1527_vm5, %v9572_v48, -inf }
 0x363   : > { %1678 = vmax.xlane.f32.xlu0 %v1677_v49 }
 0x365   : > { %v1530_v50 = vpop.xlane.xlu1 %1529 }
 0x366   : > { %v1533_v55 = vsub.f32 %v1516_v30, %v1530_v50 }
 0x367   : > { %v9578_v52 = vpop.f32.mrf.mxu3 }
 0x368   : > { %v9576_v51 = vpop.eup %8406  ;;  %v1818_v53 = vsel %vm1520_vm4, %v9578_v52, -inf  ;;  %v1538_v58 = vmul.f32 1.442695, %v1533_v55 }
 0x369   : > { %v1669_v56 = vpop.f32.mrf.mxu1  ;;  %1675 = vmax.xlane.f32.xlu1 %v1674_v54  ;;  %v1543_v57 = vsel %vm1520_vm4, %v9576_v51, 0.0 }
 0x36a   : > { %1819 = vmax.xlane.f32.xlu2 %v1818_v53  ;;  %8408 = vpow2.f32 %v1538_v58 }
 0x36b   : > { %1544 = vadd.xlane.f32.xlu0 %v1543_v57 }
 0x36f   : > { %v9586_v59 = vpop.f32.mrf.mxu3 }
 0x370   : > { %v9592_v62 = vpop.eup %8408 }
 0x371   : > { %v9588_v60 = vpop.f32.mrf.mxu1  ;;  %v1546_v3 = vsel %vm1527_vm5, %v9592_v62, 0.0 }
 0x372   : > { %v1959_v61 = vsel %vm1520_vm4, %v9588_v60, -inf }
 0x373   : > { %1960 = vmax.xlane.f32.xlu2 %v1959_v61 }
 0x377   : > { %v1813_v63 = vpop.f32.mrf.mxu3 }
 0x379   : > { %v9594_v1 = vpop.f32.mrf.mxu1 }
 0x37a   : > { %v1962_v2 = vsel %vm1520_vm4, %v9594_v1, -inf }
 0x37b   : > { %1963 = vmax.xlane.f32.xlu0 %v1962_v2  ;;  %1547 = vadd.xlane.f32.xlu2 %v1546_v3 }
 0x381   : > { %v9600_v4 = vpop.f32.mrf.mxu1 }
 0x382   : > { %v1965_v5 = vsel %vm1527_vm5, %v9600_v4, -inf }
 0x383   : > { %1966 = vmax.xlane.f32.xlu2 %v1965_v5 }
 0x389   : > { %v1957_v9 = vpop.f32.mrf.mxu1 }
 0x3c6   : > { %v1673_v10 = vpop.xlane.xlu0 %1672 }
 0x3c7   : > { %v1680_v11 = vsub.f32 %v1662_v35, %v1673_v10 }
 0x3c9   : > { %v1683_v12 = vmul.f32 1.442695, %v1680_v11 }
 0x3cb   : > { %8410 = vpow2.f32 %v1683_v12 }
 0x3d1   : > { %v9604_v13 = vpop.eup %8410 }
 0x3d2   : > { %v1689_v15 = vsel %vm1520_vm4, %v9604_v13, 0.0 }
 0x3d3   : > { %1690 = vadd.xlane.f32.xlu0 %v1689_v15 }
 0x3d4   : > { %v1817_v17 = vpop.xlane.xlu1 %1816 }
 0x3d5   : > { %v1542_v16 = vpop.xlane.xlu2 %1541  ;;  %v1824_v18 = vsub.f32 %v1806_v45, %v1817_v17 }
 0x3d6   : > { %8412 = vrcp.f32 %v1542_v16  ;;  %v9608_v19 = vpop.xlane.xlu0 %1678  ;;  %v1560_v36 = vand.u32 2147483648, %v1542_v16  ;;  %vm1554_vm7 = vweird.f32 %v1542_v16  ;;  %v1558_v38 = vand.u32 2147483647, %v1542_v16 }
 0x3d7   : > { %v1827_v20 = vmul.f32 1.442695, %v1824_v18 }
 0x3d8   : > { %v1561_v46 = vor.u32 1.1754944e-38, %v1560_v36  ;;  %vm1559_vm10 = vcmp.eq.f32.partialorder %v1558_v38, 8.507059e+37 }
 0x3d9   : > { %8414 = vpow2.f32 %v1827_v20 }
 0x3dc   : > { %v8413_v21 = vpop.eup %8412  ;;  %v1676_v23 = vpop.xlane.xlu1 %1675 }
 0x3dd   : > { %v1550_v22 = vmul.f32 %v8413_v21, %v1542_v16  ;;  %v1681_v24 = vsub.f32 %v9565_v40, %v1676_v23  ;;  %v9611_v26 = vpop.xlane.xlu2 %1819  ;;  %vm1555_vm6 = vweird.f32 %v8413_v21 }
 0x3de   : > { %v1545_v27 = vpop.xlane.xlu0 %1544  ;;  %vm1556_vm8 = vmor %vm1554_vm7, %vm1555_vm6 }
 0x3df   : > { %v1551_v25 = vsub.f32 1.0, %v1550_v22  ;;  %v1685_v28 = vmul.f32 1.442695, %v1681_v24  ;;  %8416 = vrcp.f32 %v1545_v27  ;;  %v9613_v29 = vpop.eup %8414  ;;  %v1575_v40 = vand.u32 2147483648, %v1545_v27 }
 0x3e0   : > { %v1833_v30 = vsel %vm1520_vm4, %v9613_v29, 0.0  ;;  %v1573_v45 = vand.u32 2147483647, %v1545_v27  ;;  %vm1569_vm11 = vweird.f32 %v1545_v27 }
 0x3e1   : > { %v1552_v31 = vmul.f32 %v8413_v21, %v1551_v25  ;;  %8418 = vpow2.f32 %v1685_v28  ;;  %1834 = vadd.xlane.f32.xlu2 %v1833_v30  ;;  %v1576_v50 = vor.u32 1.1754944e-38, %v1575_v40 }
 0x3e2   : > { %vm1574_vm13 = vcmp.eq.f32.partialorder %v1573_v45, 8.507059e+37 }
 0x3e3   : > { %v1553_v33 = vadd.f32 %v8413_v21, %v1552_v31 }
 0x3e5   : > { %v8417_v32 = vpop.eup %8416  ;;  %v1557_v42 = vsel %vm1556_vm8, %v8413_v21, %v1553_v33  ;;  %v1825_v21 = vsub.f32 %v9578_v52, %v9611_v26 }
 0x3e6   : > { %v1565_v34 = vmul.f32 %v8417_v32, %v1545_v27  ;;  %v1961_v35 = vpop.xlane.xlu2 %1960  ;;  %vm1570_vm9 = vweird.f32 %v8417_v32  ;;  %v1562_v49 = vsel %vm1559_vm10, %v1561_v46, %v1557_v42 }
 0x3e7   : > { %1745 = vrot.lane.b32.xlu0 %v9539_v8, %s9133_s23  ;;  %v9619_v37 = vpop.eup %8418  ;;  %vm1571_vm12 = vmor %vm1569_vm11, %vm1570_vm9  ;;  %v1563_v56 = vmul.f32 %v9567_v43, %v1562_v49 }
 0x3e8   : > { %v1566_v39 = vsub.f32 1.0, %v1565_v34  ;;  %v1692_v41 = vsel %vm1520_vm4, %v9619_v37, 0.0 }
 0x3e9   : > { %1693 = vadd.xlane.f32.xlu1 %v1692_v41 }
 0x3ea   : > { %v1567_v44 = vmul.f32 %v8417_v32, %v1566_v39 }
 0x3ec   : > { %v1568_v47 = vadd.f32 %v8417_v32, %v1567_v44 }
 0x3ee   : > { %v1572_v53 = vsel %vm1571_vm12, %v8417_v32, %v1568_v47  ;;  %v1548_v54 = vpop.xlane.xlu2 %1547  ;;  %v1964_v23 = vpop.xlane.xlu0 %1963 }
 0x3ef   : > { %v1577_v55 = vsel %vm1574_vm13, %v1576_v50, %v1572_v53  ;;  %8420 = vrcp.f32 %v1548_v54  ;;  %v1590_v3 = vand.u32 2147483648, %v1548_v54  ;;  %v1588_v9 = vand.u32 2147483647, %v1548_v54 }
 0x3f0   : > { %v1578_v57 = vmul.f32 %v9576_v51, %v1577_v55  ;;  %vm1584_vm15 = vweird.f32 %v1548_v54  ;;  %v1968_v51 = vsub.f32 %v9588_v60, %v1961_v35  ;;  %v1829_v60 = vmul.f32 1.442695, %v1825_v21 }
 0x3f1   : > { %v1591_v11 = vor.u32 1.1754944e-38, %v1590_v3  ;;  %vm1589_vm6 = vcmp.eq.f32.partialorder %v1588_v9, 8.507059e+37  ;;  %v1969_v25 = vsub.f32 %v9594_v1, %v1964_v23 }
 0x3f2   : > { %v1594_v58 = vpack.c.bf16 %v1578_v57, %v1563_v56  ;;  %v1971_v17 = vmul.f32 1.442695, %v1968_v51 }
 0x3f3   : > { %v1973_v28 = vmul.f32 1.442695, %v1969_v25 }
 0x3f4   : > { %6584 = vmatmul.msk.bf16.vlgmr.msrb.gmra.mxu0 %vm1520_vm4, %v1594_v58  ;;  %8422 = vpow2.f32 %v1971_v17 }
 0x3f5   : > { %v8421_v61 = vpop.eup %8420  ;;  %8424 = vpow2.f32 %v1829_v60 }
 0x3f6   : > { %v1580_v63 = vmul.f32 %v8421_v61, %v1548_v54  ;;  %vm1585_vm14 = vweird.f32 %v8421_v61  ;;  %v1967_v32 = vpop.xlane.xlu2 %1966 }
 0x3f7   : > { %vm1586_vm1 = vmor %vm1584_vm15, %vm1585_vm14  ;;  %v1970_v34 = vsub.f32 %v9600_v4, %v1967_v32 }
 0x3f8   : > { %v1581_v2 = vsub.f32 1.0, %v1580_v63 }
 0x3f9   : > { %2035 = vrot.lane.b32.xlu2 %v9532_v0, %s9135_s5  ;;  %v1975_v39 = vmul.f32 1.442695, %v1970_v34 }
 0x3fa   : > { %v1582_v5 = vmul.f32 %v8421_v61, %v1581_v2  ;;  %v9633_v18 = vpop.eup %8422 }
 0x3fb   : > { %v1977_v20 = vsel %vm1520_vm4, %v9633_v18, 0.0  ;;  %v9641_v24 = vpop.eup %8424 }
 0x3fc   : > { %v1583_v10 = vadd.f32 %v8421_v61, %v1582_v5  ;;  %v1836_v27 = vsel %vm1520_vm4, %v9641_v24, 0.0 }
 0x3fe   : > { %v1587_v43 = vsel %vm1586_vm1, %v8421_v61, %v1583_v10 }
 0x3ff   : > { %v1592_v12 = vsel %vm1589_vm6, %v1591_v11, %v1587_v43 }
 0x400   : > { %v1593_v15 = vmul.f32 %v9592_v62, %v1592_v12  ;;  %v1682_v62 = vsub.f32 %v9572_v48, %v9608_v19  ;;  %v1821_v19 = vsel %vm1527_vm5, %v9586_v59, -inf }
 0x402   : > { %v1595_v16 = vpack.c.bf16 %v1593_v15, %v1593_v15  ;;  %1747 = vrot.lane.b32.xlu1 %v9532_v0, %s9133_s23  ;;  %v1687_v22 = vmul.f32 1.442695, %v1682_v62 }
 0x404   : > { %6585 = vmatmul.msk.bf16.gmra.mxu0 %vm1520_vm4, %v1595_v16  ;;  %8426 = vpow2.f32 %v1687_v22 }
 0x405   : > { %8428 = vpow2.f32 %v1973_v28 }
 0x40a   : > { %v9648_v52 = vpop.eup %8426 }
 0x40b   : > { %v1695_v48 = vsel %vm1527_vm5, %v9648_v52, 0.0  ;;  %v9654_v1 = vpop.eup %8428 }
 0x40c   : > { %v1980_v26 = vsel %vm1520_vm4, %v9654_v1, 0.0 }
 0x411   : > { %1978 = vadd.xlane.f32.xlu0 %v1977_v20 }
 0x422   : > { %1837 = vadd.xlane.f32.xlu2 %v1836_v27 }
 0x425   : > { %2033 = vrot.lane.b32.xlu0 %v9539_v8, %s9135_s5 }
 0x42a   : > { %1696 = vadd.xlane.f32.xlu2 %v1695_v48 }
 0x42c   : > { %1822 = vmax.xlane.f32.xlu1 %v1821_v19 }
 0x432   : > { %1981 = vadd.xlane.f32.xlu2 %v1980_v26 }
 0x445   : > { %1891 = vrot.lane.b32.xlu1 %v9532_v0, %s9134_s28 }
 0x446   : > { %v1691_v30 = vpop.xlane.xlu0 %1690 }
 0x447   : > { %8430 = vrcp.f32 %v1691_v30  ;;  %v1709_v49 = vand.u32 2147483648, %v1691_v30  ;;  %vm1703_vm11 = vweird.f32 %v1691_v30  ;;  %v1707_v53 = vand.u32 2147483647, %v1691_v30 }
 0x449   : > { %v1710_v58 = vor.u32 1.1754944e-38, %v1709_v49  ;;  %vm1708_vm14 = vcmp.eq.f32.partialorder %v1707_v53, 8.507059e+37 }
 0x44a   : > { %1889 = vrot.lane.b32.xlu2 %v9539_v8, %s9134_s28 }
 0x44d   : > { %v8431_v33 = vpop.eup %8430 }
 0x44e   : > { %v1699_v36 = vmul.f32 %v8431_v33, %v1691_v30  ;;  %vm1704_vm8 = vweird.f32 %v8431_v33 }
 0x44f   : > { %vm1705_vm12 = vmor %vm1703_vm11, %vm1704_vm8 }
 0x450   : > { %v1700_v41 = vsub.f32 1.0, %v1699_v36 }
 0x452   : > { %v1701_v0 = vmul.f32 %v8431_v33, %v1700_v41 }
 0x454   : > { %v9663_v44 = vpop.xlane.xlu2 %1834  ;;  %v1702_v47 = vadd.f32 %v8431_v33, %v1701_v0 }
 0x455   : > { %vm1847_vm11 = vweird.f32 %v9663_v44 }
 0x456   : > { %v1706_v57 = vsel %vm1705_vm12, %v8431_v33, %v1702_v47 }
 0x457   : > { %v1711_v3 = vsel %vm1708_vm14, %v1710_v58, %v1706_v57 }
 0x458   : > { %v1712_v11 = vmul.f32 %v9604_v13, %v1711_v3 }
 0x459   : > { %v1746_v43 = vpop.permute.xlu0 %1745 }
 0x45c   : > { %v1694_v31 = vpop.xlane.xlu1 %1693  ;;  %v2036_v5 = vpop.permute.xlu2 %2035 }
 0x45d   : > { %8432 = vrcp.f32 %v1694_v31  ;;  %v1724_v45 = vand.u32 2147483648, %v1694_v31  ;;  %vm1718_vm9 = vweird.f32 %v1694_v31  ;;  %v1722_v4 = vand.u32 2147483647, %v1694_v31 }
 0x45e   : > { %8434 = vpow2.f32 %v1975_v39  ;;  %v2045_v51 = vsel %vm1611_vm3, %v2036_v5, 0  ;;  %v1851_v5 = vand.u32 2147483647, %v9663_v44 }
 0x45f   : > { %v1725_v55 = vor.u32 1.1754944e-38, %v1724_v45  ;;  %vm1723_vm13 = vcmp.eq.f32.partialorder %v1722_v4, 8.507059e+37 }
 0x463   : > { %v8433_v35 = vpop.eup %8432 }
 0x464   : > { %v1714_v38 = vmul.f32 %v8433_v35, %v1694_v31  ;;  %vm1719_vm7 = vweird.f32 %v8433_v35  ;;  %v9665_v46 = vpop.eup %8434 }
 0x465   : > { %vm1720_vm10 = vmor %vm1718_vm9, %vm1719_vm7  ;;  %v1983_v56 = vsel %vm1527_vm5, %v9665_v46, 0.0 }
 0x466   : > { %v1715_v40 = vsub.f32 1.0, %v1714_v38 }
 0x468   : > { %v1716_v42 = vmul.f32 %v8433_v35, %v1715_v40 }
 0x46a   : > { %v1717_v8 = vadd.f32 %v8433_v35, %v1716_v42 }
 0x46c   : > { %v1721_v54 = vsel %vm1720_vm10, %v8433_v35, %v1717_v8 }
 0x46d   : > { %v1726_v61 = vsel %vm1723_vm13, %v1725_v55, %v1721_v54  ;;  %v1853_v54 = vand.u32 2147483648, %v9663_v44 }
 0x46e   : > { %v1727_v9 = vmul.f32 %v9619_v37, %v1726_v61 }
 0x470   : > { %v1743_v12 = vpack.c.bf16 %v1727_v9, %v1712_v11 }
 0x471   : > { %v9667_v50 = vpop.f32.mrf.mxu0 }
 0x473   : > { %1984 = vadd.xlane.f32.xlu2 %v1983_v56 }
 0x474   : > { %v1748_v63 = vpop.permute.xlu1 %1747 }
 0x475   : > { %v1757_v2 = vsel %vm1611_vm3, %v1748_v63, 0 }
 0x476   : > { %1765 = vmatpush.bf16.msra.mxu2 %v1757_v2 }
 0x479   : > { %v9673_v10 = vpop.f32.mrf.mxu0 }
 0x47a   : > { %1766 = vmatpush.bf16.msra.mxu2 %v1746_v43 }
 0x47d   : > { %6588 = vmatmul.msk.bf16.vlgmr.msra.gmra.mxu2 %vm1520_vm4, %v1743_v12 }
 0x47e   : > { %2053 = vmatpush.bf16.msrb.mxu2 %v2045_v51 }
 0x481   : > { %v9678_v15 = vpop.f32.mrf.mxu0 }
 0x484   : > { %v9680_v17 = vpop.xlane.xlu0 %1978 }
 0x489   : > { %v1631_v16 = vpop.f32.mrf.mxu0 }
 0x495   : > { %v9682_v20 = vpop.xlane.xlu2 %1837 }
 0x496   : > { %8436 = vrcp.f32 %v9682_v20  ;;  %v1868_v57 = vand.u32 2147483648, %v9682_v20  ;;  %vm1862_vm10 = vweird.f32 %v9682_v20 }
 0x497   : > { %v2034_v37 = vpop.permute.xlu0 %2033  ;;  %8438 = vrcp.f32 %v9663_v44 }
 0x498   : > { %2054 = vmatpush.bf16.msrb.mxu2 %v2034_v37  ;;  %v1869_v12 = vor.u32 1.1754944e-38, %v1868_v57  ;;  %v1997_v37 = vand.u32 2147483648, %v9680_v17 }
 0x49c   : > { %v9688_v62 = vpop.eup %8436 }
 0x49d   : > { %v1697_v13 = vpop.xlane.xlu2 %1696  ;;  %v9690_v23 = vpop.eup %8438  ;;  %v1858_v27 = vmul.f32 %v9688_v62, %v9682_v20  ;;  %vm1863_vm8 = vweird.f32 %v9688_v62 }
 0x49e   : > { %8440 = vrcp.f32 %v1697_v13  ;;  %v1843_v26 = vmul.f32 %v9690_v23, %v9663_v44  ;;  %v1739_v31 = vand.u32 2147483648, %v1697_v13  ;;  %v1737_v34 = vand.u32 2147483647, %v1697_v13  ;;  %vm9721_vm12 = vmor %vm1862_vm10, %vm1863_vm8 }
 0x49f   : > { %v1823_v21 = vpop.xlane.xlu1 %1822  ;;  %8442 = vrcp.f32 %v9680_v17  ;;  %v1859_v30 = vsub.f32 1.0, %v1858_v27  ;;  %vm1733_vm1 = vweird.f32 %v1697_v13  ;;  %vm1848_vm9 = vweird.f32 %v9690_v23 }
 0x4a0   : > { %v1826_v60 = vsub.f32 %v9586_v59, %v1823_v21  ;;  %v1844_v36 = vsub.f32 1.0, %v1843_v26  ;;  %v1740_v42 = vor.u32 1.1754944e-38, %v1739_v31  ;;  %vm1738_vm7 = vcmp.eq.f32.partialorder %v1737_v34, 8.507059e+37 }
 0x4a1   : > { %v1860_v41 = vmul.f32 %v9688_v62, %v1859_v30  ;;  %vm1991_vm8 = vweird.f32 %v9680_v17  ;;  %v1995_v21 = vand.u32 2147483647, %v9680_v17 }
 0x4a2   : > { %v1831_v22 = vmul.f32 1.442695, %v1826_v60  ;;  %v1845_v47 = vmul.f32 %v9690_v23, %v1844_v36 }
 0x4a3   : > { %v1861_v55 = vadd.f32 %v9688_v62, %v1860_v41 }
 0x4a4   : > { %v8441_v25 = vpop.eup %8440  ;;  %8444 = vpow2.f32 %v1831_v22  ;;  %v1846_v63 = vadd.f32 %v9690_v23, %v1845_v47 }
 0x4a5   : > { %v1729_v28 = vmul.f32 %v8441_v25, %v1697_v13  ;;  %v9694_v48 = vpop.xlane.xlu2 %1981  ;;  %v9696_v19 = vpop.eup %8442  ;;  %vm1734_vm15 = vweird.f32 %v8441_v25  ;;  %v1865_v9 = vsel %vm9721_vm12, %v9688_v62, %v1861_v55  ;;  %vm1996_vm12 = vcmp.eq.f32.partialorder %v1995_v21, 8.507059e+37 }
 0x4a6   : > { %8446 = vrcp.f32 %v9694_v48  ;;  %v1987_v32 = vmul.f32 %v9696_v19, %v9680_v17  ;;  %vm1735_vm6 = vmor %vm1733_vm1, %vm1734_vm15  ;;  %vm1992_vm14 = vweird.f32 %v9696_v19  ;;  %v2012_v11 = vand.u32 2147483648, %v9694_v48 }
 0x4a7   : > { %v1730_v59 = vsub.f32 1.0, %v1729_v28  ;;  %vm9732_vm15 = vmor %vm1847_vm11, %vm1848_vm9  ;;  %vm2006_vm1 = vweird.f32 %v9694_v48  ;;  %v2010_v16 = vand.u32 2147483647, %v9694_v48  ;;  %vm1852_vm9 = vcmp.eq.f32.partialorder %v1851_v5, 8.507059e+37 }
 0x4a8   : > { %v1988_v0 = vsub.f32 1.0, %v1987_v32  ;;  %v1850_v44 = vsel %vm9732_vm15, %v9690_v23, %v1846_v63  ;;  %vm1993_vm10 = vmor %vm1991_vm8, %vm1992_vm14  ;;  %v2013_v23 = vor.u32 1.1754944e-38, %v2012_v11 }
 0x4a9   : > { %v1731_v33 = vmul.f32 %v8441_v25, %v1730_v59  ;;  %vm2011_vm11 = vcmp.eq.f32.partialorder %v2010_v16, 8.507059e+37 }
 0x4aa   : > { %v9703_v35 = vpop.eup %8444  ;;  %v1989_v56 = vmul.f32 %v9696_v19, %v1988_v0 }
 0x4ab   : > { %v1839_v38 = vsel %vm1527_vm5, %v9703_v35, 0.0  ;;  %v1732_v39 = vadd.f32 %v8441_v25, %v1731_v33 }
 0x4ac   : > { %v8447_v40 = vpop.eup %8446  ;;  %1840 = vadd.xlane.f32.xlu0 %v1839_v38  ;;  %v1990_v51 = vadd.f32 %v9696_v19, %v1989_v56 }
 0x4ad   : > { %v2002_v8 = vmul.f32 %v8447_v40, %v9694_v48  ;;  %v1736_v45 = vsel %vm1735_vm6, %v8441_v25, %v1732_v39  ;;  %vm2007_vm13 = vweird.f32 %v8447_v40  ;;  %v1998_v48 = vor.u32 1.1754944e-38, %v1997_v37  ;;  %v1890_v31 = vpop.permute.xlu2 %1889  ;;  %v7867_v37 = vld [vmem:[#allocation16 + $0x38] sm:$0xff] }
 0x4ae   : > { %v1741_v4 = vsel %vm1738_vm7, %v1740_v42, %v1736_v45  ;;  %vm9744_vm7 = vmor %vm2006_vm1, %vm2007_vm13  ;;  %v1994_v28 = vsel %vm1993_vm10, %v9696_v19, %v1990_v51  ;;  %2182 = vmatpush.bf16.msrb.mxu3 %v7867_v37  ;;  %vm2104_vm10 = vcmask 523264   ;;  %v7889_v37 = vld [vmem:[#allocation22 + $0xac] sm:$0xf] }
 0x4af   : > { %v2003_v49 = vsub.f32 1.0, %v2002_v8  ;;  %v1742_v53 = vmul.f32 %v9648_v52, %v1741_v4  ;;  %v1866_v52 = vand.u32 2147483647, %v9682_v20  ;;  %v1854_v20 = vor.u32 1.1754944e-38, %v1853_v54 }
 0x4b0   : > { %v1999_v30 = vsel %vm1996_vm12, %v1998_v48, %v1994_v28 }
 0x4b1   : > { %v2004_v58 = vmul.f32 %v8447_v40, %v2003_v49  ;;  %v1744_v61 = vpack.c.bf16 %v1742_v53, %v1742_v53  ;;  %vm1867_vm6 = vcmp.eq.f32.partialorder %v1866_v52, 8.507059e+37  ;;  %v1855_v27 = vsel %vm1852_vm9, %v1854_v20, %v1850_v44 }
 0x4b2   : > { %v1870_v60 = vsel %vm1867_vm6, %v1869_v12, %v1865_v9  ;;  %v1856_v59 = vmul.f32 %v9613_v29, %v1855_v27  ;;  %v2000_v34 = vmul.f32 %v9633_v18, %v1999_v30  ;;  %v7860_v27 = vld [vmem:[#allocation16] sm:$0xff] }
 0x4b3   : > { %v2005_v3 = vadd.f32 %v8447_v40, %v2004_v58  ;;  %6589 = vmatmul.msk.bf16.gmra.mxu2 %vm1520_vm4, %v1744_v61  ;;  %v1871_v17 = vmul.f32 %v9641_v24, %v1870_v60  ;;  %v7865_v60 = vld [vmem:[#allocation16 + $0x28] sm:$0xff] }
 0x4b5   : > { %v2009_v62 = vsel %vm9744_vm7, %v8447_v40, %v2005_v3  ;;  %v1887_v33 = vpack.c.bf16 %v1871_v17, %v1856_v59 }
 0x4b6   : > { %v2014_v26 = vsel %vm2011_vm11, %v2013_v23, %v2009_v62  ;;  %v7864_v62 = vld [vmem:[#allocation16 + $0x20] sm:$0xff]  ;;  %v7862_v23 = vld [vmem:[#allocation16 + $0x10] sm:$0xff]  ;;  %vm2108_vm11 = vcmask 785408  }
 0x4b7   : > { %v1892_v22 = vpop.permute.xlu1 %1891  ;;  %v2015_v32 = vmul.f32 %v9654_v1, %v2014_v26 }
 0x4b8   : > { %v1901_v25 = vsel %vm1611_vm3, %v1892_v22, 0  ;;  %v7863_v22 = vld [vmem:[#allocation16 + $0x18] sm:$0xff] }
 0x4b9   : > { %1909 = vmatpush.bf16.msra.mxu0 %v1901_v25  ;;  %v2031_v19 = vpack.c.bf16 %v2015_v32, %v2000_v34  ;;  %v7861_v25 = vld [vmem:[#allocation16 + $0x8] sm:$0xff] }
 0x4bd   : > { %1910 = vmatpush.bf16.msra.mxu0 %v1890_v31 }
 0x4c0   : > { %6592 = vmatmul.msk.bf16.vlgmr.msra.gmra.mxu0 %vm1520_vm4, %v1887_v33 }
 0x4c3   : > { %6596 = vmatmul.msk.bf16.vlgmr.msrb.gmra.mxu2 %vm1520_vm4, %v2031_v19 }
 0x4e6   : > { %v1985_v36 = vpop.xlane.xlu2 %1984 }
 0x4e7   : > { %8448 = vrcp.f32 %v1985_v36  ;;  %v2027_v40 = vand.u32 2147483648, %v1985_v36  ;;  %v2025_v41 = vand.u32 2147483647, %v1985_v36  ;;  %vm2021_vm14 = vweird.f32 %v1985_v36 }
 0x4e9   : > { %v2028_v42 = vor.u32 1.1754944e-38, %v2027_v40  ;;  %vm2026_vm1 = vcmp.eq.f32.partialorder %v2025_v41, 8.507059e+37 }
 0x4ed   : > { %v8449_v24 = vpop.eup %8448 }
 0x4ee   : > { %v2017_v38 = vmul.f32 %v8449_v24, %v1985_v36  ;;  %vm2022_vm13 = vweird.f32 %v8449_v24 }
 0x4ef   : > { %vm2023_vm15 = vmor %vm2021_vm14, %vm2022_vm13 }
 0x4f0   : > { %v2018_v39 = vsub.f32 1.0, %v2017_v38 }
 0x4f2   : > { %v2019_v29 = vmul.f32 %v8449_v24, %v2018_v39 }
 0x4f4   : > { %v2020_v1 = vadd.f32 %v8449_v24, %v2019_v29 }
 0x4f6   : > { %v2024_v0 = vsel %vm2023_vm15, %v8449_v24, %v2020_v1 }
 0x4f7   : > { %v2029_v18 = vsel %vm2026_vm1, %v2028_v42, %v2024_v0 }
 0x4f8   : > { %v2030_v8 = vmul.f32 %v9665_v46, %v2029_v18 }
 0x4fa   : > { %v2032_v45 = vpack.c.bf16 %v2030_v8, %v2030_v8 }
 0x4fc   : > { %6597 = vmatmul.msk.bf16.gmra.mxu2 %vm1520_vm4, %v2032_v45  ;;  %v8392_v45 = vld [vmem:[#allocation17] ss:$0 sm:$0xff] }
 0x500   : > { %v1768_v47 = vpop.f32.mrf.mxu2 }
 0x508   : > { %v1770_v4 = vpop.f32.mrf.mxu2 }
 0x509   : > { %v8361_v49 = vpack.i.bf16 %v1770_v4, %v1768_v47 }
 0x50b   : > { %8362 = vrot.lane.b32.xlu1 %v8361_v49, %s9135_s5 }
 0x51f   : > { %v1841_v53 = vpop.xlane.xlu0 %1840 }
 0x520   : > { %8450 = vrcp.f32 %v1841_v53  ;;  %v1883_v57 = vand.u32 2147483648, %v1841_v53  ;;  %v1881_v61 = vand.u32 2147483647, %v1841_v53  ;;  %vm1877_vm7 = vweird.f32 %v1841_v53 }
 0x522   : > { %v1884_v46 = vor.u32 1.1754944e-38, %v1883_v57  ;;  %vm1882_vm9 = vcmp.eq.f32.partialorder %v1881_v61, 8.507059e+37 }
 0x526   : > { %v8451_v54 = vpop.eup %8450 }
 0x527   : > { %v1873_v55 = vmul.f32 %v8451_v54, %v1841_v53  ;;  %vm1878_vm6 = vweird.f32 %v8451_v54 }
 0x528   : > { %vm1879_vm8 = vmor %vm1877_vm7, %vm1878_vm6 }
 0x529   : > { %v1874_v56 = vsub.f32 1.0, %v1873_v55 }
 0x52b   : > { %v1875_v58 = vmul.f32 %v8451_v54, %v1874_v56 }
 0x52d   : > { %v1876_v63 = vadd.f32 %v8451_v54, %v1875_v58 }
 0x52f   : > { %v1880_v52 = vsel %vm1879_vm8, %v8451_v54, %v1876_v63 }
 0x530   : > { %v1885_v2 = vsel %vm1882_vm9, %v1884_v46, %v1880_v52 }
 0x531   : > { %v1886_v3 = vmul.f32 %v9703_v35, %v1885_v2  ;;  %v7866_v35 = vld [vmem:[#allocation16 + $0x30] sm:$0xff] }
 0x532   : > { %2183 = vmatpush.bf16.msrb.mxu3 %v7866_v35 }
 0x533   : > { %v1888_v5 = vpack.c.bf16 %v1886_v3, %v1886_v3 }
 0x535   : > { %6593 = vmatmul.msk.bf16.gmra.mxu0 %vm1520_vm4, %v1888_v5 }
 0x536   : > { %v1773_v9 = vpop.f32.mrf.mxu2  ;;  %2184 = vmatpush.bf16.msrb.mxu3 %v7865_v60  ;;  %v7891_v60 = vld [vmem:[#allocation22 + $0xb8] sm:$0xf0] }
 0x53a   : > { %2185 = vmatpush.bf16.msrb.mxu3 %v7864_v62 }
 0x53d   : > { %v1912_v11 = vpop.f32.mrf.mxu0 }
 0x53e   : > { %v1775_v43 = vpop.f32.mrf.mxu2  ;;  %2186 = vmatpush.bf16.msrb.mxu3 %v7863_v22 }
 0x542   : > { %2187 = vmatpush.bf16.msrb.mxu3 %v7862_v23 }
 0x545   : > { %v1914_v51 = vpop.f32.mrf.mxu0 }
 0x546   : > { %v8366_v12 = vpack.i.bf16 %v1914_v51, %v1912_v11  ;;  %v2056_v16 = vpop.f32.mrf.mxu2  ;;  %2188 = vmatpush.bf16.msrb.mxu3 %v7861_v25 }
 0x548   : > { %8367 = vrot.lane.b32.xlu1 %v8366_v12, %s9134_s28 }
 0x54a   : > { %2189 = vmatpush.bf16.msrb.mxu3 %v7860_v27  ;;  %v6704_v27 = vld [vmem:[#allocation22 + $0x90] sm:$0xf] }
 0x54e   : > { %v2058_v44 = vpop.f32.mrf.mxu2 }
 0x54f   : > { %v8371_v20 = vpack.i.bf16 %v2058_v44, %v2056_v16  ;;  %v6716_v44 = vld [vmem:[#allocation22 + $0xa8] sm:$0xf] }
 0x551   : > { %8372 = vrot.lane.b32.xlu1 %v8371_v20, %s9133_s23  ;;  %v7890_v20 = vld [vmem:[#allocation22 + $0xb0] sm:$0xf0] }
 0x552   : > { %v6717_v35 = vor.u32 %v7890_v20, %v6716_v44  ;;  %v7871_v44 = vld [vmem:[#allocation22 + $0x1c] sm:$0xf] }
 0x554   : > { %2456 = vmatpush.bf16.msrb.mxu0 %v6717_v35  ;;  %v6652_v35 = vld [vmem:[#allocation22 + $0x20] sm:$0xf] }
 0x559   : > { %2072 = vrot.lane.b32.xlu1 %v1773_v9, %s9135_s5 }
 0x57d   : > { %v8363_v28 = vpop.permute.xlu1 %8362 }
 0x57e   : > { %v8365_v59 = vunpack.i.h.bf16 %v8363_v28  ;;  %v8364_v30 = vunpack.i.l.bf16 %v8363_v28  ;;  %v7887_v28 = vld [vmem:[#allocation22 + $0x98] sm:$0xf0] }
 0x57f   : > { %v2061_v13 = vpop.f32.mrf.mxu2 }
 0x580   : > { %2096 = vrot.lane.b32.xlu2 %v2061_v13, %s9133_s23  ;;  %v2101_v34 = vsel %vm1489_vm2, %v9667_v50, %v8364_v30  ;;  %v2102_v19 = vsel %vm1489_vm2, %v9673_v10, %v8365_v59  ;;  %v6718_v13 = vld [vmem:[#allocation22 + $0xb4] sm:$0xf0]  ;;  %v6706_v59 = vld [vmem:[#allocation22 + $0x9c] sm:$0xf0] }
 0x581   : > { %v6721_v22 = vor.u32 %v7889_v37, %v6718_v13  ;;  %v6712_v30 = vld [vmem:[#allocation22 + $0x98] sm:$0xf]  ;;  %v6646_v37 = vld [vmem:[#allocation22 + $0x24] sm:$0xf0]  ;;  %v7873_v13 = vld [vmem:[#allocation22 + $0x28] sm:$0xf0] }
 0x583   : > { %2474 = vmatpush.bf16.msra.mxu1 %v6721_v22  ;;  %v6632_v22 = vld [vmem:[#allocation22] sm:$0xf] }
 0x587   : > { %v2063_v21 = vpop.f32.mrf.mxu2 }
 0x588   : > { %v6724_v21 = vld [vmem:[#allocation22 + $0xb0] sm:$0xf] }
 0x589   : > { %v6725_v23 = vor.u32 %v7891_v60, %v6724_v21  ;;  %v6649_v60 = vor.u32 %v7871_v44, %v6646_v37 }
 0x58b   : > { %2492 = vmatpush.bf16.msra.mxu2 %v6725_v23  ;;  %v7869_v23 = vld [vmem:[#allocation22 + $0x8] sm:$0xf0] }
 0x5b2   : > { %v1917_v48 = vpop.f32.mrf.mxu0 }
 0x5b3   : > { %2084 = vrot.lane.b32.xlu1 %v1917_v48, %s9134_s28  ;;  %v7886_v48 = vld [vmem:[#allocation22 + $0x94] sm:$0xf] }
 0x5ba   : > { %v8368_v17 = vpop.permute.xlu1 %8367  ;;  %v1919_v26 = vpop.f32.mrf.mxu0 }
 0x5bb   : > { %v8370_v31 = vunpack.i.h.bf16 %v8368_v17  ;;  %v8369_v32 = vunpack.i.l.bf16 %v8368_v17  ;;  %v6705_v26 = vor.u32 %v7887_v28, %v6704_v27  ;;  %v6633_v28 = vor.u32 %v7869_v23, %v6632_v22  ;;  %v7895_v22 = vld [vmem:[#allocation23 + $0x18] sm:$0xff] }
 0x5bc   : > { %v7903_v23 = vld [vmem:[#allocation23 + $0x58] sm:$0xff] }
 0x5bd   : > { %v2106_v38 = vsel %vm2104_vm10, %v2102_v19, %v8370_v31  ;;  %v2105_v39 = vsel %vm2104_vm10, %v2101_v34, %v8369_v32  ;;  %v7888_v31 = vld [vmem:[#allocation22 + $0xa0] sm:$0xf0]  ;;  %v6709_v32 = vor.u32 %v7886_v48, %v6706_v59  ;;  %2457 = vmatpush.bf16.msrb.mxu0 %v6705_v26  ;;  %v6692_v19 = vld [vmem:[#allocation22 + $0x78] sm:$0xf]  ;;  %v6634_v48 = vld [vmem:[#allocation22 + $0xc] sm:$0xf0] }
 0x5be   : > { %v6640_v26 = vld [vmem:[#allocation22 + $0x8] sm:$0xf]  ;;  %v7870_v59 = vld [vmem:[#allocation22 + $0x10] sm:$0xf0] }
 0x5bf   : > { %2475 = vmatpush.bf16.msra.mxu1 %v6709_v32  ;;  %v6641_v32 = vor.u32 %v7870_v59, %v6640_v26  ;;  %v7901_v26 = vld [vmem:[#allocation23 + $0x48] sm:$0xff]  ;;  %v7910_v59 = vld [vmem:[#allocation23 + $0x90] sm:$0xff] }
 0x5c3   : > { %v8373_v33 = vpop.permute.xlu1 %8372 }
 0x5c4   : > { %v8375_v36 = vunpack.i.h.bf16 %v8373_v33  ;;  %v8374_v24 = vunpack.i.l.bf16 %v8373_v33  ;;  %v6713_v33 = vor.u32 %v7888_v31, %v6712_v30 }
 0x5c6   : > { %v2109_v40 = vsel %vm2108_vm11, %v2105_v39, %v8374_v24  ;;  %v2110_v29 = vsel %vm2108_vm11, %v2106_v38, %v8375_v36  ;;  %2493 = vmatpush.bf16.msra.mxu2 %v6713_v33  ;;  %v7884_v36 = vld [vmem:[#allocation22 + $0x80] sm:$0xf0]  ;;  %v7883_v24 = vld [vmem:[#allocation22 + $0x7c] sm:$0xf] }
 0x5c7   : > { %v2112_v41 = vpack.c.bf16 %v2110_v29, %v2109_v40  ;;  %v6693_v39 = vor.u32 %v7884_v36, %v6692_v19  ;;  %v6694_v40 = vld [vmem:[#allocation22 + $0x84] sm:$0xf0]  ;;  %v6700_v29 = vld [vmem:[#allocation22 + $0x80] sm:$0xf] }
 0x5c9   : > { %2190 = vmatmul.bf16.vlgmr.msrb.gmra.mxu3 %v2112_v41  ;;  %v6697_v41 = vor.u32 %v7883_v24, %v6694_v40  ;;  %2458 = vmatpush.bf16.msrb.mxu0 %v6693_v39 }
 0x5cb   : > { %v2073_v1 = vpop.permute.xlu1 %2072  ;;  %2476 = vmatpush.bf16.msra.mxu1 %v6697_v41 }
 0x5cc   : > { %v2103_v42 = vsel %vm1489_vm2, %v9678_v15, %v2073_v1  ;;  %v9136_v15 = vmov 128.0   ;;  %v7885_v1 = vld [vmem:[#allocation22 + $0x88] sm:$0xf0] }
 0x5cd   : > { %8452 = vrcp.f32 %v9136_v15 }
 0x5d3   : > { %v8453_v58 = vpop.eup %8452 }
 0x5d4   : > { %v2213_v46 = vmul.f32 128.0, %v8453_v58  ;;  %vm2217_vm12 = vweird.f32 %v8453_v58 }
 0x5d6   : > { %v2214_v2 = vsub.f32 1.0, %v2213_v46  ;;  %v6656_v46 = vld [vmem:[#allocation22 + $0x30] sm:$0xf] }
 0x5da   : > { %v2097_v0 = vpop.permute.xlu2 %2096 }
 0x625   : > { %v2085_v50 = vpop.permute.xlu1 %2084 }
 0x626   : > { %v2107_v10 = vsel %vm2104_vm10, %v2103_v42, %v2085_v50  ;;  %v6701_v42 = vor.u32 %v7885_v1, %v6700_v29  ;;  %v6680_v50 = vld [vmem:[#allocation22 + $0x60] sm:$0xf] }
 0x627   : > { %v2111_v18 = vsel %vm2108_vm11, %v2107_v10, %v2097_v0  ;;  %v7881_v0 = vld [vmem:[#allocation22 + $0x68] sm:$0xf0]  ;;  %v7880_v10 = vld [vmem:[#allocation22 + $0x64] sm:$0xf] }
 0x628   : > { %v2113_v8 = vpack.c.bf16 %v2111_v18, %v2111_v18  ;;  %2494 = vmatpush.bf16.msra.mxu2 %v6701_v42  ;;  %v6681_v18 = vor.u32 %v7881_v0, %v6680_v50 }
 0x62a   : > { %2195 = vmatmul.bf16.gmra.mxu3 %v2113_v8  ;;  %v6682_v8 = vld [vmem:[#allocation22 + $0x6c] sm:$0xf0]  ;;  %2459 = vmatpush.bf16.msrb.mxu0 %v6681_v18 }
 0x64c   : > { %v2191_v47 = vpop.f32.mrf.mxu3 }
 0x64d   : > { %v2192_v4 = vadd.f32 %v8392_v45, %v2191_v47  ;;  %v7882_v47 = vld [vmem:[#allocation22 + $0x70] sm:$0xf0] }
 0x64f   : > { %v2200_v49 = vadd.f32 %v2192_v4, %v9513_v6  ;;  %v2215_v6 = vmul.f32 %v8453_v58, %v2214_v2  ;;  %v6685_v4 = vor.u32 %v7880_v10, %v6682_v8  ;;  %v7874_v2 = vld [vmem:[#allocation22 + $0x34] sm:$0xf]  ;;  %v8393_v8 = vld [vmem:[#allocation19] ss:$0 sm:$0xff] }
 0x651   : > { %2205 = vadd.xlane.f32.xlu0 %v2200_v49  ;;  %v2216_v3 = vadd.f32 %v8453_v58, %v2215_v6  ;;  %2477 = vmatpush.bf16.msra.mxu1 %v6685_v4 }
 0x653   : > { %v9788_v5 = vsel %vm2217_vm12, %v8453_v58, %v2216_v3  ;;  %v7879_v58 = vld [vmem:[#allocation22 + $0x58] sm:$0xf0]  ;;  %v6658_v3 = vld [vmem:[#allocation22 + $0x3c] sm:$0xf0] }
 0x654   : > { %v2193_v53 = vpop.f32.mrf.mxu3 }
 0x655   : > { %v2194_v54 = vadd.f32 %v8392_v45, %v2193_v53  ;;  %v6668_v53 = vld [vmem:[#allocation22 + $0x48] sm:$0xf] }
 0x657   : > { %v2201_v55 = vadd.f32 %v2194_v54, %v9515_v7  ;;  %v7878_v54 = vld [vmem:[#allocation22 + $0x50] sm:$0xf0] }
 0x658   : > { %v6669_v15 = vor.u32 %v7878_v54, %v6668_v53  ;;  %v8394_v53 = vld [vmem:[#allocation20] ss:$0 sm:$0xff] }
 0x659   : > { %2207 = vadd.xlane.f32.xlu1 %v2201_v55 }
 0x65a   : > { %2460 = vmatpush.bf16.msrb.mxu0 %v6669_v15 }
 0x6ad   : > { %v2196_v56 = vpop.f32.mrf.mxu3 }
 0x6ae   : > { %v2197_v57 = vadd.f32 %v8392_v45, %v2196_v56  ;;  %v6688_v45 = vld [vmem:[#allocation22 + $0x68] sm:$0xf]  ;;  %v6670_v56 = vld [vmem:[#allocation22 + $0x54] sm:$0xf0] }
 0x6b0   : > { %v2202_v61 = vadd.f32 %v2197_v57, %v9519_v14  ;;  %v6676_v57 = vld [vmem:[#allocation22 + $0x50] sm:$0xf] }
 0x6b2   : > { %v2209_v63 = vsel %vm949_vm0, %v2202_v61, 0.0 }
 0x6b3   : > { %2210 = vadd.xlane.f32.xlu0 %v2209_v63  ;;  %v6677_v63 = vor.u32 %v7879_v58, %v6676_v57  ;;  %v7899_v57 = vld [vmem:[#allocation23 + $0x38] sm:$0xff] }
 0x6b4   : > { %v7907_v58 = vld [vmem:[#allocation23 + $0x78] sm:$0xff]  ;;  %2721 = vmatpush.bf16.msra.mxu3 %v7899_v57 }
 0x6b5   : > { %v2198_v52 = vpop.f32.mrf.mxu3 }
 0x6b6   : > { %v7875_v52 = vld [vmem:[#allocation22 + $0x38] sm:$0xf0] }
 0x6b7   : > { %v6657_v6 = vor.u32 %v7875_v52, %v6656_v46  ;;  %v7906_v46 = vld [vmem:[#allocation23 + $0x70] sm:$0xff] }
 0x6b9   : > { %2461 = vmatpush.bf16.msrb.mxu0 %v6657_v6  ;;  %v7897_v6 = vld [vmem:[#allocation23 + $0x28] sm:$0xff] }
 0x6c4   : > { %v2206_v7 = vpop.xlane.xlu0 %2205 }
 0x6c5   : > { %v2219_v9 = vmul.f32 %v9788_v5, %v2206_v7  ;;  %v6664_v7 = vld [vmem:[#allocation22 + $0x38] sm:$0xf] }
 0x6c7   : > { %v9791_v11 = vsub.f32 %v2200_v49, %v2219_v9  ;;  %v6689_v49 = vor.u32 %v7882_v47, %v6688_v45  ;;  %v7876_v9 = vld [vmem:[#allocation22 + $0x40] sm:$0xf0] }
 0x6c9   : > { %v2225_v43 = vmul.f32 %v9791_v11, %v9791_v11  ;;  %2495 = vmatpush.bf16.msra.mxu2 %v6689_v49 }
 0x6cb   : > { %2228 = vadd.xlane.f32.xlu0 %v2225_v43  ;;  %v6661_v43 = vor.u32 %v7874_v2, %v6658_v3  ;;  %v7914_v2 = vld [vmem:[#allocation23 + $0xb0] sm:$0xff]  ;;  %v7905_v3 = vld [vmem:[#allocation23 + $0x68] sm:$0xff] }
 0x6cc   : > { %v2208_v14 = vpop.xlane.xlu1 %2207 }
 0x6cd   : > { %v2220_v51 = vmul.f32 %v9788_v5, %v2208_v14  ;;  %2496 = vmatpush.bf16.msra.mxu2 %v6677_v63  ;;  %v6665_v14 = vor.u32 %v7876_v9, %v6664_v7  ;;  %v7915_v63 = vld [vmem:[#allocation23 + $0xb8] sm:$0xff]  ;;  %v7913_v7 = vld [vmem:[#allocation23 + $0xa8] sm:$0xff]  ;;  %v7896_v9 = vld [vmem:[#allocation23 + $0x20] sm:$0xff] }
 0x6cf   : > { %v9796_v12 = vsub.f32 %v2201_v55, %v2220_v51  ;;  %v7877_v55 = vld [vmem:[#allocation22 + $0x4c] sm:$0xf]  ;;  %v6644_v51 = vld [vmem:[#allocation22 + $0x18] sm:$0xf] }
 0x6d1   : > { %v2226_v16 = vmul.f32 %v9796_v12, %v9796_v12  ;;  %2497 = vmatpush.bf16.msra.mxu2 %v6665_v14 }
 0x6d3   : > { %2230 = vadd.xlane.f32.xlu2 %v2226_v16  ;;  %v7872_v16 = vld [vmem:[#allocation22 + $0x20] sm:$0xf0] }
 0x6d4   : > { %v6645_v20 = vor.u32 %v7872_v16, %v6644_v51 }
 0x6d6   : > { %2462 = vmatpush.bf16.msrb.mxu0 %v6645_v20 }
 0x6da   : > { %2463 = vmatpush.bf16.msrb.mxu0 %v6633_v28  ;;  %v7902_v28 = vld [vmem:[#allocation23 + $0x50] sm:$0xff] }
 0x6de   : > { %2739 = vmatpush.bf16.msra.mxu0 %v7907_v58 }
 0x6e2   : > { %2740 = vmatpush.bf16.msra.mxu0 %v7906_v46 }
 0x6e6   : > { %2741 = vmatpush.bf16.msra.mxu0 %v7905_v3 }
 0x726   : > { %v2211_v62 = vpop.xlane.xlu0 %2210 }
 0x727   : > { %v2221_v25 = vmul.f32 %v9788_v5, %v2211_v62  ;;  %v6653_v62 = vor.u32 %v7873_v13, %v6652_v35 }
 0x729   : > { %v9801_v17 = vsub.f32 %v2202_v61, %v2221_v25  ;;  %v6673_v61 = vor.u32 %v7877_v55, %v6670_v56  ;;  %v7868_v25 = vld [vmem:[#allocation22 + $0x4] sm:$0xf]  ;;  %2498 = vmatpush.bf16.msra.mxu2 %v6653_v62 }
 0x72a   : > { %v6637_v30 = vor.u32 %v7868_v25, %v6634_v48  ;;  %v7912_v25 = vld [vmem:[#allocation23 + $0xa0] sm:$0xff]  ;;  %v7893_v48 = vld [vmem:[#allocation23 + $0x8] sm:$0xff] }
 0x72b   : > { %v2227_v34 = vmul.f32 %v9801_v17, %v9801_v17  ;;  %2478 = vmatpush.bf16.msra.mxu1 %v6673_v61 }
 0x72d   : > { %v2232_v38 = vsel %vm949_vm0, %v2227_v34, 0.0  ;;  %2499 = vmatpush.bf16.msra.mxu2 %v6641_v32  ;;  %v7909_v32 = vld [vmem:[#allocation23 + $0x88] sm:$0xff] }
 0x72e   : > { %2233 = vadd.xlane.f32.xlu0 %v2232_v38 }
 0x72f   : > { %2479 = vmatpush.bf16.msra.mxu1 %v6661_v43  ;;  %v7904_v43 = vld [vmem:[#allocation23 + $0x60] sm:$0xff] }
 0x730   : > { %2742 = vmatpush.bf16.msra.mxu0 %v7904_v43 }
 0x733   : > { %2480 = vmatpush.bf16.msra.mxu1 %v6649_v60 }
 0x734   : > { %2743 = vmatpush.bf16.msra.mxu0 %v7903_v23 }
 0x737   : > { %2481 = vmatpush.bf16.msra.mxu1 %v6637_v30  ;;  %v7892_v30 = vld [vmem:[#allocation23] sm:$0xff] }
 0x738   : > { %2744 = vmatpush.bf16.msra.mxu0 %v7902_v28 }
 0x73b   : > { %2757 = vmatpush.bf16.msrb.mxu1 %v7915_v63 }
 0x73c   : > { %2745 = vmatpush.bf16.msra.mxu0 %v7901_v26 }
 0x73e   : > { %v2229_v21 = vpop.xlane.xlu0 %2228 }
 0x73f   : > { %v2235_v27 = vmul.f32 %v2229_v21, %v9788_v5  ;;  %2758 = vmatpush.bf16.msrb.mxu1 %v7914_v2 }
 0x741   : > { %v2238_v31 = vadd.f32 1e-05, %v2235_v27  ;;  %v7894_v27 = vld [vmem:[#allocation23 + $0x10] sm:$0xff] }
 0x743   : > { %8454 = vrsqrt.f32 %v2238_v31  ;;  %vm2247_vm14 = vweird.f32 %v2238_v31  ;;  %2759 = vmatpush.bf16.msrb.mxu1 %v7913_v7 }
 0x746   : > { %v2231_v33 = vpop.xlane.xlu2 %2230 }
 0x747   : > { %v2236_v34 = vmul.f32 %v2231_v33, %v9788_v5  ;;  %2760 = vmatpush.bf16.msrb.mxu1 %v7912_v25  ;;  %v7908_v33 = vld [vmem:[#allocation23 + $0x80] sm:$0xff] }
 0x749   : > { %v8455_v19 = vpop.eup %8454  ;;  %v2239_v36 = vadd.f32 1e-05, %v2236_v34  ;;  %v2320_v34 = vld [vmem:[%s10348_s29] sm:$0x7] }
 0x74a   : > { %v2242_v24 = vmul.f32 %v8455_v19, %v2238_v31  ;;  %vm2248_vm13 = vweird.f32 %v8455_v19  ;;  %v7900_v31 = vld [vmem:[#allocation23 + $0x40] sm:$0xff] }
 0x74b   : > { %8456 = vrsqrt.f32 %v2239_v36  ;;  %vm2249_vm15 = vmor %vm2247_vm14, %vm2248_vm13  ;;  %vm2257_vm6 = vweird.f32 %v2239_v36  ;;  %2746 = vmatpush.bf16.msra.mxu0 %v7900_v31 }
 0x74c   : > { %v2243_v38 = vmul.f32 %v8455_v19, %v2242_v24  ;;  %v2322_v24 = vperm.slane %v2320_v34, 0 }
 0x74e   : > { %v2244_v39 = vmul.f32 0.5, %v2243_v38  ;;  %v2323_v38 = vperm.slane %v2320_v34, 1 }
 0x750   : > { %v2245_v40 = vsub.f32 1.5, %v2244_v39 }
 0x751   : > { %v8457_v29 = vpop.eup %8456 }
 0x752   : > { %v2246_v41 = vmul.f32 %v8455_v19, %v2245_v40  ;;  %v2252_v1 = vmul.f32 %v8457_v29, %v2239_v36  ;;  %vm2258_vm1 = vweird.f32 %v8457_v29 }
 0x753   : > { %vm2259_vm7 = vmor %vm2257_vm6, %vm2258_vm1 }
 0x754   : > { %v2253_v42 = vmul.f32 %v8457_v29, %v2252_v1  ;;  %v2250_v50 = vsel %vm2249_vm15, %v8455_v19, %v2246_v41 }
 0x755   : > { %v2271_v18 = vmul.f32 %v2250_v50, %v9791_v11 }
 0x756   : > { %v2254_v0 = vmul.f32 0.5, %v2253_v42 }
 0x757   : > { %v2277_v49 = vmul.f32 %v8393_v8, %v2271_v18 }
 0x758   : > { %v2255_v10 = vsub.f32 1.5, %v2254_v0  ;;  %v2324_v0 = vperm.slane %v2320_v34, 2 }
 0x759   : > { %v9810_v55 = vadd.f32 %v8394_v53, %v2277_v49 }
 0x75a   : > { %v2256_v45 = vmul.f32 %v8457_v29, %v2255_v10 }
 0x75c   : > { %v2260_v47 = vsel %vm2259_vm7, %v8457_v29, %v2256_v45 }
 0x75d   : > { %v2272_v4 = vmul.f32 %v2260_v47, %v9796_v12  ;;  %v7898_v12 = vld [vmem:[#allocation23 + $0x30] sm:$0xff] }
 0x75e   : > { %2722 = vmatpush.bf16.msra.mxu3 %v7898_v12 }
 0x75f   : > { %v2278_v54 = vmul.f32 %v8393_v8, %v2272_v4 }
 0x761   : > { %v9812_v15 = vadd.f32 %v8394_v53, %v2278_v54 }
 0x762   : > { %2723 = vmatpush.bf16.msra.mxu3 %v7897_v6 }
 0x763   : > { %v2286_v56 = vpack.c.bf16 %v9812_v15, %v9810_v55 }
 0x765   : > { %2464 = vmatmul.bf16.vlgmr.msrb.gmra.mxu0 %v2286_v56  ;;  %2482 = vmatmul.bf16.vlgmr.msra.gmra.mxu1 %v2286_v56 }
 0x766   : > { %2500 = vmatmul.bf16.vlgmr.msra.gmra.mxu2 %v2286_v56  ;;  %2724 = vmatpush.bf16.msra.mxu3 %v7896_v9 }
 0x76a   : > { %2725 = vmatpush.bf16.msra.mxu3 %v7895_v22 }
 0x76e   : > { %2726 = vmatpush.bf16.msra.mxu3 %v7894_v27 }
 0x772   : > { %2727 = vmatpush.bf16.msra.mxu3 %v7893_v48 }
 0x776   : > { %2728 = vmatpush.bf16.msra.mxu3 %v7892_v30 }
 0x7a1   : > { %v2234_v11 = vpop.xlane.xlu0 %2233 }
 0x7a2   : > { %v2237_v61 = vmul.f32 %v2234_v11, %v9788_v5 }
 0x7a4   : > { %v2240_v52 = vadd.f32 1e-05, %v2237_v61 }
 0x7a6   : > { %8458 = vrsqrt.f32 %v2240_v52  ;;  %vm2267_vm9 = vweird.f32 %v2240_v52 }
 0x7ac   : > { %v8459_v14 = vpop.eup %8458 }
 0x7ad   : > { %v2262_v51 = vmul.f32 %v8459_v14, %v2240_v52  ;;  %vm2268_vm8 = vweird.f32 %v8459_v14 }
 0x7ae   : > { %vm2269_vm12 = vmor %vm2267_vm9, %vm2268_vm8 }
 0x7af   : > { %v2263_v16 = vmul.f32 %v8459_v14, %v2262_v51 }
 0x7b1   : > { %v2264_v44 = vmul.f32 0.5, %v2263_v16 }
 0x7b3   : > { %v2265_v20 = vsub.f32 1.5, %v2264_v44  ;;  %v8395_v44 = vld [vmem:[%s10349_s11] ss:$0 sm:$0xff] }
 0x7b5   : > { %v2266_v37 = vmul.f32 %v8459_v14, %v2265_v20 }
 0x7b7   : > { %v2270_v35 = vsel %vm2269_vm12, %v8459_v14, %v2266_v37 }
 0x7b8   : > { %v2273_v13 = vmul.f32 %v2270_v35, %v9801_v17  ;;  %v7911_v17 = vld [vmem:[#allocation23 + $0x98] sm:$0xff] }
 0x7b9   : > { %2761 = vmatpush.bf16.msrb.mxu1 %v7911_v17 }
 0x7ba   : > { %v2279_v21 = vmul.f32 %v8393_v8, %v2273_v13 }
 0x7bc   : > { %v9818_v60 = vadd.f32 %v8394_v53, %v2279_v21 }
 0x7bd   : > { %2762 = vmatpush.bf16.msrb.mxu1 %v7910_v59 }
 0x7be   : > { %v2287_v62 = vpack.c.bf16 %v9818_v60, %v9818_v60 }
 0x7c0   : > { %2469 = vmatmul.bf16.gmra.mxu0 %v2287_v62  ;;  %2487 = vmatmul.bf16.gmra.mxu1 %v2287_v62 }
 0x7c1   : > { %2505 = vmatmul.bf16.gmra.mxu2 %v2287_v62  ;;  %2763 = vmatpush.bf16.msrb.mxu1 %v7909_v32 }
 0x7c5   : > { %2764 = vmatpush.bf16.msrb.mxu1 %v7908_v33 }
 0x7e2   : > { %v2465_v19 = vpop.f32.mrf.mxu0  ;;  %v2483_v36 = vpop.f32.mrf.mxu1 }
 0x7e3   : > { %v2466_v39 = vadd.f32 %v2465_v19, %v2322_v24  ;;  %v2484_v40 = vadd.f32 %v2483_v36, %v2323_v38 }
 0x7e5   : > { %v2510_v10 = vmax.f32 %v2466_v39, 0.0  ;;  %v2511_v18 = vmax.f32 %v2484_v40, 0.0 }
 0x7e9   : > { %v2501_v29 = vpop.f32.mrf.mxu2 }
 0x7ea   : > { %v2467_v41 = vpop.f32.mrf.mxu0  ;;  %v2485_v1 = vpop.f32.mrf.mxu1  ;;  %v2502_v49 = vadd.f32 %v2501_v29, %v2324_v0 }
 0x7eb   : > { %v2468_v42 = vadd.f32 %v2467_v41, %v2322_v24  ;;  %v2486_v50 = vadd.f32 %v2485_v1, %v2323_v38 }
 0x7ec   : > { %v2512_v56 = vmax.f32 %v2502_v49, 0.0 }
 0x7ed   : > { %v2513_v8 = vmax.f32 %v2468_v42, 0.0  ;;  %v2514_v45 = vmax.f32 %v2486_v50, 0.0 }
 0x7ef   : > { %v2519_v47 = vpack.c.bf16 %v2513_v8, %v2510_v10  ;;  %v2520_v4 = vpack.c.bf16 %v2514_v45, %v2511_v18  ;;  %v6909_v45 = vld [vmem:[#allocation14 + $0x168] sm:$0xf] }
 0x7f1   : > { %v2503_v53 = vpop.f32.mrf.mxu2  ;;  %2729 = vmatmul.bf16.vlgmr.msra.gmra.mxu3 %v2519_v47  ;;  %2747 = vmatmul.bf16.vlgmr.msra.gmra.mxu0 %v2520_v4  ;;  %v7938_v47 = vld [vmem:[#allocation14 + $0x170] sm:$0xf0]  ;;  %v7937_v4 = vld [vmem:[#allocation14 + $0x16c] sm:$0xf] }
 0x7f2   : > { %v2504_v54 = vadd.f32 %v2503_v53, %v2324_v0  ;;  %v6910_v49 = vor.u32 %v7938_v47, %v6909_v45  ;;  %v6911_v53 = vld [vmem:[#allocation14 + $0x174] sm:$0xf0]  ;;  %v7921_v45 = vld [vmem:[#allocation14 + $0xe8] sm:$0xf0] }
 0x7f4   : > { %v2515_v11 = vmax.f32 %v2504_v54, 0.0  ;;  %v6917_v54 = vld [vmem:[#allocation14 + $0x170] sm:$0xf]  ;;  %3026 = vmatpush.bf16.msrb.mxu2 %v6910_v49 }
 0x7f6   : > { %v2521_v57 = vpack.c.bf16 %v2515_v11, %v2512_v56  ;;  %v7939_v56 = vld [vmem:[#allocation14 + $0x178] sm:$0xf0]  ;;  %v6914_v11 = vor.u32 %v7937_v4, %v6911_v53  ;;  %v6825_v53 = vld [vmem:[#allocation14 + $0xc0] sm:$0xf] }
 0x7f8   : > { %2765 = vmatmul.bf16.vlgmr.msrb.gmra.mxu1 %v2521_v57  ;;  %v6918_v57 = vor.u32 %v7939_v56, %v6917_v54  ;;  %3044 = vmatpush.bf16.msrb.mxu3 %v6914_v11  ;;  %v7917_v54 = vld [vmem:[#allocation14 + $0xc8] sm:$0xf0]  ;;  %v7916_v56 = vld [vmem:[#allocation14 + $0xc4] sm:$0xf] }
 0x7fa   : > { %3062 = vmatpush.bf16.msrb.mxu0 %v6918_v57  ;;  %v6826_v57 = vor.u32 %v7917_v54, %v6825_v53 }
 0x83d   : > { %v2470_v58 = vpop.f32.mrf.mxu0  ;;  %v2488_v61 = vpop.f32.mrf.mxu1 }
 0x83e   : > { %v2471_v63 = vadd.f32 %v2470_v58, %v2322_v24  ;;  %v2489_v12 = vadd.f32 %v2488_v61, %v2323_v38  ;;  %v6897_v58 = vld [vmem:[#allocation14 + $0x150] sm:$0xf]  ;;  %v7935_v61 = vld [vmem:[#allocation14 + $0x158] sm:$0xf0] }
 0x840   : > { %v2516_v46 = vmax.f32 %v2471_v63, 0.0  ;;  %v2517_v52 = vmax.f32 %v2489_v12, 0.0  ;;  %v7934_v63 = vld [vmem:[#allocation14 + $0x154] sm:$0xf]  ;;  %v6898_v12 = vor.u32 %v7935_v61, %v6897_v58  ;;  %v6827_v58 = vld [vmem:[#allocation14 + $0xcc] sm:$0xf0] }
 0x841   : > { %v6833_v61 = vld [vmem:[#allocation14 + $0xc8] sm:$0xf] }
 0x842   : > { %v2522_v2 = vpack.c.bf16 %v2516_v46, %v2516_v46  ;;  %v2523_v6 = vpack.c.bf16 %v2517_v52, %v2517_v52  ;;  %v6899_v46 = vld [vmem:[#allocation14 + $0x15c] sm:$0xf0]  ;;  %v6905_v52 = vld [vmem:[#allocation14 + $0x158] sm:$0xf]  ;;  %3027 = vmatpush.bf16.msrb.mxu2 %v6898_v12  ;;  %v6830_v12 = vor.u32 %v7916_v56, %v6827_v58 }
 0x844   : > { %v2506_v3 = vpop.f32.mrf.mxu2  ;;  %2734 = vmatmul.bf16.gmra.mxu3 %v2522_v2  ;;  %2752 = vmatmul.bf16.gmra.mxu0 %v2523_v6  ;;  %v7936_v2 = vld [vmem:[#allocation14 + $0x160] sm:$0xf0]  ;;  %v6902_v6 = vor.u32 %v7934_v63, %v6899_v46  ;;  %v7918_v63 = vld [vmem:[#allocation14 + $0xd0] sm:$0xf0] }
 0x845   : > { %v2507_v7 = vadd.f32 %v2506_v3, %v2324_v0  ;;  %v2472_v9 = vpop.f32.mrf.mxu0  ;;  %v2490_v43 = vpop.f32.mrf.mxu1  ;;  %v6906_v3 = vor.u32 %v7936_v2, %v6905_v52  ;;  %v6834_v46 = vor.u32 %v7918_v63, %v6833_v61 }
 0x846   : > { %3045 = vmatpush.bf16.msrb.mxu3 %v6902_v6  ;;  %v7932_v9 = vld [vmem:[#allocation14 + $0x140] sm:$0xf0]  ;;  %v7931_v43 = vld [vmem:[#allocation14 + $0x13c] sm:$0xf] }
 0x847   : > { %v2518_v14 = vmax.f32 %v2507_v7, 0.0  ;;  %3063 = vmatpush.bf16.msrb.mxu0 %v6906_v3  ;;  %v6885_v7 = vld [vmem:[#allocation14 + $0x138] sm:$0xf] }
 0x849   : > { %v2524_v51 = vpack.c.bf16 %v2518_v14, %v2518_v14  ;;  %v6886_v14 = vor.u32 %v7932_v9, %v6885_v7 }
 0x84b   : > { %2770 = vmatmul.bf16.gmra.mxu1 %v2524_v51  ;;  %v6887_v51 = vld [vmem:[#allocation14 + $0x144] sm:$0xf0]  ;;  %3028 = vmatpush.bf16.msrb.mxu2 %v6886_v14 }
 0x84c   : > { %v2508_v16 = vpop.f32.mrf.mxu2 }
 0x84d   : > { %v6893_v16 = vld [vmem:[#allocation14 + $0x140] sm:$0xf] }
 0x86e   : > { %v2748_v20 = vpop.f32.mrf.mxu0 }
 0x874   : > { %v2730_v37 = vpop.f32.mrf.mxu3 }
 0x875   : > { %v2731_v35 = vadd.f32 %v8395_v44, %v2730_v37  ;;  %v2766_v13 = vpop.f32.mrf.mxu1 }
 0x876   : > { %v2750_v27 = vpop.f32.mrf.mxu0 }
 0x877   : > { %v2749_v21 = vadd.f32 %v2748_v20, %v2731_v35  ;;  %v6890_v20 = vor.u32 %v7931_v43, %v6887_v51  ;;  %v6873_v35 = vld [vmem:[#allocation14 + $0x120] sm:$0xf] }
 0x879   : > { %v2767_v62 = vadd.f32 %v2766_v13, %v2749_v21  ;;  %3046 = vmatpush.bf16.msrb.mxu3 %v6890_v20  ;;  %v7929_v13 = vld [vmem:[#allocation14 + $0x128] sm:$0xf0]  ;;  %v7928_v21 = vld [vmem:[#allocation14 + $0x124] sm:$0xf] }
 0x87b   : > { %v2775_v22 = vadd.f32 %v2767_v62, %v9810_v55  ;;  %v6874_v62 = vor.u32 %v7929_v13, %v6873_v35 }
 0x87c   : > { %v2732_v23 = vpop.f32.mrf.mxu3 }
 0x87d   : > { %v2733_v25 = vadd.f32 %v8395_v44, %v2732_v23  ;;  %2780 = vadd.xlane.f32.xlu0 %v2775_v22  ;;  %v2768_v17 = vpop.f32.mrf.mxu1  ;;  %v6881_v23 = vld [vmem:[#allocation14 + $0x128] sm:$0xf]  ;;  %3029 = vmatpush.bf16.msrb.mxu2 %v6874_v62 }
 0x87f   : > { %v2751_v28 = vadd.f32 %v2750_v27, %v2733_v25  ;;  %v7930_v25 = vld [vmem:[#allocation14 + $0x130] sm:$0xf0] }
 0x881   : > { %v2769_v48 = vadd.f32 %v2768_v17, %v2751_v28  ;;  %v6882_v28 = vor.u32 %v7930_v25, %v6881_v23  ;;  %v6861_v17 = vld [vmem:[#allocation14 + $0x108] sm:$0xf] }
 0x883   : > { %v2776_v26 = vadd.f32 %v2769_v48, %v9812_v15  ;;  %v7926_v48 = vld [vmem:[#allocation14 + $0x110] sm:$0xf0] }
 0x885   : > { %2782 = vadd.xlane.f32.xlu0 %v2776_v26 }
 0x8c1   : > { %v2753_v59 = vpop.f32.mrf.mxu0 }
 0x8c7   : > { %v2735_v30 = vpop.f32.mrf.mxu3 }
 0x8c8   : > { %v2736_v31 = vadd.f32 %v8395_v44, %v2735_v30  ;;  %v2771_v32 = vpop.f32.mrf.mxu1  ;;  %v7933_v44 = vld [vmem:[#allocation14 + $0x148] sm:$0xf0]  ;;  %v6863_v30 = vld [vmem:[#allocation14 + $0x114] sm:$0xf0] }
 0x8c9   : > { %v2755_v33 = vpop.f32.mrf.mxu0  ;;  %v6894_v37 = vor.u32 %v7933_v44, %v6893_v16 }
 0x8ca   : > { %v2754_v34 = vadd.f32 %v2753_v59, %v2736_v31  ;;  %v6862_v59 = vor.u32 %v7926_v48, %v6861_v17  ;;  %v6869_v31 = vld [vmem:[#allocation14 + $0x110] sm:$0xf]  ;;  %v8397_v17 = vld [vmem:[#allocation25] ss:$0 sm:$0xff] }
 0x8cb   : > { %3064 = vmatpush.bf16.msrb.mxu0 %v6894_v37 }
 0x8cc   : > { %v2772_v19 = vadd.f32 %v2771_v32, %v2754_v34  ;;  %v7927_v32 = vld [vmem:[#allocation14 + $0x118] sm:$0xf0]  ;;  %3030 = vmatpush.bf16.msrb.mxu2 %v6862_v59 }
 0x8cd   : > { %v6870_v34 = vor.u32 %v7927_v32, %v6869_v31 }
 0x8ce   : > { %v2777_v36 = vadd.f32 %v2772_v19, %v9818_v60  ;;  %v6849_v19 = vld [vmem:[#allocation14 + $0xf0] sm:$0xf] }
 0x8cf   : > { %v2737_v55 = vpop.f32.mrf.mxu3  ;;  %3065 = vmatpush.bf16.msrb.mxu0 %v6882_v28 }
 0x8d0   : > { %v2773_v24 = vpop.f32.mrf.mxu1  ;;  %v2784_v38 = vsel %vm949_vm0, %v2777_v36, 0.0  ;;  %v7922_v55 = vld [vmem:[#allocation14 + $0xf4] sm:$0xf] }
 0x8d1   : > { %2785 = vadd.xlane.f32.xlu1 %v2784_v38  ;;  %v6851_v38 = vld [vmem:[#allocation14 + $0xfc] sm:$0xf0] }
 0x8d3   : > { %3066 = vmatpush.bf16.msrb.mxu0 %v6870_v34 }
 0x8f0   : > { %v2781_v39 = vpop.xlane.xlu0 %2780 }
 0x8f1   : > { %v2787_v40 = vmul.f32 %v2781_v39, %v9788_v5  ;;  %v6857_v39 = vld [vmem:[#allocation14 + $0xf8] sm:$0xf] }
 0x8f3   : > { %v9833_v29 = vsub.f32 %v2775_v22, %v2787_v40  ;;  %v6875_v22 = vld [vmem:[#allocation14 + $0x12c] sm:$0xf0]  ;;  %v7924_v40 = vld [vmem:[#allocation14 + $0x100] sm:$0xf0] }
 0x8f4   : > { %v6878_v27 = vor.u32 %v7928_v21, %v6875_v22  ;;  %v8396_v22 = vld [vmem:[%s10350_s22] ss:$0 sm:$0xff] }
 0x8f5   : > { %v2793_v15 = vmul.f32 %v9833_v29, %v9833_v29 }
 0x8f6   : > { %3047 = vmatpush.bf16.msrb.mxu3 %v6878_v27 }
 0x8f7   : > { %2796 = vadd.xlane.f32.xlu0 %v2793_v15  ;;  %v6854_v15 = vor.u32 %v7922_v55, %v6851_v38 }
 0x8f8   : > { %v2783_v41 = vpop.xlane.xlu0 %2782 }
 0x8f9   : > { %v2788_v1 = vmul.f32 %v2783_v41, %v9788_v5  ;;  %v6858_v41 = vor.u32 %v7924_v40, %v6857_v39 }
 0x8fb   : > { %v9838_v42 = vsub.f32 %v2776_v26, %v2788_v1  ;;  %v7925_v26 = vld [vmem:[#allocation14 + $0x10c] sm:$0xf]  ;;  %3067 = vmatpush.bf16.msrb.mxu0 %v6858_v41  ;;  %v6837_v1 = vld [vmem:[#allocation14 + $0xd8] sm:$0xf]  ;;  %v6822_v41 = vld [vmem:[%s10341_s24 + $0x3] sm:$0x7] }
 0x8fc   : > { %v6866_v33 = vor.u32 %v7925_v26, %v6863_v30 }
 0x8fd   : > { %v2794_v60 = vmul.f32 %v9838_v42, %v9838_v42 }
 0x8fe   : > { %3048 = vmatpush.bf16.msrb.mxu3 %v6866_v33 }
 0x8ff   : > { %2798 = vadd.xlane.f32.xlu1 %v2794_v60  ;;  %v7920_v60 = vld [vmem:[#allocation14 + $0xe0] sm:$0xf0] }
 0x902   : > { %3049 = vmatpush.bf16.msrb.mxu3 %v6854_v15 }
 0x944   : > { %v2786_v50 = vpop.xlane.xlu1 %2785 }
 0x945   : > { %v2789_v0 = vmul.f32 %v2786_v50, %v9788_v5  ;;  %v7919_v50 = vld [vmem:[#allocation14 + $0xdc] sm:$0xf] }
 0x947   : > { %v9843_v10 = vsub.f32 %v2777_v36, %v2789_v0  ;;  %v7923_v36 = vld [vmem:[#allocation14 + $0xf8] sm:$0xf0]  ;;  %v6838_v0 = vor.u32 %v7920_v60, %v6837_v1  ;;  %v2892_v1 = vperm.slane %v6822_v41, 0 }
 0x948   : > { %v6850_v24 = vor.u32 %v7923_v36, %v6849_v19 }
 0x949   : > { %v2795_v18 = vmul.f32 %v9843_v10, %v9843_v10 }
 0x94a   : > { %3031 = vmatpush.bf16.msrb.mxu2 %v6850_v24 }
 0x94b   : > { %v2800_v8 = vsel %vm949_vm0, %v2795_v18, 0.0  ;;  %v6839_v18 = vld [vmem:[#allocation14 + $0xe4] sm:$0xf0] }
 0x94c   : > { %2801 = vadd.xlane.f32.xlu0 %v2800_v8  ;;  %v6845_v8 = vld [vmem:[#allocation14 + $0xe0] sm:$0xf]  ;;  %v6842_v4 = vor.u32 %v7919_v50, %v6839_v18 }
 0x94d   : > { %v6846_v49 = vor.u32 %v7921_v45, %v6845_v8 }
 0x94e   : > { %3032 = vmatpush.bf16.msrb.mxu2 %v6838_v0  ;;  %3050 = vmatpush.bf16.msrb.mxu3 %v6842_v4  ;;  %v2893_v0 = vperm.slane %v6822_v41, 1 }
 0x94f   : > { %3068 = vmatpush.bf16.msrb.mxu0 %v6846_v49 }
 0x952   : > { %3033 = vmatpush.bf16.msrb.mxu2 %v6826_v57  ;;  %3051 = vmatpush.bf16.msrb.mxu3 %v6830_v12 }
 0x953   : > { %3069 = vmatpush.bf16.msrb.mxu0 %v6834_v46 }
 0x96a   : > { %v2797_v47 = vpop.xlane.xlu0 %2796 }
 0x96b   : > { %v2803_v11 = vmul.f32 %v2797_v47, %v9788_v5 }
 0x96d   : > { %v2806_v52 = vadd.f32 1e-05, %v2803_v11 }
 0x96f   : > { %8460 = vrsqrt.f32 %v2806_v52  ;;  %vm2815_vm14 = vweird.f32 %v2806_v52 }
 0x972   : > { %v2799_v2 = vpop.xlane.xlu1 %2798 }
 0x973   : > { %v2804_v6 = vmul.f32 %v2799_v2, %v9788_v5 }
 0x975   : > { %v8461_v3 = vpop.eup %8460  ;;  %v2807_v7 = vadd.f32 1e-05, %v2804_v6 }
 0x976   : > { %v2810_v9 = vmul.f32 %v8461_v3, %v2806_v52  ;;  %vm2816_vm13 = vweird.f32 %v8461_v3 }
 0x977   : > { %8462 = vrsqrt.f32 %v2807_v7  ;;  %vm2817_vm15 = vmor %vm2815_vm14, %vm2816_vm13  ;;  %vm2825_vm6 = vweird.f32 %v2807_v7 }
 0x978   : > { %v2811_v43 = vmul.f32 %v8461_v3, %v2810_v9 }
 0x97a   : > { %v2812_v14 = vmul.f32 0.5, %v2811_v43 }
 0x97c   : > { %v2813_v51 = vsub.f32 1.5, %v2812_v14 }
 0x97d   : > { %v8463_v16 = vpop.eup %8462 }
 0x97e   : > { %v2814_v44 = vmul.f32 %v8461_v3, %v2813_v51  ;;  %v2820_v20 = vmul.f32 %v8463_v16, %v2807_v7  ;;  %vm2826_vm1 = vweird.f32 %v8463_v16 }
 0x97f   : > { %vm2827_vm7 = vmor %vm2825_vm6, %vm2826_vm1 }
 0x980   : > { %v2821_v37 = vmul.f32 %v8463_v16, %v2820_v20  ;;  %v2818_v35 = vsel %vm2817_vm15, %v8461_v3, %v2814_v44  ;;  %v2894_v3 = vperm.slane %v6822_v41, 2 }
 0x981   : > { %v2839_v62 = vmul.f32 %v2818_v35, %v9833_v29 }
 0x982   : > { %v2822_v13 = vmul.f32 0.5, %v2821_v37 }
 0x983   : > { %v2845_v28 = vmul.f32 %v8396_v22, %v2839_v62 }
 0x984   : > { %v2823_v21 = vsub.f32 1.5, %v2822_v13 }
 0x985   : > { %v9855_v26 = vadd.f32 %v8397_v17, %v2845_v28 }
 0x986   : > { %v2824_v23 = vmul.f32 %v8463_v16, %v2823_v21 }
 0x988   : > { %v2828_v25 = vsel %vm2827_vm7, %v8463_v16, %v2824_v23 }
 0x989   : > { %v2840_v27 = vmul.f32 %v2828_v25, %v9838_v42 }
 0x98b   : > { %v2846_v48 = vmul.f32 %v8396_v22, %v2840_v27 }
 0x98d   : > { %v9857_v59 = vadd.f32 %v8397_v17, %v2846_v48 }
 0x98f   : > { %v2854_v29 = vpack.c.bf16 %v9857_v59, %v9855_v26 }
 0x991   : > { %3034 = vmatmul.bf16.vlgmr.msrb.gmra.mxu2 %v2854_v29  ;;  %3052 = vmatmul.bf16.vlgmr.msrb.gmra.mxu3 %v2854_v29 }
 0x992   : > { %3070 = vmatmul.bf16.vlgmr.msrb.gmra.mxu0 %v2854_v29 }
 0x9bf   : > { %v2802_v30 = vpop.xlane.xlu0 %2801 }
 0x9c0   : > { %v2805_v31 = vmul.f32 %v2802_v30, %v9788_v5 }
 0x9c2   : > { %v2808_v32 = vadd.f32 1e-05, %v2805_v31 }
 0x9c4   : > { %8464 = vrsqrt.f32 %v2808_v32  ;;  %vm2835_vm9 = vweird.f32 %v2808_v32 }
 0x9ca   : > { %v8465_v33 = vpop.eup %8464 }
 0x9cb   : > { %v2830_v42 = vmul.f32 %v8465_v33, %v2808_v32  ;;  %vm2836_vm8 = vweird.f32 %v8465_v33 }
 0x9cc   : > { %vm2837_vm12 = vmor %vm2835_vm9, %vm2836_vm8 }
 0x9cd   : > { %v2831_v34 = vmul.f32 %v8465_v33, %v2830_v42 }
 0x9cf   : > { %v2832_v19 = vmul.f32 0.5, %v2831_v34 }
 0x9d1   : > { %v2833_v36 = vsub.f32 1.5, %v2832_v19 }
 0x9d3   : > { %v2834_v55 = vmul.f32 %v8465_v33, %v2833_v36 }
 0x9d5   : > { %v2838_v24 = vsel %vm2837_vm12, %v8465_v33, %v2834_v55 }
 0x9d6   : > { %v2841_v38 = vmul.f32 %v2838_v24, %v9843_v10 }
 0x9d8   : > { %v2847_v39 = vmul.f32 %v8396_v22, %v2841_v38 }
 0x9da   : > { %v9863_v40 = vadd.f32 %v8397_v17, %v2847_v39 }
 0x9dc   : > { %v2855_v15 = vpack.c.bf16 %v9863_v40, %v9863_v40 }
 0x9de   : > { %3039 = vmatmul.bf16.gmra.mxu2 %v2855_v15  ;;  %3057 = vmatmul.bf16.gmra.mxu3 %v2855_v15 }
 0x9df   : > { %3075 = vmatmul.bf16.gmra.mxu0 %v2855_v15 }
 0xa0f   : > { %v3071_v2 = vpop.f32.mrf.mxu0 }
 0xa10   : > { %v3072_v14 = vadd.f32 %v3071_v2, %v2894_v3 }
 0xa12   : > { %v3089_v35 = vpack.c.bf16 %v3072_v14, %v3072_v14 }
 0xa14   : > { %v3035_v60 = vpop.f32.mrf.mxu2  ;;  %v3053_v50 = vpop.f32.mrf.mxu3  ;;  %v3215_v17 = vunpack.c.l.b16 %v3089_v35 }
 0xa15   : > { %v3036_v18 = vadd.f32 %v3035_v60, %v2892_v1  ;;  %v3054_v8 = vadd.f32 %v3053_v50, %v2893_v0 }
 0xa17   : > { %v3080_v10 = vmul.f32 0.17677669, %v3036_v18  ;;  %v3086_v4 = vpack.c.bf16 %v3054_v8, %v3054_v8  ;;  %v3073_v6 = vpop.f32.mrf.mxu0 }
 0xa18   : > { %v3074_v7 = vadd.f32 %v3073_v6, %v2894_v3 }
 0xa19   : > { %v3083_v54 = vpack.c.bf16 %v3080_v10, %v3080_v10  ;;  %v3103_v57 = vunpack.c.l.b16 %v3086_v4 }
 0xa1a   : > { %v3090_v16 = vpack.c.bf16 %v3074_v7, %v3074_v7 }
 0xa1b   : > { %v3095_v63 = vunpack.c.l.b16 %v3083_v54 }
 0xa1c   : > { %v3037_v45 = vpop.f32.mrf.mxu2  ;;  %v3055_v47 = vpop.f32.mrf.mxu3  ;;  %v3216_v22 = vunpack.c.l.b16 %v3090_v16 }
 0xa1d   : > { %v3038_v49 = vadd.f32 %v3037_v45, %v2892_v1  ;;  %v3056_v53 = vadd.f32 %v3055_v47, %v2893_v0 }
 0xa1e   : > { %v9876_v30 = vpack.c.b16 %v3216_v22, %v3215_v17 }
 0xa1f   : > { %v3081_v56 = vmul.f32 0.17677669, %v3038_v49  ;;  %v3087_v11 = vpack.c.bf16 %v3056_v53, %v3056_v53 }
 0xa21   : > { %v3084_v58 = vpack.c.bf16 %v3081_v56, %v3081_v56  ;;  %v3104_v61 = vunpack.c.l.b16 %v3087_v11 }
 0xa23   : > { %v3096_v12 = vunpack.c.l.b16 %v3084_v58  ;;  %v3106_v46 = vpack.c.b16 %v3104_v61, %v3103_v57 }
 0xa25   : > { %v3098_v52 = vpack.c.b16 %v3096_v12, %v3095_v63  ;;  %3252 = vrot.lane.b32.xlu2 %v3106_v46, %s9133_s23  ;;  %v3115_v36 = vsel %vm1489_vm2, %v3106_v46, 0 }
 0xa27   : > { %3248 = vrot.lane.b32.xlu0 %v3098_v52, %s9133_s23 }
 0xa5c   : > { %v3076_v9 = vpop.f32.mrf.mxu0 }
 0xa5d   : > { %v3077_v43 = vadd.f32 %v3076_v9, %v2894_v3 }
 0xa5f   : > { %v3091_v51 = vpack.c.bf16 %v3077_v43, %v3077_v43 }
 0xa61   : > { %v3217_v44 = vunpack.c.l.b16 %v3091_v51  ;;  %v3040_v20 = vpop.f32.mrf.mxu2  ;;  %v3058_v37 = vpop.f32.mrf.mxu3 }
 0xa62   : > { %v3041_v13 = vadd.f32 %v3040_v20, %v2892_v1  ;;  %v3059_v21 = vadd.f32 %v3058_v37, %v2893_v0 }
 0xa63   : > { %v9872_v62 = vpack.c.b16 %v3217_v44, %v3217_v44 }
 0xa64   : > { %v3082_v23 = vmul.f32 0.17677669, %v3041_v13  ;;  %v3088_v25 = vpack.c.bf16 %v3059_v21, %v3059_v21  ;;  %v3078_v27 = vpop.f32.mrf.mxu0 }
 0xa65   : > { %v3228_v28 = vsel %vm1611_vm3, %v9872_v62, 0 }
 0xa66   : > { %v3085_v48 = vpack.c.bf16 %v3082_v23, %v3082_v23  ;;  %v3105_v29 = vunpack.c.l.b16 %v3088_v25  ;;  %3236 = vmatpush.bf16.msra.mxu2 %v3228_v28 }
 0xa68   : > { %v3097_v31 = vunpack.c.l.b16 %v3085_v48  ;;  %v3107_v32 = vpack.c.b16 %v3105_v29, %v3105_v29 }
 0xa69   : > { %v3042_v33 = vpop.f32.mrf.mxu2  ;;  %v3060_v42 = vpop.f32.mrf.mxu3 }
 0xa6a   : > { %v3099_v34 = vpack.c.b16 %v3097_v31, %v3097_v31  ;;  %3237 = vmatpush.bf16.msra.mxu2 %v9876_v30  ;;  %3542 = vrot.lane.b32.xlu2 %v3107_v32, %s9135_s5  ;;  %v3118_v19 = vsel %vm1489_vm2, %v3107_v32, 0 }
 0xa6b   : > { %3254 = vrot.lane.b32.xlu1 %v3107_v32, %s9133_s23  ;;  %3126 = vmatpush.bf16.xpose.msra.mxu1 %v3118_v19 }
 0xa6c   : > { %3250 = vrot.lane.b32.xlu0 %v3099_v34, %s9133_s23 }
 0xa72   : > { %3392 = vrot.lane.b32.xlu2 %v3098_v52, %s9134_s28 }
 0xa73   : > { %3398 = vrot.lane.b32.xlu1 %v3107_v32, %s9134_s28  ;;  %3127 = vmatpush.bf16.xpose.msra.mxu1 %v3115_v36 }
 0xa74   : > { %3540 = vrot.lane.b32.xlu0 %v3106_v46, %s9135_s5 }
 0xa7a   : > { %6919 = vmatmul.msk.bf16.vlgmr.msra.gmra.mxu1 %vm1489_vm2, %v3098_v52  ;;  %3538 = vrot.lane.b32.xlu2 %v3099_v34, %s9135_s5 }
 0xa7b   : > { %3396 = vrot.lane.b32.xlu1 %v3106_v46, %s9134_s28 }
 0xa7c   : > { %3394 = vrot.lane.b32.xlu0 %v3099_v34, %s9134_s28 }
 0xa7f   : > { %v3253_v24 = vpop.permute.xlu2 %3252 }
 0xa80   : > { %v3263_v60 = vsel %vm1489_vm2, %v3253_v24, 0 }
 0xa83   : > { %3536 = vrot.lane.b32.xlu1 %v3098_v52, %s9135_s5 }
 0xa8a   : > { %6920 = vmatmul.msk.bf16.gmra.mxu1 %vm1489_vm2, %v3099_v34 }
 0xa99   : > { %v3249_v55 = vpop.permute.xlu0 %3248 }
 0xac4   : > { %v3543_v41 = vpop.permute.xlu2 %3542 }
 0xac5   : > { %v3554_v0 = vsel %vm1489_vm2, %v3543_v41, 0 }
 0xacc   : > { %v3393_v47 = vpop.permute.xlu2 %3392 }
 0xad4   : > { %v3539_v63 = vpop.permute.xlu2 %3538 }
 0xadd   : > { %v3255_v38 = vpop.permute.xlu1 %3254 }
 0xade   : > { %v3266_v39 = vsel %vm1489_vm2, %v3255_v38, 0  ;;  %v3251_v15 = vpop.permute.xlu0 %3250 }
 0xadf   : > { %3274 = vmatpush.bf16.xpose.msra.mxu3 %v3266_v39 }
 0xae5   : > { %v3399_v1 = vpop.permute.xlu1 %3398 }
 0xae6   : > { %v3410_v50 = vsel %vm1489_vm2, %v3399_v1, 0  ;;  %v3541_v18 = vpop.permute.xlu0 %3540 }
 0xae7   : > { %3275 = vmatpush.bf16.xpose.msra.mxu3 %v3263_v60  ;;  %3418 = vmatpush.bf16.xpose.msrb.mxu1 %v3410_v50  ;;  %v3551_v45 = vsel %vm1489_vm2, %v3541_v18, 0 }
 0xaed   : > { %v3397_v8 = vpop.permute.xlu1 %3396 }
 0xaee   : > { %v3407_v10 = vsel %vm1489_vm2, %v3397_v8, 0  ;;  %6923 = vmatmul.msk.bf16.vlgmr.msra.gmra.mxu3 %vm1489_vm2, %v3249_v55  ;;  %v3395_v56 = vpop.permute.xlu0 %3394 }
 0xaef   : > { %3562 = vmatpush.bf16.xpose.msrb.mxu3 %v3554_v0  ;;  %3419 = vmatpush.bf16.xpose.msrb.mxu1 %v3407_v10 }
 0xaf5   : > { %v3537_v58 = vpop.permute.xlu1 %3536 }
 0xaf6   : > { %6927 = vmatmul.msk.bf16.vlgmr.msrb.gmra.mxu1 %vm1489_vm2, %v3393_v47 }
 0xaf7   : > { %3563 = vmatpush.bf16.xpose.msrb.mxu3 %v3551_v45  ;;  %v3129_v4 = vpop.f32.mrf.mxu1 }
 0xaf8   : > { %v3138_v49 = vsel %vm1520_vm4, %v3129_v4, -inf }
 0xaf9   : > { %3139 = vmax.xlane.f32.xlu1 %v3138_v49 }
 0xafe   : > { %6924 = vmatmul.msk.bf16.gmra.mxu3 %vm1489_vm2, %v3251_v15 }
 0xaff   : > { %v3131_v53 = vpop.f32.mrf.mxu1 }
 0xb00   : > { %v3141_v54 = vsel %vm1520_vm4, %v3131_v53, -inf }
 0xb01   : > { %3142 = vmax.xlane.f32.xlu0 %v3141_v54 }
 0xb06   : > { %6928 = vmatmul.msk.bf16.gmra.mxu1 %vm1489_vm2, %v3395_v56 }
 0xb07   : > { %v3134_v11 = vpop.f32.mrf.mxu1 }
 0xb08   : > { %v3144_v57 = vsel %vm1527_vm5, %v3134_v11, -inf }
 0xb09   : > { %3145 = vmax.xlane.f32.xlu0 %v3144_v57 }
 0xb0e   : > { %6931 = vmatmul.msk.bf16.vlgmr.msrb.gmra.mxu3 %vm1489_vm2, %v3537_v58 }
 0xb0f   : > { %v3136_v61 = vpop.f32.mrf.mxu1 }
 0xb1e   : > { %6932 = vmatmul.msk.bf16.gmra.mxu3 %vm1489_vm2, %v3539_v63 }
 0xb6c   : > { %v3140_v12 = vpop.xlane.xlu1 %3139 }
 0xb6d   : > { %v3147_v2 = vsub.f32 %v3129_v4, %v3140_v12 }
 0xb6f   : > { %v3150_v9 = vmul.f32 1.442695, %v3147_v2 }
 0xb71   : > { %v3277_v46 = vpop.f32.mrf.mxu3 }
 0xb72   : > { %v3286_v52 = vsel %vm1520_vm4, %v3277_v46, -inf }
 0xb73   : > { %v9909_v6 = vpop.f32.mrf.mxu1  ;;  %3287 = vmax.xlane.f32.xlu2 %v3286_v52 }
 0xb74   : > { %v3143_v3 = vpop.xlane.xlu0 %3142  ;;  %v3430_v23 = vsel %vm1520_vm4, %v9909_v6, -inf }
 0xb75   : > { %v3148_v7 = vsub.f32 %v3131_v53, %v3143_v3 }
 0xb77   : > { %v3152_v43 = vmul.f32 1.442695, %v3148_v7 }
 0xb79   : > { %8466 = vpow2.f32 %v3152_v43  ;;  %v9911_v14 = vpop.f32.mrf.mxu3 }
 0xb7a   : > { %v3289_v51 = vsel %vm1520_vm4, %v9911_v14, -inf  ;;  %8468 = vpow2.f32 %v3150_v9 }
 0xb7b   : > { %v3423_v16 = vpop.f32.mrf.mxu1  ;;  %3290 = vmax.xlane.f32.xlu1 %v3289_v51 }
 0xb7c   : > { %v3433_v44 = vsel %vm1520_vm4, %v3423_v16, -inf  ;;  %v3146_v20 = vpop.xlane.xlu0 %3145 }
 0xb7d   : > { %3434 = vmax.xlane.f32.xlu0 %v3433_v44  ;;  %v3149_v35 = vsub.f32 %v3134_v11, %v3146_v20 }
 0xb7f   : > { %v9916_v37 = vpop.eup %8466  ;;  %v3154_v25 = vmul.f32 1.442695, %v3149_v35 }
 0xb80   : > { %v3159_v13 = vsel %vm1520_vm4, %v9916_v37, 0.0  ;;  %v9920_v21 = vpop.eup %8468 }
 0xb81   : > { %v9922_v22 = vpop.f32.mrf.mxu3  ;;  %3160 = vadd.xlane.f32.xlu2 %v3159_v13  ;;  %v3156_v28 = vsel %vm1520_vm4, %v9920_v21, 0.0  ;;  %8470 = vpow2.f32 %v3154_v25 }
 0xb82   : > { %v3292_v17 = vsel %vm1527_vm5, %v9922_v22, -inf }
 0xb83   : > { %3431 = vmax.xlane.f32.xlu1 %v3430_v23  ;;  %v9926_v27 = vpop.f32.mrf.mxu1 }
 0xb84   : > { %v3436_v60 = vsel %vm1527_vm5, %v9926_v27, -inf }
 0xb85   : > { %3157 = vadd.xlane.f32.xlu0 %v3156_v28 }
 0xb87   : > { %v9932_v31 = vpop.eup %8470 }
 0xb88   : > { %v3162_v32 = vsel %vm1527_vm5, %v9932_v31, 0.0 }
 0xb89   : > { %v3284_v48 = vpop.f32.mrf.mxu3  ;;  %3293 = vmax.xlane.f32.xlu2 %v3292_v17 }
 0xb8b   : > { %v3428_v29 = vpop.f32.mrf.mxu1 }
 0xb91   : > { %v9936_v33 = vpop.f32.mrf.mxu3  ;;  %3163 = vadd.xlane.f32.xlu2 %v3162_v32 }
 0xb92   : > { %v3574_v42 = vsel %vm1520_vm4, %v9936_v33, -inf }
 0xb99   : > { %v9940_v34 = vpop.f32.mrf.mxu3  ;;  %3575 = vmax.xlane.f32.xlu2 %v3574_v42 }
 0xb9a   : > { %v3577_v19 = vsel %vm1520_vm4, %v9940_v34, -inf }
 0xb9b   : > { %3578 = vmax.xlane.f32.xlu1 %v3577_v19 }
 0xba1   : > { %v9944_v36 = vpop.f32.mrf.mxu3 }
 0xba9   : > { %v3572_v55 = vpop.f32.mrf.mxu3 }
 0xbb1   : > { %3360 = vrot.lane.b32.xlu2 %v9876_v30, %s9133_s23 }
 0xbb9   : > { %3506 = vrot.lane.b32.xlu2 %v9872_v62, %s9134_s28 }
 0xbc1   : > { %3650 = vrot.lane.b32.xlu2 %v9872_v62, %s9135_s5 }
 0xbc9   : > { %3648 = vrot.lane.b32.xlu2 %v9876_v30, %s9135_s5 }
 0xbe6   : > { %v3288_v24 = vpop.xlane.xlu2 %3287 }
 0xbe7   : > { %v3295_v38 = vsub.f32 %v3277_v46, %v3288_v24 }
 0xbe9   : > { %v3298_v39 = vmul.f32 1.442695, %v3295_v38 }
 0xbeb   : > { %8472 = vpow2.f32 %v3298_v39 }
 0xbee   : > { %v3291_v15 = vpop.xlane.xlu1 %3290 }
 0xbef   : > { %v3296_v57 = vsub.f32 %v9911_v14, %v3291_v15 }
 0xbf0   : > { %v3435_v41 = vpop.xlane.xlu0 %3434 }
 0xbf1   : > { %v9954_v1 = vpop.eup %8472  ;;  %v3440_v45 = vsub.f32 %v3423_v16, %v3435_v41  ;;  %v3300_v14 = vmul.f32 1.442695, %v3296_v57 }
 0xbf2   : > { %v3304_v50 = vsel %vm1520_vm4, %v9954_v1, 0.0  ;;  %3437 = vmax.xlane.f32.xlu2 %v3436_v60 }
 0xbf3   : > { %3305 = vadd.xlane.f32.xlu1 %v3304_v50  ;;  %v3444_v53 = vmul.f32 1.442695, %v3440_v45 }
 0xbf4   : > { %v3161_v0 = vpop.xlane.xlu2 %3160 }
 0xbf5   : > { %8474 = vrcp.f32 %v3161_v0  ;;  %v3191_v12 = vand.u32 2147483648, %v3161_v0  ;;  %v3189_v46 = vand.u32 2147483647, %v3161_v0  ;;  %vm3185_vm14 = vweird.f32 %v3161_v0 }
 0xbf6   : > { %v3432_v18 = vpop.xlane.xlu1 %3431 }
 0xbf7   : > { %v3439_v8 = vsub.f32 %v9909_v6, %v3432_v18  ;;  %v3192_v16 = vor.u32 1.1754944e-38, %v3191_v12  ;;  %vm3190_vm6 = vcmp.eq.f32.partialorder %v3189_v46, 8.507059e+37  ;;  %v3580_v46 = vsel %vm1527_vm5, %v9944_v36, -inf }
 0xbf8   : > { %v3158_v10 = vpop.xlane.xlu0 %3157 }
 0xbf9   : > { %v3442_v47 = vmul.f32 1.442695, %v3439_v8  ;;  %8476 = vrcp.f32 %v3158_v10  ;;  %v3176_v3 = vand.u32 2147483648, %v3158_v10  ;;  %v3174_v9 = vand.u32 2147483647, %v3158_v10 }
 0xbfa   : > { %vm3170_vm7 = vweird.f32 %v3158_v10 }
 0xbfb   : > { %8478 = vpow2.f32 %v3442_v47  ;;  %v8475_v4 = vpop.eup %8474  ;;  %v3177_v13 = vor.u32 1.1754944e-38, %v3176_v3  ;;  %vm3175_vm9 = vcmp.eq.f32.partialorder %v3174_v9, 8.507059e+37 }
 0xbfc   : > { %v3294_v49 = vpop.xlane.xlu2 %3293  ;;  %v3181_v54 = vmul.f32 %v8475_v4, %v3161_v0  ;;  %8480 = vpow2.f32 %v3444_v53  ;;  %vm3186_vm13 = vweird.f32 %v8475_v4 }
 0xbfd   : > { %vm3187_vm15 = vmor %vm3185_vm14, %vm3186_vm13  ;;  %v3297_v28 = vsub.f32 %v9922_v22, %v3294_v49 }
 0xbfe   : > { %v3182_v11 = vsub.f32 1.0, %v3181_v54 }
 0xbff   : > { %v8477_v56 = vpop.eup %8476  ;;  %v3302_v24 = vmul.f32 1.442695, %v3297_v28 }
 0xc00   : > { %v3166_v58 = vmul.f32 %v8477_v56, %v3158_v10  ;;  %v3183_v63 = vmul.f32 %v8475_v4, %v3182_v11  ;;  %vm3171_vm1 = vweird.f32 %v8477_v56 }
 0xc01   : > { %v9962_v61 = vpop.eup %8478  ;;  %vm3172_vm8 = vmor %vm3170_vm7, %vm3171_vm1 }
 0xc02   : > { %v3167_v52 = vsub.f32 1.0, %v3166_v58  ;;  %v3448_v2 = vsel %vm1520_vm4, %v9962_v61, 0.0  ;;  %v3184_v6 = vadd.f32 %v8475_v4, %v3183_v63  ;;  %v9966_v20 = vpop.eup %8480 }
 0xc03   : > { %3449 = vadd.xlane.f32.xlu0 %v3448_v2  ;;  %v3451_v29 = vsel %vm1520_vm4, %v9966_v20, 0.0 }
 0xc04   : > { %v3168_v7 = vmul.f32 %v8477_v56, %v3167_v52  ;;  %v3164_v43 = vpop.xlane.xlu2 %3163  ;;  %v3188_v51 = vsel %vm3187_vm15, %v8475_v4, %v3184_v6 }
 0xc05   : > { %8482 = vrcp.f32 %v3164_v43  ;;  %v3193_v35 = vsel %vm3190_vm6, %v3192_v16, %v3188_v51  ;;  %vm3200_vm13 = vweird.f32 %v3164_v43 }
 0xc06   : > { %v3169_v44 = vadd.f32 %v8477_v56, %v3168_v7  ;;  %8484 = vpow2.f32 %v3300_v14  ;;  %v3194_v17 = vmul.f32 %v9916_v37, %v3193_v35  ;;  %v3206_v37 = vand.u32 2147483648, %v3164_v43 }
 0xc07   : > { %8486 = vpow2.f32 %v3302_v24 }
 0xc08   : > { %v3173_v23 = vsel %vm3172_vm8, %v8477_v56, %v3169_v44  ;;  %v3207_v60 = vor.u32 1.1754944e-38, %v3206_v37 }
 0xc09   : > { %v3178_v25 = vsel %vm3175_vm9, %v3177_v13, %v3173_v23 }
 0xc0a   : > { %v3179_v48 = vmul.f32 %v9920_v21, %v3178_v25  ;;  %v3204_v21 = vand.u32 2147483647, %v3164_v43 }
 0xc0b   : > { %v8483_v32 = vpop.eup %8482  ;;  %3452 = vadd.xlane.f32.xlu0 %v3451_v29 }
 0xc0c   : > { %v3196_v42 = vmul.f32 %v8483_v32, %v3164_v43  ;;  %3362 = vrot.lane.b32.xlu1 %v9872_v62, %s9133_s23  ;;  %v3576_v19 = vpop.xlane.xlu2 %3575  ;;  %v3210_v55 = vpack.c.bf16 %v3194_v17, %v3179_v48  ;;  %v9976_v22 = vpop.eup %8484  ;;  %vm3201_vm12 = vweird.f32 %v8483_v32  ;;  %vm3205_vm15 = vcmp.eq.f32.partialorder %v3204_v21, 8.507059e+37 }
 0xc0d   : > { %v3583_v15 = vsub.f32 %v9936_v33, %v3576_v19  ;;  %v3307_v62 = vsel %vm1520_vm4, %v9976_v22, 0.0  ;;  %vm3202_vm14 = vmor %vm3200_vm13, %vm3201_vm12  ;;  %v9981_v10 = vpop.eup %8486 }
 0xc0e   : > { %v3197_v38 = vsub.f32 1.0, %v3196_v42  ;;  %6921 = vmatmul.msk.bf16.vlgmr.msra.gmra.mxu2 %vm1520_vm4, %v3210_v55  ;;  %v3310_v33 = vsel %vm1527_vm5, %v9981_v10, 0.0  ;;  %v3579_v54 = vpop.xlane.xlu1 %3578 }
 0xc0f   : > { %v3586_v18 = vmul.f32 1.442695, %v3583_v15 }
 0xc10   : > { %v3198_v39 = vmul.f32 %v8483_v32, %v3197_v38 }
 0xc11   : > { %8488 = vpow2.f32 %v3586_v18 }
 0xc12   : > { %v3199_v41 = vadd.f32 %v8483_v32, %v3198_v39 }
 0xc13   : > { %3308 = vadd.xlane.f32.xlu0 %v3307_v62 }
 0xc14   : > { %v3361_v50 = vpop.permute.xlu2 %3360  ;;  %v3203_v0 = vsel %vm3202_vm14, %v8483_v32, %v3199_v41 }
 0xc15   : > { %v3208_v8 = vsel %vm3205_vm15, %v3207_v60, %v3203_v0 }
 0xc16   : > { %v3209_v45 = vmul.f32 %v9932_v31, %v3208_v8  ;;  %v3584_v31 = vsub.f32 %v9940_v34, %v3579_v54 }
 0xc17   : > { %v9988_v53 = vpop.eup %8488 }
 0xc18   : > { %v3211_v4 = vpack.c.bf16 %v3209_v45, %v3209_v45  ;;  %v3592_v56 = vsel %vm1520_vm4, %v9988_v53, 0.0  ;;  %v3588_v11 = vmul.f32 1.442695, %v3584_v31 }
 0xc1a   : > { %8490 = vpow2.f32 %v3588_v11 }
 0xc1b   : > { %3311 = vadd.xlane.f32.xlu0 %v3310_v33 }
 0xc1c   : > { %v3507_v47 = vpop.permute.xlu2 %3506 }
 0xc1d   : > { %v3516_v49 = vsel %vm1611_vm3, %v3507_v47, 0 }
 0xc1e   : > { %6922 = vmatmul.msk.bf16.gmra.mxu2 %vm1520_vm4, %v3211_v4 }
 0xc1f   : > { %3524 = vmatpush.bf16.msrb.mxu2 %v3516_v49 }
 0xc20   : > { %v9993_v57 = vpop.eup %8490 }
 0xc21   : > { %v3595_v58 = vsel %vm1520_vm4, %v9993_v57, 0.0 }
 0xc23   : > { %3593 = vadd.xlane.f32.xlu0 %v3592_v56 }
 0xc24   : > { %v3651_v63 = vpop.permute.xlu2 %3650 }
 0xc25   : > { %v3660_v16 = vsel %vm1611_vm3, %v3651_v63, 0 }
 0xc2c   : > { %v3649_v12 = vpop.permute.xlu2 %3648 }
 0xc36   : > { %3596 = vadd.xlane.f32.xlu1 %v3595_v58 }
 0xc37   : > { %3504 = vrot.lane.b32.xlu0 %v9876_v30, %s9134_s28 }
 0xc61   : > { %3581 = vmax.xlane.f32.xlu0 %v3580_v46 }
 0xc65   : > { %v3438_v52 = vpop.xlane.xlu2 %3437 }
 0xc66   : > { %v3441_v34 = vsub.f32 %v9926_v27, %v3438_v52  ;;  %v3306_v7 = vpop.xlane.xlu1 %3305 }
 0xc67   : > { %v3324_v29 = vand.u32 2147483648, %v3306_v7  ;;  %v3322_v42 = vand.u32 2147483647, %v3306_v7 }
 0xc68   : > { %v3446_v2 = vmul.f32 1.442695, %v3441_v34 }
 0xc69   : > { %v3325_v41 = vor.u32 1.1754944e-38, %v3324_v29  ;;  %vm3323_vm8 = vcmp.eq.f32.partialorder %v3322_v42, 8.507059e+37 }
 0xc6a   : > { %8492 = vpow2.f32 %v3446_v2 }
 0xc6b   : > { %8494 = vrcp.f32 %v3306_v7 }
 0xc70   : > { %v10002_v6 = vpop.eup %8492 }
 0xc71   : > { %v3454_v3 = vsel %vm1527_vm5, %v10002_v6, 0.0  ;;  %v8495_v30 = vpop.eup %8494 }
 0xc72   : > { %3455 = vadd.xlane.f32.xlu1 %v3454_v3  ;;  %v3314_v27 = vmul.f32 %v8495_v30, %v3306_v7  ;;  %vm3319_vm1 = vweird.f32 %v8495_v30 }
 0xc74   : > { %v3315_v44 = vsub.f32 1.0, %v3314_v27 }
 0xc76   : > { %v10006_v9 = vpop.xlane.xlu0 %3449  ;;  %v3316_v13 = vmul.f32 %v8495_v30, %v3315_v44 }
 0xc78   : > { %v3317_v25 = vadd.f32 %v8495_v30, %v3316_v13 }
 0xc7e   : > { %v3363_v43 = vpop.permute.xlu1 %3362  ;;  %v10008_v14 = vpop.xlane.xlu0 %3452 }
 0xc7f   : > { %v3372_v51 = vsel %vm1611_vm3, %v3363_v43, 0  ;;  %vm3318_vm3 = vweird.f32 %v3306_v7  ;;  %v3483_v2 = vand.u32 2147483648, %v10008_v14 }
 0xc80   : > { %3380 = vmatpush.bf16.msra.mxu0 %v3372_v51  ;;  %vm10019_vm6 = vmor %vm3318_vm3, %vm3319_vm1  ;;  %v3468_v51 = vand.u32 2147483648, %v10006_v9 }
 0xc81   : > { %v3321_v24 = vsel %vm10019_vm6, %v8495_v30, %v3317_v25  ;;  %v3481_v30 = vand.u32 2147483647, %v10008_v14 }
 0xc82   : > { %v3326_v0 = vsel %vm3323_vm8, %v3325_v41, %v3321_v24 }
 0xc83   : > { %v3327_v4 = vmul.f32 %v9954_v1, %v3326_v0 }
 0xc84   : > { %3381 = vmatpush.bf16.msra.mxu0 %v3361_v50 }
 0xc86   : > { %v3309_v35 = vpop.xlane.xlu0 %3308 }
 0xc87   : > { %8496 = vrcp.f32 %v3309_v35  ;;  %v3339_v38 = vand.u32 2147483648, %v3309_v35  ;;  %v3337_v15 = vand.u32 2147483647, %v3309_v35  ;;  %vm3333_vm9 = vweird.f32 %v3309_v35 }
 0xc88   : > { %3668 = vmatpush.bf16.msrb.mxu0 %v3660_v16  ;;  %8498 = vrcp.f32 %v10008_v14 }
 0xc89   : > { %8500 = vrcp.f32 %v10006_v9  ;;  %v3340_v18 = vor.u32 1.1754944e-38, %v3339_v38  ;;  %vm3338_vm13 = vcmp.eq.f32.partialorder %v3337_v15, 8.507059e+37 }
 0xc8c   : > { %3669 = vmatpush.bf16.msrb.mxu0 %v3649_v12 }
 0xc8d   : > { %v8497_v23 = vpop.eup %8496 }
 0xc8e   : > { %v3329_v28 = vmul.f32 %v8497_v23, %v3309_v35  ;;  %v10014_v17 = vpop.xlane.xlu0 %3311  ;;  %v10016_v48 = vpop.eup %8498  ;;  %vm3334_vm7 = vweird.f32 %v8497_v23  ;;  %v3466_v35 = vand.u32 2147483647, %v10006_v9 }
 0xc8f   : > { %8502 = vrcp.f32 %v10014_v17  ;;  %v10023_v55 = vpop.eup %8500  ;;  %v3473_v39 = vmul.f32 %v10016_v48, %v10008_v14  ;;  %vm3335_vm12 = vmor %vm3333_vm9, %vm3334_vm7  ;;  %v3354_v1 = vand.u32 2147483648, %v10014_v17  ;;  %vm3478_vm15 = vweird.f32 %v10016_v48 }
 0xc90   : > { %v3330_v19 = vsub.f32 1.0, %v3329_v28  ;;  %v3458_v62 = vmul.f32 %v10023_v55, %v10006_v9  ;;  %vm3348_vm1 = vweird.f32 %v10014_v17  ;;  %v3352_v34 = vand.u32 2147483647, %v10014_v17 }
 0xc91   : > { %v10027_v37 = vpop.f32.mrf.mxu2  ;;  %v3474_v8 = vsub.f32 1.0, %v3473_v39  ;;  %vm3463_vm3 = vweird.f32 %v10023_v55  ;;  %vm3477_vm7 = vweird.f32 %v10008_v14  ;;  %v3355_v27 = vor.u32 1.1754944e-38, %v3354_v1 }
 0xc92   : > { %v3331_v21 = vmul.f32 %v8497_v23, %v3330_v19  ;;  %v3459_v49 = vsub.f32 1.0, %v3458_v62  ;;  %vm3479_vm8 = vmor %vm3477_vm7, %vm3478_vm15  ;;  %vm3462_vm9 = vweird.f32 %v10006_v9  ;;  %v3484_v14 = vor.u32 1.1754944e-38, %v3483_v2 }
 0xc93   : > { %v3475_v58 = vmul.f32 %v10016_v48, %v3474_v8  ;;  %v3469_v28 = vor.u32 1.1754944e-38, %v3468_v51  ;;  %vm3467_vm15 = vcmp.eq.f32.partialorder %v3466_v35, 8.507059e+37 }
 0xc94   : > { %v3332_v60 = vadd.f32 %v8497_v23, %v3331_v21  ;;  %v3460_v46 = vmul.f32 %v10023_v55, %v3459_v49 }
 0xc95   : > { %v8503_v50 = vpop.eup %8502 }
 0xc96   : > { %v3336_v45 = vsel %vm3335_vm12, %v8497_v23, %v3332_v60  ;;  %v3344_v33 = vmul.f32 %v8503_v50, %v10014_v17  ;;  %v10036_v31 = vpop.xlane.xlu0 %3593  ;;  %vm3349_vm14 = vweird.f32 %v8503_v50  ;;  %v3461_v7 = vadd.f32 %v10023_v55, %v3460_v46 }
 0xc97   : > { %v3341_v47 = vsel %vm3338_vm13, %v3340_v18, %v3336_v45  ;;  %8504 = vrcp.f32 %v10036_v31  ;;  %vm10051_vm6 = vmor %vm3348_vm1, %vm3349_vm14  ;;  %vm3353_vm12 = vcmp.eq.f32.partialorder %v3352_v34, 8.507059e+37  ;;  %vm3482_vm14 = vcmp.eq.f32.partialorder %v3481_v30, 8.507059e+37 }
 0xc98   : > { %v3342_v54 = vmul.f32 %v9976_v22, %v3341_v47  ;;  %v3345_v56 = vsub.f32 1.0, %v3344_v33  ;;  %v3476_v22 = vadd.f32 %v10016_v48, %v3475_v58  ;;  %vm3464_vm13 = vmor %vm3462_vm9, %vm3463_vm3  ;;  %vm3606_vm3 = vweird.f32 %v10036_v31 }
 0xc99   : > { %v10038_v11 = vpop.f32.mrf.mxu2  ;;  %v3465_v25 = vsel %vm3464_vm13, %v10023_v55, %v3461_v7 }
 0xc9a   : > { %v3358_v63 = vpack.c.bf16 %v3342_v54, %v3327_v4  ;;  %v3346_v12 = vmul.f32 %v8503_v50, %v3345_v56  ;;  %v3480_v13 = vsel %vm3479_vm8, %v10016_v48, %v3476_v22  ;;  %v3470_v42 = vsel %vm3467_vm15, %v3469_v28, %v3465_v25 }
 0xc9b   : > { %v3485_v17 = vsel %vm3482_vm14, %v3484_v14, %v3480_v13  ;;  %v3471_v38 = vmul.f32 %v9962_v61, %v3470_v42  ;;  %v3610_v61 = vand.u32 2147483647, %v10036_v31 }
 0xc9c   : > { %v3347_v52 = vadd.f32 %v8503_v50, %v3346_v12  ;;  %6925 = vmatmul.msk.bf16.vlgmr.msra.gmra.mxu0 %vm1520_vm4, %v3358_v63  ;;  %v3486_v9 = vmul.f32 %v9966_v20, %v3485_v17  ;;  %v3612_v20 = vand.u32 2147483648, %v10036_v31 }
 0xc9d   : > { %v8505_v44 = vpop.eup %8504  ;;  %vm3611_vm8 = vcmp.eq.f32.partialorder %v3610_v61, 8.507059e+37 }
 0xc9e   : > { %v3351_v43 = vsel %vm10051_vm6, %v8503_v50, %v3347_v52  ;;  %v3602_v29 = vmul.f32 %v8505_v44, %v10036_v31  ;;  %v3502_v55 = vpack.c.bf16 %v3486_v9, %v3471_v38  ;;  %vm3607_vm1 = vweird.f32 %v8505_v44 }
 0xc9f   : > { %v3356_v23 = vsel %vm3353_vm12, %v3355_v27, %v3351_v43  ;;  %vm3608_vm6 = vmor %vm3606_vm3, %vm3607_vm1  ;;  %v3613_v45 = vor.u32 1.1754944e-38, %v3612_v20 }
 0xca0   : > { %v3357_v32 = vmul.f32 %v9981_v10, %v3356_v23  ;;  %v3603_v48 = vsub.f32 1.0, %v3602_v29 }
 0xca1   : > { %v10061_v16 = vpop.f32.mrf.mxu2 }
 0xca2   : > { %v3359_v21 = vpack.c.bf16 %v3357_v32, %v3357_v32  ;;  %v3604_v15 = vmul.f32 %v8505_v44, %v3603_v48 }
 0xca4   : > { %v3605_v10 = vadd.f32 %v8505_v44, %v3604_v15 }
 0xca6   : > { %v3609_v0 = vsel %vm3608_vm6, %v8505_v44, %v3605_v10 }
 0xca7   : > { %v3614_v47 = vsel %vm3611_vm8, %v3613_v45, %v3609_v0  ;;  %v7945_v0 = vld [vmem:[#allocation16 + $0x68] sm:$0xff]  ;;  %v7943_v45 = vld [vmem:[#allocation16 + $0x58] sm:$0xff] }
 0xca8   : > { %v3615_v56 = vmul.f32 %v9988_v53, %v3614_v47  ;;  %v7941_v47 = vld [vmem:[#allocation16 + $0x48] sm:$0xff] }
 0xca9   : > { %v3597_v19 = vpop.xlane.xlu1 %3596  ;;  %v3246_v24 = vpop.f32.mrf.mxu2 }
 0xcaa   : > { %8506 = vrcp.f32 %v3597_v19  ;;  %v3505_v39 = vpop.permute.xlu0 %3504  ;;  %v3627_v50 = vand.u32 2147483648, %v3597_v19  ;;  %v3625_v8 = vand.u32 2147483647, %v3597_v19  ;;  %vm3621_vm9 = vweird.f32 %v3597_v19 }
 0xcab   : > { %3525 = vmatpush.bf16.msrb.mxu2 %v3505_v39 }
 0xcac   : > { %6926 = vmatmul.msk.bf16.gmra.mxu0 %vm1520_vm4, %v3359_v21  ;;  %v3628_v4 = vor.u32 1.1754944e-38, %v3627_v50  ;;  %vm3626_vm13 = vcmp.eq.f32.partialorder %v3625_v8, 8.507059e+37  ;;  %v7946_v50 = vld [vmem:[#allocation16 + $0x70] sm:$0xff]  ;;  %v7944_v8 = vld [vmem:[#allocation16 + $0x60] sm:$0xff] }
 0xcae   : > { %6929 = vmatmul.msk.bf16.vlgmr.msrb.gmra.mxu2 %vm1520_vm4, %v3502_v55 }
 0xcb0   : > { %v8507_v41 = vpop.eup %8506 }
 0xcb1   : > { %v3617_v62 = vmul.f32 %v8507_v41, %v3597_v19  ;;  %vm3622_vm7 = vweird.f32 %v8507_v41 }
 0xcb2   : > { %vm3623_vm12 = vmor %vm3621_vm9, %vm3622_vm7 }
 0xcb3   : > { %v3618_v60 = vsub.f32 1.0, %v3617_v62 }
 0xcb5   : > { %v3619_v18 = vmul.f32 %v8507_v41, %v3618_v60  ;;  %v7947_v60 = vld [vmem:[#allocation16 + $0x78] sm:$0xff] }
 0xcb6   : > { %3797 = vmatpush.bf16.msra.mxu1 %v7947_v60 }
 0xcb7   : > { %v3620_v33 = vadd.f32 %v8507_v41, %v3619_v18 }
 0xcb9   : > { %v3624_v49 = vsel %vm3623_vm12, %v8507_v41, %v3620_v33  ;;  %v7942_v33 = vld [vmem:[#allocation16 + $0x50] sm:$0xff] }
 0xcba   : > { %v3629_v54 = vsel %vm3626_vm13, %v3628_v4, %v3624_v49  ;;  %3798 = vmatpush.bf16.msra.mxu1 %v7946_v50  ;;  %v7940_v4 = vld [vmem:[#allocation16 + $0x40] sm:$0xff]  ;;  %v7042_v50 = vld [vmem:[#allocation22 + $0x150] sm:$0xf] }
 0xcbb   : > { %v3630_v31 = vmul.f32 %v9993_v57, %v3629_v54 }
 0xcbd   : > { %v3646_v58 = vpack.c.bf16 %v3630_v31, %v3615_v56 }
 0xcbe   : > { %3799 = vmatpush.bf16.msra.mxu1 %v7945_v0  ;;  %v7966_v0 = vld [vmem:[#allocation22 + $0x154] sm:$0xf] }
 0xcbf   : > { %6933 = vmatmul.msk.bf16.vlgmr.msrb.gmra.mxu0 %vm1520_vm4, %v3646_v58 }
 0xcc2   : > { %3800 = vmatpush.bf16.msra.mxu1 %v7944_v8  ;;  %v7044_v8 = vld [vmem:[#allocation22 + $0x15c] sm:$0xf0] }
 0xcc6   : > { %3801 = vmatpush.bf16.msra.mxu1 %v7943_v45  ;;  %v7050_v45 = vld [vmem:[#allocation22 + $0x158] sm:$0xf] }
 0xcca   : > { %3802 = vmatpush.bf16.msra.mxu1 %v7942_v33  ;;  %v7968_v33 = vld [vmem:[#allocation22 + $0x160] sm:$0xf0] }
 0xcce   : > { %3803 = vmatpush.bf16.msra.mxu1 %v7941_v47  ;;  %v7047_v47 = vor.u32 %v7966_v0, %v7044_v8  ;;  %v6978_v0 = vld [vmem:[#allocation22 + $0xc8] sm:$0xf]  ;;  %v7950_v8 = vld [vmem:[#allocation22 + $0xd0] sm:$0xf0] }
 0xcd2   : > { %3804 = vmatpush.bf16.msra.mxu1 %v7940_v4  ;;  %v7051_v4 = vor.u32 %v7968_v33, %v7050_v45  ;;  %v6979_v45 = vor.u32 %v7950_v8, %v6978_v0 }
 0xcd4   : > { %v3582_v63 = vpop.xlane.xlu0 %3581 }
 0xcd5   : > { %v3585_v12 = vsub.f32 %v9944_v36, %v3582_v63 }
 0xcd7   : > { %v3590_v46 = vmul.f32 1.442695, %v3585_v12 }
 0xcd9   : > { %8508 = vpow2.f32 %v3590_v46 }
 0xcdf   : > { %v8509_v52 = vpop.eup %8508 }
 0xce0   : > { %v3598_v1 = vsel %vm1527_vm5, %v8509_v52, 0.0 }
 0xce1   : > { %3599 = vadd.xlane.f32.xlu1 %v3598_v1 }
 0xce5   : > { %v3456_v22 = vpop.xlane.xlu1 %3455 }
 0xce6   : > { %8510 = vrcp.f32 %v3456_v22  ;;  %v3498_v53 = vand.u32 2147483648, %v3456_v22  ;;  %v3496_v57 = vand.u32 2147483647, %v3456_v22  ;;  %vm3492_vm15 = vweird.f32 %v3456_v22 }
 0xce8   : > { %v3499_v43 = vor.u32 1.1754944e-38, %v3498_v53  ;;  %vm3497_vm3 = vcmp.eq.f32.partialorder %v3496_v57, 8.507059e+37 }
 0xcec   : > { %v8511_v34 = vpop.eup %8510 }
 0xced   : > { %v3488_v2 = vmul.f32 %v8511_v34, %v3456_v22  ;;  %vm3493_vm14 = vweird.f32 %v8511_v34 }
 0xcee   : > { %vm3494_vm1 = vmor %vm3492_vm15, %vm3493_vm14 }
 0xcef   : > { %v3489_v3 = vsub.f32 1.0, %v3488_v2 }
 0xcf1   : > { %v3490_v7 = vmul.f32 %v8511_v34, %v3489_v3 }
 0xcf3   : > { %v3491_v30 = vadd.f32 %v8511_v34, %v3490_v7 }
 0xcf5   : > { %v3495_v36 = vsel %vm3494_vm1, %v8511_v34, %v3491_v30 }
 0xcf6   : > { %v3500_v51 = vsel %vm3497_vm3, %v3499_v43, %v3495_v36 }
 0xcf7   : > { %v3501_v27 = vmul.f32 %v10002_v6, %v3500_v51 }
 0xcf9   : > { %v3503_v44 = vpack.c.bf16 %v3501_v27, %v3501_v27 }
 0xcfb   : > { %6930 = vmatmul.msk.bf16.gmra.mxu2 %vm1520_vm4, %v3503_v44 }
 0xd19   : > { %v3383_v35 = vpop.f32.mrf.mxu0 }
 0xd21   : > { %v3385_v13 = vpop.f32.mrf.mxu0 }
 0xd22   : > { %v8376_v14 = vpack.i.bf16 %v3385_v13, %v3383_v35 }
 0xd24   : > { %8377 = vrot.lane.b32.xlu1 %v8376_v14, %s9135_s5 }
 0xd29   : > { %v3388_v23 = vpop.f32.mrf.mxu0 }
 0xd2c   : > { %3687 = vrot.lane.b32.xlu1 %v3388_v23, %s9135_s5 }
 0xd31   : > { %v3527_v25 = vpop.f32.mrf.mxu2  ;;  %v3390_v28 = vpop.f32.mrf.mxu0 }
 0xd39   : > { %v3529_v17 = vpop.f32.mrf.mxu2 }
 0xd3a   : > { %v8381_v29 = vpack.i.bf16 %v3529_v17, %v3527_v25 }
 0xd3c   : > { %8382 = vrot.lane.b32.xlu2 %v8381_v29, %s9134_s28  ;;  %v3671_v32 = vpop.f32.mrf.mxu0 }
 0xd44   : > { %v3673_v42 = vpop.f32.mrf.mxu0 }
 0xd45   : > { %v8386_v6 = vpack.i.bf16 %v3673_v42, %v3671_v32 }
 0xd47   : > { %8387 = vrot.lane.b32.xlu0 %v8386_v6, %s9133_s23 }
 0xd54   : > { %v3600_v9 = vpop.xlane.xlu1 %3599 }
 0xd55   : > { %8512 = vrcp.f32 %v3600_v9  ;;  %v3642_v38 = vand.u32 2147483648, %v3600_v9  ;;  %v3640_v21 = vand.u32 2147483647, %v3600_v9  ;;  %vm3636_vm6 = vweird.f32 %v3600_v9 }
 0xd57   : > { %v3643_v15 = vor.u32 1.1754944e-38, %v3642_v38  ;;  %vm3641_vm8 = vcmp.eq.f32.partialorder %v3640_v21, 8.507059e+37  ;;  %v7054_v21 = vld [vmem:[#allocation22 + $0x168] sm:$0xf] }
 0xd5b   : > { %v8513_v48 = vpop.eup %8512 }
 0xd5c   : > { %v3632_v19 = vmul.f32 %v8513_v48, %v3600_v9  ;;  %vm3637_vm5 = vweird.f32 %v8513_v48 }
 0xd5d   : > { %vm3638_vm7 = vmor %vm3636_vm6, %vm3637_vm5 }
 0xd5e   : > { %v3633_v24 = vsub.f32 1.0, %v3632_v19 }
 0xd60   : > { %v3634_v39 = vmul.f32 %v8513_v48, %v3633_v24 }
 0xd62   : > { %v3635_v55 = vadd.f32 %v8513_v48, %v3634_v39 }
 0xd64   : > { %v3639_v41 = vsel %vm3638_vm7, %v8513_v48, %v3635_v55  ;;  %v7970_v55 = vld [vmem:[#allocation22 + $0x170] sm:$0xf0] }
 0xd65   : > { %v3644_v10 = vsel %vm3641_vm8, %v3643_v15, %v3639_v41  ;;  %v7969_v15 = vld [vmem:[#allocation22 + $0x16c] sm:$0xf]  ;;  %v7055_v41 = vor.u32 %v7970_v55, %v7054_v21 }
 0xd66   : > { %v3645_v62 = vmul.f32 %v8509_v52, %v3644_v10  ;;  %v7056_v10 = vld [vmem:[#allocation22 + $0x174] sm:$0xf0]  ;;  %v7953_v21 = vld [vmem:[#allocation22 + $0xe8] sm:$0xf0] }
 0xd67   : > { %4068 = vmatpush.bf16.msra.mxu2 %v7055_v41 }
 0xd68   : > { %v3647_v20 = vpack.c.bf16 %v3645_v62, %v3645_v62  ;;  %v7062_v62 = vld [vmem:[#allocation22 + $0x170] sm:$0xf] }
 0xd6a   : > { %6934 = vmatmul.msk.bf16.gmra.mxu0 %vm1520_vm4, %v3647_v20  ;;  %v7971_v20 = vld [vmem:[#allocation22 + $0x178] sm:$0xf0] }
 0xd6b   : > { %v7063_v60 = vor.u32 %v7971_v20, %v7062_v62  ;;  %v6970_v62 = vld [vmem:[#allocation22 + $0xc0] sm:$0xf]  ;;  %v7949_v20 = vld [vmem:[#allocation22 + $0xc8] sm:$0xf0] }
 0xd6d   : > { %4104 = vmatpush.bf16.msra.mxu0 %v7063_v60 }
 0xd71   : > { %4105 = vmatpush.bf16.msra.mxu0 %v7051_v4 }
 0xd7e   : > { %v3532_v61 = vpop.f32.mrf.mxu2 }
 0xd7f   : > { %3699 = vrot.lane.b32.xlu2 %v3532_v61, %s9134_s28  ;;  %v7059_v61 = vor.u32 %v7969_v15, %v7056_v10 }
 0xd81   : > { %4086 = vmatpush.bf16.msra.mxu3 %v7059_v61  ;;  %v7948_v61 = vld [vmem:[#allocation22 + $0xc4] sm:$0xf] }
 0xd85   : > { %4087 = vmatpush.bf16.msra.mxu3 %v7047_v47 }
 0xd86   : > { %v3534_v18 = vpop.f32.mrf.mxu2 }
 0xd96   : > { %v8378_v49 = vpop.permute.xlu1 %8377  ;;  %v8383_v31 = vpop.permute.xlu2 %8382 }
 0xd97   : > { %v8380_v54 = vunpack.i.h.bf16 %v8378_v49  ;;  %v8379_v56 = vunpack.i.l.bf16 %v8378_v49  ;;  %v8385_v12 = vunpack.i.h.bf16 %v8383_v31  ;;  %v8384_v46 = vunpack.i.l.bf16 %v8383_v31  ;;  %v7030_v49 = vld [vmem:[#allocation22 + $0x138] sm:$0xf] }
 0xd99   : > { %v3717_v58 = vsel %vm1489_vm2, %v10038_v11, %v8380_v54  ;;  %v3716_v63 = vsel %vm1489_vm2, %v10027_v37, %v8379_v56  ;;  %v8398_v37 = vld [vmem:[#allocation17 + $0x1] ss:$0 sm:$0xff]  ;;  %v7964_v54 = vld [vmem:[#allocation22 + $0x140] sm:$0xf0]  ;;  %v7963_v56 = vld [vmem:[#allocation22 + $0x13c] sm:$0xf] }
 0xd9a   : > { %v3719_v34 = vsel %vm2104_vm10, %v3716_v63, %v8384_v46  ;;  %v3720_v2 = vsel %vm2104_vm10, %v3717_v58, %v8385_v12  ;;  %v7031_v31 = vor.u32 %v7964_v54, %v7030_v49  ;;  %v7032_v58 = vld [vmem:[#allocation22 + $0x144] sm:$0xf0]  ;;  %v7038_v63 = vld [vmem:[#allocation22 + $0x140] sm:$0xf]  ;;  %v7965_v12 = vld [vmem:[#allocation22 + $0x148] sm:$0xf0] }
 0xd9b   : > { %v7035_v46 = vor.u32 %v7963_v56, %v7032_v58 }
 0xd9d   : > { %4088 = vmatpush.bf16.msra.mxu3 %v7035_v46 }
 0xd9e   : > { %v3688_v35 = vpop.permute.xlu1 %3687 }
 0xd9f   : > { %v3718_v14 = vsel %vm1489_vm2, %v10061_v16, %v3688_v35 }
 0xdb9   : > { %v8388_v52 = vpop.permute.xlu0 %8387 }
 0xdba   : > { %v8390_v1 = vunpack.i.h.bf16 %v8388_v52  ;;  %v8389_v22 = vunpack.i.l.bf16 %v8388_v52  ;;  %v7039_v52 = vor.u32 %v7965_v12, %v7038_v63  ;;  %v7978_v63 = vld [vmem:[#allocation23 + $0xf0] sm:$0xff] }
 0xdbc   : > { %v3723_v3 = vsel %vm2108_vm11, %v3720_v2, %v8390_v1  ;;  %v3722_v53 = vsel %vm2108_vm11, %v3719_v34, %v8389_v22  ;;  %4106 = vmatpush.bf16.msra.mxu0 %v7039_v52  ;;  %v7018_v1 = vld [vmem:[#allocation22 + $0x120] sm:$0xf]  ;;  %v7961_v22 = vld [vmem:[#allocation22 + $0x128] sm:$0xf0]  ;;  %v7960_v34 = vld [vmem:[#allocation22 + $0x124] sm:$0xf] }
 0xdbd   : > { %v3725_v7 = vpack.c.bf16 %v3723_v3, %v3722_v53  ;;  %v7019_v2 = vor.u32 %v7961_v22, %v7018_v1  ;;  %v7020_v3 = vld [vmem:[#allocation22 + $0x12c] sm:$0xf0]  ;;  %v7026_v53 = vld [vmem:[#allocation22 + $0x128] sm:$0xf] }
 0xdbf   : > { %3805 = vmatmul.bf16.vlgmr.msra.gmra.mxu1 %v3725_v7  ;;  %v7962_v7 = vld [vmem:[#allocation22 + $0x130] sm:$0xf0] }
 0xdd9   : > { %v3700_v13 = vpop.permute.xlu2 %3699 }
 0xdda   : > { %v3721_v23 = vsel %vm2104_vm10, %v3718_v14, %v3700_v13  ;;  %v6994_v14 = vld [vmem:[#allocation22 + $0xf0] sm:$0xf] }
 0xde7   : > { %v3676_v57 = vpop.f32.mrf.mxu0 }
 0xde8   : > { %3711 = vrot.lane.b32.xlu0 %v3676_v57, %s9133_s23  ;;  %v7023_v57 = vor.u32 %v7960_v34, %v7020_v3  ;;  %s9020_s23 = sshra.s32 %s6098_s16, 4  ;;  %s9021_s23 = int_to_ptr.hbm [resolvable:$true] %s9020_s23 }
 0xde9   : > { %s9022_s28 = scalar_lea.hbm %s9021_s23, 1  ;;  %p9027_p7 = scmp.lt.s32.totalorder %s9021_s23, %s10356_s17 }
 0xdea   : > { %4089 = vmatpush.bf16.msra.mxu3 %v7023_v57  ;;  %p9023_p1 = scmp.ne.s32.totalorder %s9021_s23, %s9022_s28  ;;  %p9028_p9 = scmp.lt.s32.totalorder %s9026_s30, %s9022_s28 }
 0xdec   : > { %p9024_p3 = pnand %p9023_p1, %p9410_p0  ;;  %p9029_p8 = por %p9028_p9, %p9027_p7 }
 0xdee   : > { %p9025_p13 = pneg %p9024_p3 }
 0xdef   : > { %v3678_v11 = vpop.f32.mrf.mxu0 }
 0xdf0   : > { %v7027_v11 = vor.u32 %v7962_v7, %v7026_v53  ;;  %v10123_v53 = vld [vmem:[#allocation19 + $0x1] ss:$0 sm:$0xff]  ;;  %p9030_p10 = pnand %p9029_p8, %p9025_p13 }
 0xdf2   : > { %4107 = vmatpush.bf16.msra.mxu0 %v7027_v11 }
 0xe3c   : > { %v3806_v30 = vpop.f32.mrf.mxu1 }
 0xe3d   : > { %v3807_v43 = vadd.f32 %v8398_v37, %v3806_v30  ;;  %v7958_v30 = vld [vmem:[#allocation22 + $0x110] sm:$0xf0] }
 0xe3f   : > { %v3815_v36 = vadd.f32 %v3807_v43, %v9855_v26  ;;  %v7957_v43 = vld [vmem:[#allocation22 + $0x10c] sm:$0xf] }
 0xe41   : > { %3822 = vadd.xlane.f32.xlu1 %v3815_v36 }
 0xe44   : > { %v3808_v51 = vpop.f32.mrf.mxu1 }
 0xe45   : > { %v3809_v27 = vadd.f32 %v8398_v37, %v3808_v51  ;;  %v7008_v51 = vld [vmem:[#allocation22 + $0x114] sm:$0xf0] }
 0xe46   : > { %v7011_v35 = vor.u32 %v7957_v43, %v7008_v51 }
 0xe47   : > { %v3816_v44 = vadd.f32 %v3809_v27, %v9857_v59  ;;  %v7014_v27 = vld [vmem:[#allocation22 + $0x110] sm:$0xf] }
 0xe48   : > { %4090 = vmatpush.bf16.msra.mxu3 %v7011_v35 }
 0xe49   : > { %3824 = vadd.xlane.f32.xlu2 %v3816_v44 }
 0xe5a   : > { %v3712_v25 = vpop.permute.xlu0 %3711 }
 0xe5b   : > { %v3724_v28 = vsel %vm2108_vm11, %v3721_v23, %v3712_v25  ;;  %v7955_v23 = vld [vmem:[#allocation22 + $0xf8] sm:$0xf0]  ;;  %v7954_v25 = vld [vmem:[#allocation22 + $0xf4] sm:$0xf] }
 0xe5c   : > { %v3726_v17 = vpack.c.bf16 %v3724_v28, %v3724_v28  ;;  %v6995_v28 = vor.u32 %v7955_v23, %v6994_v14  ;;  %v7977_v23 = vld [vmem:[#allocation23 + $0xe8] sm:$0xff] }
 0xe5e   : > { %3810 = vmatmul.bf16.gmra.mxu1 %v3726_v17  ;;  %v6996_v17 = vld [vmem:[#allocation22 + $0xfc] sm:$0xf0] }
 0xeb4   : > { %v3823_v29 = vpop.xlane.xlu1 %3822 }
 0xeb5   : > { %v3829_v26 = vmul.f32 %v3823_v29, %v9788_v5  ;;  %v7002_v29 = vld [vmem:[#allocation22 + $0xf8] sm:$0xf] }
 0xeb7   : > { %v10107_v32 = vsub.f32 %v3815_v36, %v3829_v26  ;;  %v7956_v26 = vld [vmem:[#allocation22 + $0x100] sm:$0xf0] }
 0xeb9   : > { %v3835_v59 = vmul.f32 %v10107_v32, %v10107_v32 }
 0xebb   : > { %3838 = vadd.xlane.f32.xlu0 %v3835_v59  ;;  %v6999_v59 = vor.u32 %v7954_v25, %v6996_v17  ;;  %v7976_v25 = vld [vmem:[#allocation23 + $0xe0] sm:$0xff]  ;;  %v7974_v17 = vld [vmem:[#allocation23 + $0xd0] sm:$0xff] }
 0xebc   : > { %v3825_v42 = vpop.xlane.xlu2 %3824 }
 0xebd   : > { %v3830_v6 = vmul.f32 %v3825_v42, %v9788_v5  ;;  %v7003_v42 = vor.u32 %v7956_v26, %v7002_v29  ;;  %4091 = vmatpush.bf16.msra.mxu3 %v6999_v59  ;;  %v7987_v29 = vld [vmem:[#allocation23 + $0x138] sm:$0xff]  ;;  %v7973_v59 = vld [vmem:[#allocation23 + $0xc8] sm:$0xff] }
 0xebe   : > { %v7995_v26 = vld [vmem:[#allocation23 + $0x178] sm:$0xff] }
 0xebf   : > { %v10112_v16 = vsub.f32 %v3816_v44, %v3830_v6  ;;  %v7959_v44 = vld [vmem:[#allocation22 + $0x118] sm:$0xf0]  ;;  %v6982_v6 = vld [vmem:[#allocation22 + $0xd8] sm:$0xf] }
 0xec0   : > { %v7015_v13 = vor.u32 %v7959_v44, %v7014_v27 }
 0xec1   : > { %v3836_v9 = vmul.f32 %v10112_v16, %v10112_v16 }
 0xec2   : > { %4108 = vmatpush.bf16.msra.mxu0 %v7015_v13 }
 0xec3   : > { %3840 = vadd.xlane.f32.xlu1 %v3836_v9  ;;  %v7952_v9 = vld [vmem:[#allocation22 + $0xe0] sm:$0xf0] }
 0xec6   : > { %4109 = vmatpush.bf16.msra.mxu0 %v7003_v42  ;;  %v7994_v42 = vld [vmem:[#allocation23 + $0x170] sm:$0xff] }
 0xedb   : > { %v3811_v48 = vpop.f32.mrf.mxu1 }
 0xedc   : > { %v3812_v19 = vadd.f32 %v8398_v37, %v3811_v48  ;;  %v7006_v37 = vld [vmem:[#allocation22 + $0x108] sm:$0xf]  ;;  %v7951_v48 = vld [vmem:[#allocation22 + $0xdc] sm:$0xf] }
 0xedd   : > { %v7007_v36 = vor.u32 %v7958_v30, %v7006_v37  ;;  %v10126_v37 = vld [vmem:[#allocation20 + $0x1] ss:$0 sm:$0xff] }
 0xede   : > { %v10117_v24 = vadd.f32 %v3812_v19, %v9863_v40  ;;  %v7967_v40 = vld [vmem:[#allocation22 + $0x158] sm:$0xf0]  ;;  %v6983_v19 = vor.u32 %v7952_v9, %v6982_v6  ;;  %v7972_v6 = vld [vmem:[#allocation23 + $0xc0] sm:$0xff]  ;;  %v7985_v9 = vld [vmem:[#allocation23 + $0x128] sm:$0xff] }
 0xedf   : > { %v7043_v18 = vor.u32 %v7967_v40, %v7042_v50  ;;  %v6971_v50 = vor.u32 %v7949_v20, %v6970_v62  ;;  %v6972_v40 = vld [vmem:[#allocation22 + $0xcc] sm:$0xf0]  ;;  %v7981_v20 = vld [vmem:[#allocation23 + $0x108] sm:$0xff] }
 0xee0   : > { %v3826_v38 = vsel %vm949_vm0, %v10117_v24, 0.0 }
 0xee1   : > { %3827 = vadd.xlane.f32.xlu2 %v3826_v38  ;;  %4069 = vmatpush.bf16.msra.mxu2 %v7043_v18  ;;  %v6984_v38 = vld [vmem:[#allocation22 + $0xe4] sm:$0xf0]  ;;  %v6975_v18 = vor.u32 %v7948_v61, %v6972_v40  ;;  %v7988_v40 = vld [vmem:[#allocation23 + $0x140] sm:$0xff] }
 0xee2   : > { %v6987_v15 = vor.u32 %v7951_v48, %v6984_v38  ;;  %v7993_v48 = vld [vmem:[#allocation23 + $0x168] sm:$0xff]  ;;  %v7992_v38 = vld [vmem:[#allocation23 + $0x160] sm:$0xff] }
 0xee3   : > { %v3813_v39 = vpop.f32.mrf.mxu1  ;;  %v7989_v61 = vld [vmem:[#allocation23 + $0x148] sm:$0xff] }
 0xee4   : > { %v6990_v39 = vld [vmem:[#allocation22 + $0xe0] sm:$0xf]  ;;  %4092 = vmatpush.bf16.msra.mxu3 %v6987_v15 }
 0xee5   : > { %4070 = vmatpush.bf16.msra.mxu2 %v7031_v31  ;;  %v6991_v41 = vor.u32 %v7953_v21, %v6990_v39  ;;  %v7979_v31 = vld [vmem:[#allocation23 + $0xf8] sm:$0xff] }
 0xee6   : > { %4335 = vmatpush.bf16.msrb.mxu1 %v7979_v31  ;;  %v7983_v39 = vld [vmem:[#allocation23 + $0x118] sm:$0xff] }
 0xee7   : > { %4110 = vmatpush.bf16.msra.mxu0 %v6991_v41  ;;  %v7991_v21 = vld [vmem:[#allocation23 + $0x158] sm:$0xff]  ;;  %v7982_v41 = vld [vmem:[#allocation23 + $0x110] sm:$0xff] }
 0xee8   : > { %4093 = vmatpush.bf16.msra.mxu3 %v6975_v18  ;;  %v6967_v18 = vld [vmem:[%s10348_s29 + $0x3] sm:$0x7] }
 0xee9   : > { %4071 = vmatpush.bf16.msra.mxu2 %v7019_v2 }
 0xeea   : > { %4336 = vmatpush.bf16.msrb.mxu1 %v7978_v63 }
 0xeeb   : > { %4111 = vmatpush.bf16.msra.mxu0 %v6979_v45  ;;  %v3934_v45 = vperm.slane %v6967_v18, 0 }
 0xeec   : > { %4371 = vmatpush.bf16.msrb.mxu3 %v7995_v26 }
 0xeed   : > { %4072 = vmatpush.bf16.msra.mxu2 %v7007_v36 }
 0xeee   : > { %4337 = vmatpush.bf16.msrb.mxu1 %v7977_v23 }
 0xef0   : > { %4372 = vmatpush.bf16.msrb.mxu3 %v7994_v42 }
 0xef1   : > { %4073 = vmatpush.bf16.msra.mxu2 %v6995_v28  ;;  %v7975_v28 = vld [vmem:[#allocation23 + $0xd8] sm:$0xff] }
 0xef2   : > { %4338 = vmatpush.bf16.msrb.mxu1 %v7976_v25 }
 0xef4   : > { %4373 = vmatpush.bf16.msrb.mxu3 %v7993_v48 }
 0xef5   : > { %4074 = vmatpush.bf16.msra.mxu2 %v6983_v19  ;;  %v7984_v19 = vld [vmem:[#allocation23 + $0x120] sm:$0xff] }
 0xef6   : > { %4339 = vmatpush.bf16.msrb.mxu1 %v7975_v28 }
 0xef8   : > { %4374 = vmatpush.bf16.msrb.mxu3 %v7992_v38 }
 0xef9   : > { %4075 = vmatpush.bf16.msra.mxu2 %v6971_v50  ;;  %v7980_v50 = vld [vmem:[#allocation23 + $0x100] sm:$0xff] }
 0xefa   : > { %4340 = vmatpush.bf16.msrb.mxu1 %v7974_v17 }
 0xefc   : > { %4375 = vmatpush.bf16.msrb.mxu3 %v7991_v21 }
 0xefd   : > { %4353 = vmatpush.bf16.msrb.mxu2 %v7987_v29 }
 0xefe   : > { %4341 = vmatpush.bf16.msrb.mxu1 %v7973_v59 }
 0xf02   : > { %4342 = vmatpush.bf16.msrb.mxu1 %v7972_v6 }
 0xf2e   : > { %v3839_v55 = vpop.xlane.xlu0 %3838 }
 0xf2f   : > { %v3845_v10 = vmul.f32 %v3839_v55, %v9788_v5 }
 0xf31   : > { %v3848_v60 = vadd.f32 1e-05, %v3845_v10  ;;  %v7990_v10 = vld [vmem:[#allocation23 + $0x150] sm:$0xff] }
 0xf32   : > { %4376 = vmatpush.bf16.msrb.mxu3 %v7990_v10 }
 0xf33   : > { %8514 = vrsqrt.f32 %v3848_v60  ;;  %vm3857_vm4 = vweird.f32 %v3848_v60 }
 0xf36   : > { %v3841_v33 = vpop.xlane.xlu1 %3840  ;;  %4377 = vmatpush.bf16.msrb.mxu3 %v7989_v61 }
 0xf37   : > { %v3846_v47 = vmul.f32 %v3841_v33, %v9788_v5 }
 0xf39   : > { %v8515_v4 = vpop.eup %8514  ;;  %v3849_v49 = vadd.f32 1e-05, %v3846_v47 }
 0xf3a   : > { %v3852_v54 = vmul.f32 %v8515_v4, %v3848_v60  ;;  %vm3858_vm2 = vweird.f32 %v8515_v4  ;;  %4378 = vmatpush.bf16.msrb.mxu3 %v7988_v40 }
 0xf3b   : > { %8516 = vrsqrt.f32 %v3849_v49  ;;  %vm3859_vm10 = vmor %vm3857_vm4, %vm3858_vm2  ;;  %vm3867_vm9 = vweird.f32 %v3849_v49 }
 0xf3c   : > { %v3853_v56 = vmul.f32 %v8515_v4, %v3852_v54 }
 0xf3e   : > { %v3854_v58 = vmul.f32 0.5, %v3853_v56 }
 0xf40   : > { %v3855_v12 = vsub.f32 1.5, %v3854_v58 }
 0xf41   : > { %v8517_v46 = vpop.eup %8516 }
 0xf42   : > { %v3856_v52 = vmul.f32 %v8515_v4, %v3855_v12  ;;  %v3862_v1 = vmul.f32 %v8517_v46, %v3849_v49  ;;  %vm3868_vm11 = vweird.f32 %v8517_v46 }
 0xf43   : > { %vm3869_vm12 = vmor %vm3867_vm9, %vm3868_vm11 }
 0xf44   : > { %v3863_v22 = vmul.f32 %v8517_v46, %v3862_v1  ;;  %v3860_v34 = vsel %vm3859_vm10, %v8515_v4, %v3856_v52 }
 0xf45   : > { %v3881_v7 = vmul.f32 %v3860_v34, %v10107_v32 }
 0xf46   : > { %v3864_v2 = vmul.f32 0.5, %v3863_v22 }
 0xf47   : > { %v3887_v30 = vmul.f32 %v10123_v53, %v3881_v7 }
 0xf48   : > { %v3865_v3 = vsub.f32 1.5, %v3864_v2 }
 0xf49   : > { %v10132_v51 = vadd.f32 %v10126_v37, %v3887_v30  ;;  %v3935_v30 = vperm.slane %v6967_v18, 1 }
 0xf4a   : > { %v3866_v57 = vmul.f32 %v8517_v46, %v3865_v3 }
 0xf4c   : > { %v3870_v11 = vsel %vm3869_vm12, %v8517_v46, %v3866_v57 }
 0xf4d   : > { %v3882_v43 = vmul.f32 %v3870_v11, %v10112_v16  ;;  %v3936_v11 = vperm.slane %v6967_v18, 2 }
 0xf4f   : > { %v3888_v36 = vmul.f32 %v10123_v53, %v3882_v43 }
 0xf51   : > { %v10135_v27 = vadd.f32 %v10126_v37, %v3888_v36 }
 0xf53   : > { %v3896_v32 = vpack.c.bf16 %v10135_v27, %v10132_v51 }
 0xf54   : > { %v3828_v44 = vpop.xlane.xlu2 %3827 }
 0xf55   : > { %v3831_v35 = vmul.f32 %v3828_v44, %v9788_v5  ;;  %4076 = vmatmul.bf16.vlgmr.msra.gmra.mxu2 %v3896_v32  ;;  %4094 = vmatmul.bf16.vlgmr.msra.gmra.mxu3 %v3896_v32 }
 0xf56   : > { %4112 = vmatmul.bf16.vlgmr.msra.gmra.mxu0 %v3896_v32 }
 0xf57   : > { %v10141_v13 = vsub.f32 %v10117_v24, %v3831_v35  ;;  %v7986_v24 = vld [vmem:[#allocation23 + $0x130] sm:$0xff] }
 0xf58   : > { %4354 = vmatpush.bf16.msrb.mxu2 %v7986_v24 }
 0xf59   : > { %v3837_v16 = vmul.f32 %v10141_v13, %v10141_v13 }
 0xf5b   : > { %v3842_v14 = vsel %vm949_vm0, %v3837_v16, 0.0 }
 0xf5c   : > { %3843 = vadd.xlane.f32.xlu0 %v3842_v14  ;;  %4355 = vmatpush.bf16.msrb.mxu2 %v7985_v9 }
 0xf60   : > { %4356 = vmatpush.bf16.msrb.mxu2 %v7984_v19 }
 0xf64   : > { %4357 = vmatpush.bf16.msrb.mxu2 %v7983_v39 }
 0xf68   : > { %4358 = vmatpush.bf16.msrb.mxu2 %v7982_v41 }
 0xf6c   : > { %4359 = vmatpush.bf16.msrb.mxu2 %v7981_v20 }
 0xf70   : > { %4360 = vmatpush.bf16.msrb.mxu2 %v7980_v50 }
 0xfcf   : > { %v3844_v55 = vpop.xlane.xlu0 %3843 }
 0xfd0   : > { %v3847_v15 = vmul.f32 %v3844_v55, %v9788_v5  ;;  %v8401_v55 = vld [vmem:[%s10349_s11 + $0x1] ss:$0 sm:$0xff] }
 0xfd2   : > { %v3850_v62 = vadd.f32 1e-05, %v3847_v15 }
 0xfd3   : > { %v4113_v1 = vpop.f32.mrf.mxu0 }
 0xfd4   : > { %8518 = vrsqrt.f32 %v3850_v62  ;;  %vm3877_vm14 = vweird.f32 %v3850_v62  ;;  %v4114_v32 = vadd.f32 %v4113_v1, %v3936_v11 }
 0xfd8   : > { %v4077_v60 = vpop.f32.mrf.mxu2  ;;  %v4095_v22 = vpop.f32.mrf.mxu3 }
 0xfd9   : > { %v4078_v4 = vadd.f32 %v4077_v60, %v3934_v45  ;;  %v4096_v44 = vadd.f32 %v4095_v22, %v3935_v30  ;;  %v8016_v22 = vld [vmem:[#allocation26 + $0xa0] sm:$0xff] }
 0xfda   : > { %v8519_v0 = vpop.eup %8518 }
 0xfdb   : > { %v3872_v8 = vmul.f32 %v8519_v0, %v3850_v62  ;;  %vm3878_vm13 = vweird.f32 %v8519_v0  ;;  %v4122_v58 = vmax.f32 %v4078_v4, 0.0  ;;  %v4115_v7 = vpop.f32.mrf.mxu0  ;;  %v4123_v16 = vmax.f32 %v4096_v44, 0.0  ;;  %v8019_v4 = vld [vmem:[#allocation26 + $0xb8] sm:$0xff] }
 0xfdc   : > { %vm3879_vm15 = vmor %vm3877_vm14, %vm3878_vm13  ;;  %v4116_v43 = vadd.f32 %v4115_v7, %v3936_v11  ;;  %4703 = vmatpush.bf16.msra.mxu2 %v8019_v4  ;;  %v7999_v7 = vld [vmem:[#allocation26 + $0x18] sm:$0xff]  ;;  %v8040_v4 = vld [vmem:[#allocation26 + $0x160] sm:$0xff] }
 0xfdd   : > { %v3873_v33 = vmul.f32 %v8519_v0, %v3872_v8 }
 0xfde   : > { %v4127_v35 = vmax.f32 %v4116_v43, 0.0 }
 0xfdf   : > { %v3874_v47 = vmul.f32 0.5, %v3873_v33  ;;  %v8003_v33 = vld [vmem:[#allocation26 + $0x38] sm:$0xff] }
 0xfe0   : > { %v4079_v49 = vpop.f32.mrf.mxu2  ;;  %v4097_v57 = vpop.f32.mrf.mxu3  ;;  %4538 = vmatpush.bf16.msrb.mxu0 %v8003_v33  ;;  %v8031_v33 = vld [vmem:[#allocation26 + $0x118] sm:$0xff] }
 0xfe1   : > { %v3875_v54 = vsub.f32 1.5, %v3874_v47  ;;  %v4080_v56 = vadd.f32 %v4079_v49, %v3934_v45  ;;  %v4098_v36 = vadd.f32 %v4097_v57, %v3935_v30  ;;  %v8011_v47 = vld [vmem:[#allocation26 + $0x78] sm:$0xff] }
 0xfe2   : > { %v8027_v49 = vld [vmem:[#allocation26 + $0xf8] sm:$0xff]  ;;  %4623 = vmatpush.bf16.msra.mxu1 %v8011_v47  ;;  %v8057_v47 = vld [vmem:[#allocation26 + $0x1e8] sm:$0xff] }
 0xfe3   : > { %v3876_v31 = vmul.f32 %v8519_v0, %v3875_v54  ;;  %v4125_v63 = vmax.f32 %v4080_v56, 0.0  ;;  %v8002_v54 = vld [vmem:[#allocation26 + $0x30] sm:$0xff]  ;;  %4783 = vmatpush.bf16.msra.mxu3 %v8027_v49  ;;  %v8007_v57 = vld [vmem:[#allocation26 + $0x58] sm:$0xff]  ;;  %v8048_v49 = vld [vmem:[#allocation26 + $0x1a0] sm:$0xff] }
 0xfe4   : > { %v8010_v56 = vld [vmem:[#allocation26 + $0x70] sm:$0xff]  ;;  %4539 = vmatpush.bf16.msrb.mxu0 %v8002_v54 }
 0xfe5   : > { %v3880_v12 = vsel %vm3879_vm15, %v8519_v0, %v3876_v31  ;;  %v4131_v46 = vpack.c.bf16 %v4125_v63, %v4122_v58  ;;  %v8026_v31 = vld [vmem:[#allocation26 + $0xf0] sm:$0xff]  ;;  %v8001_v58 = vld [vmem:[#allocation26 + $0x28] sm:$0xff] }
 0xfe6   : > { %v3883_v52 = vmul.f32 %v3880_v12, %v10141_v13  ;;  %v4126_v13 = vmax.f32 %v4098_v36, 0.0  ;;  %4624 = vmatpush.bf16.msra.mxu1 %v8010_v56  ;;  %v8009_v63 = vld [vmem:[#allocation26 + $0x68] sm:$0xff]  ;;  %v8030_v54 = vld [vmem:[#allocation26 + $0x110] sm:$0xff]  ;;  %v8056_v56 = vld [vmem:[#allocation26 + $0x1e0] sm:$0xff] }
 0xfe7   : > { %4343 = vmatmul.bf16.vlgmr.msrb.gmra.mxu1 %v4131_v46  ;;  %4784 = vmatpush.bf16.msra.mxu3 %v8026_v31  ;;  %v8025_v12 = vld [vmem:[#allocation26 + $0xe8] sm:$0xff]  ;;  %v8000_v46 = vld [vmem:[#allocation26 + $0x20] sm:$0xff]  ;;  %v8047_v31 = vld [vmem:[#allocation26 + $0x198] sm:$0xff] }
 0xfe8   : > { %v3889_v34 = vmul.f32 %v10123_v53, %v3883_v52  ;;  %v4124_v53 = vmax.f32 %v4114_v32, 0.0  ;;  %v4132_v14 = vpack.c.bf16 %v4126_v13, %v4123_v16  ;;  %4540 = vmatpush.bf16.msrb.mxu0 %v8001_v58  ;;  %v8008_v52 = vld [vmem:[#allocation26 + $0x60] sm:$0xff]  ;;  %v7998_v13 = vld [vmem:[#allocation26 + $0x10] sm:$0xff]  ;;  %v8029_v58 = vld [vmem:[#allocation26 + $0x108] sm:$0xff] }
 0xfea   : > { %v10153_v2 = vadd.f32 %v10126_v37, %v3889_v34  ;;  %v4133_v37 = vpack.c.bf16 %v4127_v35, %v4124_v53  ;;  %4625 = vmatpush.bf16.msra.mxu1 %v8009_v63  ;;  %v8024_v34 = vld [vmem:[#allocation26 + $0xe0] sm:$0xff]  ;;  %v8006_v53 = vld [vmem:[#allocation26 + $0x50] sm:$0xff]  ;;  %v8055_v63 = vld [vmem:[#allocation26 + $0x1d8] sm:$0xff] }
 0xfeb   : > { %4785 = vmatpush.bf16.msra.mxu3 %v8025_v12  ;;  %v8046_v12 = vld [vmem:[#allocation26 + $0x190] sm:$0xff] }
 0xfec   : > { %v3897_v3 = vpack.c.bf16 %v10153_v2, %v10153_v2  ;;  %4541 = vmatpush.bf16.msrb.mxu0 %v8000_v46  ;;  %v8028_v46 = vld [vmem:[#allocation26 + $0x100] sm:$0xff] }
 0xfee   : > { %4081 = vmatmul.bf16.gmra.mxu2 %v3897_v3  ;;  %4099 = vmatmul.bf16.gmra.mxu3 %v3897_v3 }
 0xfef   : > { %4117 = vmatmul.bf16.gmra.mxu0 %v3897_v3  ;;  %4626 = vmatpush.bf16.msra.mxu1 %v8008_v52  ;;  %v8054_v52 = vld [vmem:[#allocation26 + $0x1d0] sm:$0xff] }
 0xff0   : > { %4786 = vmatpush.bf16.msra.mxu3 %v8024_v34  ;;  %4542 = vmatpush.bf16.msrb.mxu0 %v7999_v7 }
 0xff3   : > { %4627 = vmatpush.bf16.msra.mxu1 %v8007_v57  ;;  %v8053_v57 = vld [vmem:[#allocation26 + $0x1c8] sm:$0xff] }
 0xff4   : > { %4543 = vmatpush.bf16.msrb.mxu0 %v7998_v13 }
 0xff7   : > { %4628 = vmatpush.bf16.msra.mxu1 %v8006_v53 }
 0xffe   : > { %4361 = vmatmul.bf16.vlgmr.msrb.gmra.mxu2 %v4132_v14  ;;  %4379 = vmatmul.bf16.vlgmr.msrb.gmra.mxu3 %v4133_v37  ;;  %v8014_v37 = vld [vmem:[#allocation26 + $0x90] sm:$0xff] }
0x1064   : > { %v4344_v21 = vpop.f32.mrf.mxu1 }
0x1065   : > { %v4345_v15 = vadd.f32 %v8401_v55, %v4344_v21  ;;  %v8021_v21 = vld [vmem:[#allocation26 + $0xc8] sm:$0xff] }
0x106c   : > { %v4118_v23 = vpop.f32.mrf.mxu0  ;;  %v4346_v61 = vpop.f32.mrf.mxu1 }
0x106d   : > { %v4119_v25 = vadd.f32 %v4118_v23, %v3936_v11  ;;  %v4347_v50 = vadd.f32 %v8401_v55, %v4346_v61  ;;  %v8015_v11 = vld [vmem:[#allocation26 + $0x98] sm:$0xff]  ;;  %v8033_v61 = vld [vmem:[#allocation26 + $0x128] sm:$0xff] }
0x106f   : > { %v4130_v28 = vmax.f32 %v4119_v25, 0.0 }
0x1071   : > { %v4136_v17 = vpack.c.bf16 %v4130_v28, %v4130_v28  ;;  %v4082_v29 = vpop.f32.mrf.mxu2  ;;  %v4100_v26 = vpop.f32.mrf.mxu3 }
0x1072   : > { %v4083_v59 = vadd.f32 %v4082_v29, %v3934_v45  ;;  %v4101_v24 = vadd.f32 %v4100_v26, %v3935_v30  ;;  %v8023_v30 = vld [vmem:[#allocation26 + $0xd8] sm:$0xff]  ;;  %v7997_v29 = vld [vmem:[#allocation26 + $0x8] sm:$0xff] }
0x1073   : > { %4384 = vmatmul.bf16.gmra.mxu3 %v4136_v17  ;;  %4544 = vmatpush.bf16.msrb.mxu0 %v7997_v29 }
0x1074   : > { %v4128_v42 = vmax.f32 %v4083_v59, 0.0  ;;  %v4129_v6 = vmax.f32 %v4101_v24, 0.0  ;;  %v4120_v9 = vpop.f32.mrf.mxu0  ;;  %4787 = vmatpush.bf16.msra.mxu3 %v8023_v30 }
0x1075   : > { %v7996_v9 = vld [vmem:[#allocation26] sm:$0xff] }
0x1076   : > { %v4134_v48 = vpack.c.bf16 %v4128_v42, %v4128_v42  ;;  %v4135_v19 = vpack.c.bf16 %v4129_v6, %v4129_v6 }
0x1077   : > { %4545 = vmatpush.bf16.msrb.mxu0 %v7996_v9 }
0x1078   : > { %4348 = vmatmul.bf16.gmra.mxu1 %v4134_v48  ;;  %4366 = vmatmul.bf16.gmra.mxu2 %v4135_v19  ;;  %v8022_v48 = vld [vmem:[#allocation26 + $0xd0] sm:$0xff]  ;;  %v8035_v19 = vld [vmem:[#allocation26 + $0x138] sm:$0xff] }
0x1079   : > { %v4084_v38 = vpop.f32.mrf.mxu2  ;;  %v4102_v39 = vpop.f32.mrf.mxu3  ;;  %4788 = vmatpush.bf16.msra.mxu3 %v8022_v48 }
0x107a   : > { %v8005_v38 = vld [vmem:[#allocation26 + $0x48] sm:$0xff] }
0x107b   : > { %v8013_v39 = vld [vmem:[#allocation26 + $0x88] sm:$0xff]  ;;  %4863 = vmatpush.bf16.msra.mxu0 %v8035_v19  ;;  %4629 = vmatpush.bf16.msra.mxu1 %v8005_v38  ;;  %v10196_v19 = vld [vmem:[#allocation25 + $0x1] ss:$0 sm:$0xff] }
0x107d   : > { %4789 = vmatpush.bf16.msra.mxu3 %v8021_v21 }
0x1081   : > { %v4362_v41 = vpop.f32.mrf.mxu2  ;;  %v4380_v10 = vpop.f32.mrf.mxu3 }
0x1082   : > { %v4363_v62 = vadd.f32 %v4362_v41, %v4345_v15  ;;  %v8004_v15 = vld [vmem:[#allocation26 + $0x40] sm:$0xff] }
0x1083   : > { %v8012_v41 = vld [vmem:[#allocation26 + $0x80] sm:$0xff]  ;;  %4630 = vmatpush.bf16.msra.mxu1 %v8004_v15 }
0x1084   : > { %v4381_v20 = vadd.f32 %v4380_v10, %v4363_v62  ;;  %v8043_v10 = vld [vmem:[#allocation26 + $0x178] sm:$0xff] }
0x1085   : > { %v8051_v62 = vld [vmem:[#allocation26 + $0x1b8] sm:$0xff] }
0x1086   : > { %v4389_v60 = vadd.f32 %v4381_v20, %v10132_v51  ;;  %v8018_v51 = vld [vmem:[#allocation26 + $0xb0] sm:$0xff]  ;;  %v8020_v20 = vld [vmem:[#allocation26 + $0xc0] sm:$0xff] }
0x1087   : > { %4704 = vmatpush.bf16.msra.mxu2 %v8018_v51  ;;  %4943 = vmatpush.bf16.msrb.mxu1 %v8043_v10  ;;  %v8039_v51 = vld [vmem:[#allocation26 + $0x158] sm:$0xff] }
0x1088   : > { %4396 = vadd.xlane.f32.xlu1 %v4389_v60  ;;  %4790 = vmatpush.bf16.msra.mxu3 %v8020_v20 }
0x1089   : > { %v4364_v40 = vpop.f32.mrf.mxu2  ;;  %v4382_v18 = vpop.f32.mrf.mxu3 }
0x108a   : > { %v4365_v0 = vadd.f32 %v4364_v40, %v4347_v50  ;;  %v8042_v50 = vld [vmem:[#allocation26 + $0x170] sm:$0xff] }
0x108b   : > { %v8050_v40 = vld [vmem:[#allocation26 + $0x1b0] sm:$0xff]  ;;  %4944 = vmatpush.bf16.msrb.mxu1 %v8042_v50 }
0x108c   : > { %v4383_v8 = vadd.f32 %v4382_v18, %v4365_v0  ;;  %v8032_v0 = vld [vmem:[#allocation26 + $0x120] sm:$0xff]  ;;  %v8058_v18 = vld [vmem:[#allocation26 + $0x1f0] sm:$0xff] }
0x108e   : > { %v10162_v45 = vadd.f32 %v4383_v8, %v10135_v27  ;;  %v8017_v27 = vld [vmem:[#allocation26 + $0xa8] sm:$0xff] }
0x108f   : > { %4705 = vmatpush.bf16.msra.mxu2 %v8017_v27  ;;  %v8041_v8 = vld [vmem:[#allocation26 + $0x168] sm:$0xff]  ;;  %v8038_v27 = vld [vmem:[#allocation26 + $0x150] sm:$0xff] }
0x1090   : > { %4398 = vadd.xlane.f32.xlu2 %v10162_v45  ;;  %4945 = vmatpush.bf16.msrb.mxu1 %v8041_v8 }
0x1093   : > { %4706 = vmatpush.bf16.msra.mxu2 %v8016_v22  ;;  %v8045_v22 = vld [vmem:[#allocation26 + $0x188] sm:$0xff] }
0x1094   : > { %4946 = vmatpush.bf16.msrb.mxu1 %v8040_v4  ;;  %v8064_v4 = vld [vmem:[#allocation26 + $0x220] sm:$0xff] }
0x1097   : > { %4707 = vmatpush.bf16.msra.mxu2 %v8015_v11 }
0x1098   : > { %4947 = vmatpush.bf16.msrb.mxu1 %v8039_v51  ;;  %v8081_v51 = vld [vmem:[#allocation26 + $0x2a8] sm:$0xff] }
0x109b   : > { %4708 = vmatpush.bf16.msra.mxu2 %v8014_v37 }
0x109c   : > { %4948 = vmatpush.bf16.msrb.mxu1 %v8038_v27 }
0x109f   : > { %4709 = vmatpush.bf16.msra.mxu2 %v8013_v39 }
0x10a3   : > { %4710 = vmatpush.bf16.msra.mxu2 %v8012_v41 }
0x10a7   : > { %5023 = vmatpush.bf16.msrb.mxu2 %v8051_v62  ;;  %v8066_v62 = vld [vmem:[#allocation26 + $0x230] sm:$0xff] }
0x10ab   : > { %5024 = vmatpush.bf16.msrb.mxu2 %v8050_v40 }
0x10f5   : > { %v4349_v1 = vpop.f32.mrf.mxu1 }
0x10f6   : > { %v4385_v3 = vpop.f32.mrf.mxu3  ;;  %v4350_v43 = vadd.f32 %v8401_v55, %v4349_v1  ;;  %v8034_v55 = vld [vmem:[#allocation26 + $0x130] sm:$0xff]  ;;  %v8037_v1 = vld [vmem:[#allocation26 + $0x148] sm:$0xff] }
0x10f7   : > { %4864 = vmatpush.bf16.msra.mxu0 %v8034_v55  ;;  %4949 = vmatpush.bf16.msrb.mxu1 %v8037_v1  ;;  %v8067_v55 = vld [vmem:[#allocation26 + $0x238] sm:$0xff] }
0x10f8   : > { %v8071_v1 = vld [vmem:[#allocation26 + $0x258] sm:$0xff] }
0x10fb   : > { %v4367_v36 = vpop.f32.mrf.mxu2  ;;  %v4397_v32 = vpop.xlane.xlu1 %4396  ;;  %4865 = vmatpush.bf16.msra.mxu0 %v8033_v61  ;;  %v8075_v61 = vld [vmem:[#allocation26 + $0x278] sm:$0xff] }
0x10fc   : > { %v4368_v44 = vadd.f32 %v4367_v36, %v4350_v43  ;;  %v4403_v35 = vmul.f32 %v4397_v32, %v9788_v5  ;;  %v8036_v43 = vld [vmem:[#allocation26 + $0x140] sm:$0xff] }
0x10fd   : > { %v4351_v16 = vpop.f32.mrf.mxu1  ;;  %v8044_v36 = vld [vmem:[#allocation26 + $0x180] sm:$0xff]  ;;  %4950 = vmatpush.bf16.msrb.mxu1 %v8036_v43  ;;  %v8070_v43 = vld [vmem:[#allocation26 + $0x250] sm:$0xff] }
0x10fe   : > { %v4386_v14 = vadd.f32 %v4385_v3, %v4368_v44  ;;  %v10166_v23 = vsub.f32 %v4389_v60, %v4403_v35  ;;  %v4387_v25 = vpop.f32.mrf.mxu3  ;;  %v8059_v60 = vld [vmem:[#allocation26 + $0x1f8] sm:$0xff]  ;;  %v8052_v44 = vld [vmem:[#allocation26 + $0x1c0] sm:$0xff] }
0x10ff   : > { %5103 = vmatpush.bf16.msrb.mxu3 %v8059_v60  ;;  %4866 = vmatpush.bf16.msra.mxu0 %v8032_v0  ;;  %v8083_v60 = vld [vmem:[#allocation26 + $0x2b8] sm:$0xff]  ;;  %v8065_v0 = vld [vmem:[#allocation26 + $0x228] sm:$0xff] }
0x1100   : > { %v4409_v28 = vmul.f32 %v10166_v23, %v10166_v23  ;;  %v10171_v17 = vadd.f32 %v4386_v14, %v10153_v2 }
0x1102   : > { %4412 = vadd.xlane.f32.xlu0 %v4409_v28  ;;  %v4400_v26 = vsel %vm949_vm0, %v10171_v17, 0.0 }
0x1103   : > { %v4369_v59 = vpop.f32.mrf.mxu2  ;;  %v4399_v24 = vpop.xlane.xlu2 %4398  ;;  %4401 = vadd.xlane.f32.xlu1 %v4400_v26  ;;  %5104 = vmatpush.bf16.msrb.mxu3 %v8058_v18  ;;  %v8091_v18 = vld [vmem:[#allocation26 + $0x2f8] sm:$0xff] }
0x1104   : > { %v4404_v42 = vmul.f32 %v4399_v24, %v9788_v5  ;;  %4867 = vmatpush.bf16.msra.mxu0 %v8031_v33  ;;  %v8082_v33 = vld [vmem:[#allocation26 + $0x2b0] sm:$0xff] }
0x1106   : > { %v10177_v6 = vsub.f32 %v10162_v45, %v4404_v42  ;;  %v8049_v45 = vld [vmem:[#allocation26 + $0x1a8] sm:$0xff]  ;;  %v10193_v42 = vld [vmem:[%s10350_s22 + $0x1] ss:$0 sm:$0xff] }
0x1107   : > { %5025 = vmatpush.bf16.msrb.mxu2 %v8049_v45  ;;  %5105 = vmatpush.bf16.msrb.mxu3 %v8057_v47  ;;  %v8074_v45 = vld [vmem:[#allocation26 + $0x270] sm:$0xff] }
0x1108   : > { %v4410_v2 = vmul.f32 %v10177_v6, %v10177_v6  ;;  %4868 = vmatpush.bf16.msra.mxu0 %v8030_v54 }
0x110a   : > { %4414 = vadd.xlane.f32.xlu2 %v4410_v2 }
0x110b   : > { %5026 = vmatpush.bf16.msrb.mxu2 %v8048_v49  ;;  %5106 = vmatpush.bf16.msrb.mxu3 %v8056_v56  ;;  %v8090_v49 = vld [vmem:[#allocation26 + $0x2f0] sm:$0xff]  ;;  %v8073_v56 = vld [vmem:[#allocation26 + $0x268] sm:$0xff] }
0x110c   : > { %4869 = vmatpush.bf16.msra.mxu0 %v8029_v58  ;;  %v8089_v58 = vld [vmem:[#allocation26 + $0x2e8] sm:$0xff] }
0x110f   : > { %5027 = vmatpush.bf16.msrb.mxu2 %v8047_v31  ;;  %5107 = vmatpush.bf16.msrb.mxu3 %v8055_v63  ;;  %v8063_v31 = vld [vmem:[#allocation26 + $0x218] sm:$0xff] }
0x1110   : > { %4870 = vmatpush.bf16.msra.mxu0 %v8028_v46  ;;  %v8080_v46 = vld [vmem:[#allocation26 + $0x2a0] sm:$0xff] }
0x1113   : > { %5028 = vmatpush.bf16.msrb.mxu2 %v8046_v12  ;;  %5108 = vmatpush.bf16.msrb.mxu3 %v8054_v52  ;;  %v8072_v12 = vld [vmem:[#allocation26 + $0x260] sm:$0xff]  ;;  %v8062_v52 = vld [vmem:[#allocation26 + $0x210] sm:$0xff] }
0x1117   : > { %5029 = vmatpush.bf16.msrb.mxu2 %v8045_v22  ;;  %5109 = vmatpush.bf16.msrb.mxu3 %v8053_v57  ;;  %v8079_v22 = vld [vmem:[#allocation26 + $0x298] sm:$0xff]  ;;  %v8061_v57 = vld [vmem:[#allocation26 + $0x208] sm:$0xff] }
0x111b   : > { %5030 = vmatpush.bf16.msrb.mxu2 %v8044_v36  ;;  %5110 = vmatpush.bf16.msrb.mxu3 %v8052_v44  ;;  %v8078_v36 = vld [vmem:[#allocation26 + $0x290] sm:$0xff] }
0x1175   : > { %v4413_v34 = vpop.xlane.xlu0 %4412 }
0x1176   : > { %v4419_v3 = vmul.f32 %v4413_v34, %v9788_v5  ;;  %v4402_v7 = vpop.xlane.xlu1 %4401 }
0x1177   : > { %v4405_v11 = vmul.f32 %v4402_v7, %v9788_v5 }
0x1178   : > { %v4422_v30 = vadd.f32 1e-05, %v4419_v3 }
0x1179   : > { %v10184_v32 = vsub.f32 %v10171_v17, %v4405_v11  ;;  %v8087_v11 = vld [vmem:[#allocation26 + $0x2d8] sm:$0xff] }
0x117a   : > { %8520 = vrsqrt.f32 %v4422_v30  ;;  %vm4431_vm3 = vweird.f32 %v4422_v30 }
0x117b   : > { %v4411_v35 = vmul.f32 %v10184_v32, %v10184_v32 }
0x117d   : > { %v4415_v13 = vpop.xlane.xlu2 %4414  ;;  %v4416_v53 = vsel %vm949_vm0, %v4411_v35, 0.0  ;;  %v8060_v35 = vld [vmem:[#allocation26 + $0x200] sm:$0xff] }
0x117e   : > { %v4420_v16 = vmul.f32 %v4415_v13, %v9788_v5  ;;  %4417 = vadd.xlane.f32.xlu0 %v4416_v53  ;;  %v8086_v13 = vld [vmem:[#allocation26 + $0x2d0] sm:$0xff]  ;;  %v8099_v53 = vld [vmem:[#allocation26 + $0x338] sm:$0xff] }
0x1180   : > { %v8521_v37 = vpop.eup %8520  ;;  %v4423_v14 = vadd.f32 1e-05, %v4420_v16  ;;  %v8069_v16 = vld [vmem:[#allocation26 + $0x248] sm:$0xff] }
0x1181   : > { %v4426_v25 = vmul.f32 %v8521_v37, %v4422_v30  ;;  %vm4432_vm1 = vweird.f32 %v8521_v37 }
0x1182   : > { %8522 = vrsqrt.f32 %v4423_v14  ;;  %vm4433_vm0 = vmor %vm4431_vm3, %vm4432_vm1  ;;  %vm4441_vm6 = vweird.f32 %v4423_v14 }
0x1183   : > { %v4427_v28 = vmul.f32 %v8521_v37, %v4426_v25  ;;  %v8085_v25 = vld [vmem:[#allocation26 + $0x2c8] sm:$0xff] }
0x1185   : > { %v4428_v17 = vmul.f32 0.5, %v4427_v28  ;;  %v8098_v28 = vld [vmem:[#allocation26 + $0x330] sm:$0xff] }
0x1187   : > { %v4429_v29 = vsub.f32 1.5, %v4428_v17 }
0x1188   : > { %v8523_v26 = vpop.eup %8522 }
0x1189   : > { %v4430_v59 = vmul.f32 %v8521_v37, %v4429_v29  ;;  %v4436_v24 = vmul.f32 %v8523_v26, %v4423_v14  ;;  %vm4442_vm5 = vweird.f32 %v8523_v26  ;;  %v8068_v29 = vld [vmem:[#allocation26 + $0x240] sm:$0xff] }
0x118a   : > { %vm4443_vm7 = vmor %vm4441_vm6, %vm4442_vm5 }
0x118b   : > { %v4434_v2 = vsel %vm4433_vm0, %v8521_v37, %v4430_v59  ;;  %v4437_v48 = vmul.f32 %v8523_v26, %v4436_v24  ;;  %v8077_v37 = vld [vmem:[#allocation26 + $0x288] sm:$0xff]  ;;  %v8107_v59 = vld [vmem:[#allocation26 + $0x378] sm:$0xff] }
0x118c   : > { %v4455_v9 = vmul.f32 %v4434_v2, %v10166_v23  ;;  %v8115_v24 = vld [vmem:[#allocation26 + $0x3b8] sm:$0xff]  ;;  %v8084_v2 = vld [vmem:[#allocation26 + $0x2c0] sm:$0xff] }
0x118d   : > { %v4438_v39 = vmul.f32 0.5, %v4437_v48  ;;  %v8123_v48 = vld [vmem:[#allocation26 + $0x3f8] sm:$0xff] }
0x118e   : > { %v4461_v38 = vmul.f32 %v10193_v42, %v4455_v9  ;;  %v8097_v9 = vld [vmem:[#allocation26 + $0x328] sm:$0xff] }
0x118f   : > { %v4439_v41 = vsub.f32 1.5, %v4438_v39  ;;  %v8106_v39 = vld [vmem:[#allocation26 + $0x370] sm:$0xff] }
0x1190   : > { %v4467_v21 = vadd.f32 %v10196_v19, %v4461_v38 }
0x1191   : > { %v4440_v50 = vmul.f32 %v8523_v26, %v4439_v41  ;;  %v8122_v41 = vld [vmem:[#allocation26 + $0x3f0] sm:$0xff] }
0x1192   : > { %v4470_v15 = vpack.c.bf16 %v4467_v21, %v4467_v21  ;;  %v8114_v21 = vld [vmem:[#allocation26 + $0x3b0] sm:$0xff] }
0x1193   : > { %v4444_v47 = vsel %vm4443_vm7, %v8523_v26, %v4440_v50  ;;  %v8076_v26 = vld [vmem:[#allocation26 + $0x280] sm:$0xff] }
0x1194   : > { %4546 = vmatmul.bf16.vlgmr.msrb.gmra.mxu0 %v4470_v15  ;;  %v4569_v10 = vunpack.c.l.b16 %v4470_v15  ;;  %v4456_v54 = vmul.f32 %v4444_v47, %v10177_v6  ;;  %v8088_v6 = vld [vmem:[#allocation26 + $0x2e0] sm:$0xff]  ;;  %v8102_v47 = vld [vmem:[#allocation26 + $0x350] sm:$0xff] }
0x1195   : > { %5181 = vmatpush.bf16.msrb.mxu0 %v8067_v55  ;;  %v8096_v15 = vld [vmem:[#allocation26 + $0x320] sm:$0xff] }
0x1196   : > { %v4570_v20 = vpack.c.b16 %v4569_v10, %v4569_v10  ;;  %v4462_v27 = vmul.f32 %v10193_v42, %v4456_v54  ;;  %v8104_v50 = vld [vmem:[#allocation26 + $0x360] sm:$0xff]  ;;  %v8118_v54 = vld [vmem:[#allocation26 + $0x3d0] sm:$0xff] }
0x1198   : > { %v4572_v23 = vshrl.u32 %v4570_v20, 16  ;;  %v4653_v40 = vrot.slane %v4570_v20, 1  ;;  %v4813_v63 = vrot.slane %v4570_v20, 2  ;;  %v4468_v34 = vadd.f32 %v10196_v19, %v4462_v27  ;;  %v8100_v27 = vld [vmem:[#allocation26 + $0x340] sm:$0xff] }
0x1199   : > { %5182 = vmatpush.bf16.msrb.mxu0 %v8066_v62  ;;  %v4973_v7 = vrot.slane %v4570_v20, 3  ;;  %v8105_v62 = vld [vmem:[#allocation26 + $0x368] sm:$0xff] }
0x119a   : > { %4631 = vmatmul.bf16.vlgmr.msra.gmra.mxu1 %v4572_v23  ;;  %4711 = vmatmul.bf16.vlgmr.msra.gmra.mxu2 %v4653_v40  ;;  %v4733_v8 = vrot.slane %v4572_v23, 1  ;;  %v4893_v3 = vrot.slane %v4572_v23, 2  ;;  %v5053_v30 = vrot.slane %v4572_v23, 3  ;;  %v4471_v44 = vpack.c.bf16 %v4468_v34, %v4468_v34  ;;  %v8113_v20 = vld [vmem:[#allocation26 + $0x3a8] sm:$0xff]  ;;  %v8112_v23 = vld [vmem:[#allocation26 + $0x3a0] sm:$0xff]  ;;  %v8094_v40 = vld [vmem:[#allocation26 + $0x310] sm:$0xff] }
0x119b   : > { %5266 = vmatpush.bf16.msra.mxu1 %v8075_v61  ;;  %5346 = vmatpush.bf16.msra.mxu2 %v8083_v60  ;;  %v8095_v61 = vld [vmem:[#allocation26 + $0x318] sm:$0xff]  ;;  %v8121_v60 = vld [vmem:[#allocation26 + $0x3e8] sm:$0xff] }
0x119c   : > { %4791 = vmatmul.bf16.vlgmr.msra.gmra.mxu3 %v4733_v8  ;;  %v5212_v14 = vunpack.c.l.b16 %v4471_v44  ;;  %v8111_v8 = vld [vmem:[#allocation26 + $0x398] sm:$0xff] }
0x119d   : > { %5183 = vmatpush.bf16.msrb.mxu0 %v8065_v0  ;;  %5426 = vmatpush.bf16.msra.mxu3 %v8091_v18  ;;  %v8120_v0 = vld [vmem:[#allocation26 + $0x3e0] sm:$0xff]  ;;  %v8103_v18 = vld [vmem:[#allocation26 + $0x358] sm:$0xff] }
0x119e   : > { %v10203_v17 = vpack.c.b16 %v5212_v14, %v5212_v14  ;;  %v8147_v34 = vld [vmem:[#allocation26 + $0x4b8] sm:$0xff]  ;;  %v8126_v14 = vld [vmem:[#allocation26 + $0x410] sm:$0xff] }
0x119f   : > { %5267 = vmatpush.bf16.msra.mxu1 %v8074_v45  ;;  %5347 = vmatpush.bf16.msra.mxu2 %v8082_v33  ;;  %v8093_v45 = vld [vmem:[#allocation26 + $0x308] sm:$0xff]  ;;  %v8119_v33 = vld [vmem:[#allocation26 + $0x3d8] sm:$0xff] }
0x11a0   : > { %v10206_v38 = vshrl.u32 %v10203_v17, 16  ;;  %v5296_v55 = vrot.slane %v10203_v17, 1 }
0x11a1   : > { %5184 = vmatpush.bf16.msrb.mxu0 %v8064_v4  ;;  %5427 = vmatpush.bf16.msra.mxu3 %v8090_v49  ;;  %v8110_v4 = vld [vmem:[#allocation26 + $0x390] sm:$0xff]  ;;  %v8092_v49 = vld [vmem:[#allocation26 + $0x300] sm:$0xff] }
0x11a2   : > { %v5376_v10 = vrot.slane %v10206_v38, 1 }
0x11a3   : > { %5268 = vmatpush.bf16.msra.mxu1 %v8073_v56  ;;  %5348 = vmatpush.bf16.msra.mxu2 %v8081_v51  ;;  %v8131_v56 = vld [vmem:[#allocation26 + $0x438] sm:$0xff]  ;;  %v8101_v51 = vld [vmem:[#allocation26 + $0x348] sm:$0xff] }
0x11a4   : > { %4871 = vmatmul.bf16.vlgmr.msra.gmra.mxu0 %v4813_v63  ;;  %v5456_v63 = vrot.slane %v10203_v17, 2 }
0x11a5   : > { %5185 = vmatpush.bf16.msrb.mxu0 %v8063_v31  ;;  %5428 = vmatpush.bf16.msra.mxu3 %v8089_v58  ;;  %v8109_v31 = vld [vmem:[#allocation26 + $0x388] sm:$0xff] }
0x11a6   : > { %v8117_v58 = vld [vmem:[#allocation26 + $0x3c8] sm:$0xff] }
0x11a7   : > { %5269 = vmatpush.bf16.msra.mxu1 %v8072_v12  ;;  %5349 = vmatpush.bf16.msra.mxu2 %v8080_v46  ;;  %v8108_v12 = vld [vmem:[#allocation26 + $0x380] sm:$0xff] }
0x11a8   : > { %v8116_v46 = vld [vmem:[#allocation26 + $0x3c0] sm:$0xff] }
0x11a9   : > { %5186 = vmatpush.bf16.msrb.mxu0 %v8062_v52  ;;  %5429 = vmatpush.bf16.msra.mxu3 %v8088_v6  ;;  %v8130_v52 = vld [vmem:[#allocation26 + $0x430] sm:$0xff]  ;;  %v5536_v6 = vrot.slane %v10206_v38, 2 }
0x11aa   : > { %4951 = vmatmul.bf16.vlgmr.msrb.gmra.mxu1 %v4893_v3  ;;  %5031 = vmatmul.bf16.vlgmr.msrb.gmra.mxu2 %v4973_v7  ;;  %v5696_v3 = vrot.slane %v10206_v38, 3  ;;  %v8129_v7 = vld [vmem:[#allocation26 + $0x428] sm:$0xff] }
0x11ab   : > { %5270 = vmatpush.bf16.msra.mxu1 %v8071_v1  ;;  %5350 = vmatpush.bf16.msra.mxu2 %v8079_v22  ;;  %v5616_v1 = vrot.slane %v10203_v17, 3  ;;  %v8139_v22 = vld [vmem:[#allocation26 + $0x478] sm:$0xff] }
0x11ac   : > { %5111 = vmatmul.bf16.vlgmr.msrb.gmra.mxu3 %v5053_v30  ;;  %v8146_v30 = vld [vmem:[#allocation26 + $0x4b0] sm:$0xff]  ;;  %v8143_v17 = vld [vmem:[#allocation26 + $0x498] sm:$0xff] }
0x11ad   : > { %5187 = vmatpush.bf16.msrb.mxu0 %v8061_v57  ;;  %5430 = vmatpush.bf16.msra.mxu3 %v8087_v11  ;;  %v8155_v57 = vld [vmem:[#allocation26 + $0x4f8] sm:$0xff]  ;;  %v8138_v11 = vld [vmem:[#allocation26 + $0x470] sm:$0xff] }
0x11af   : > { %5271 = vmatpush.bf16.msra.mxu1 %v8070_v43  ;;  %5351 = vmatpush.bf16.msra.mxu2 %v8078_v36  ;;  %v8128_v43 = vld [vmem:[#allocation26 + $0x420] sm:$0xff]  ;;  %v8154_v36 = vld [vmem:[#allocation26 + $0x4f0] sm:$0xff] }
0x11b1   : > { %5188 = vmatpush.bf16.msrb.mxu0 %v8060_v35  ;;  %5431 = vmatpush.bf16.msra.mxu3 %v8086_v13  ;;  %v8145_v35 = vld [vmem:[#allocation26 + $0x4a8] sm:$0xff]  ;;  %v8127_v13 = vld [vmem:[#allocation26 + $0x418] sm:$0xff] }
0x11b3   : > { %5272 = vmatpush.bf16.msra.mxu1 %v8069_v16  ;;  %5352 = vmatpush.bf16.msra.mxu2 %v8077_v37  ;;  %v8136_v16 = vld [vmem:[#allocation26 + $0x460] sm:$0xff] }
0x11b4   : > { %5189 = vmatmul.bf16.vlgmr.msrb.gmra.mxu0 %v4471_v44  ;;  %v8137_v44 = vld [vmem:[#allocation26 + $0x468] sm:$0xff]  ;;  %v8144_v37 = vld [vmem:[#allocation26 + $0x4a0] sm:$0xff] }
0x11b5   : > { %5506 = vmatpush.bf16.msra.mxu0 %v8099_v53  ;;  %5432 = vmatpush.bf16.msra.mxu3 %v8085_v25  ;;  %v8153_v53 = vld [vmem:[#allocation26 + $0x4e8] sm:$0xff]  ;;  %v8152_v25 = vld [vmem:[#allocation26 + $0x4e0] sm:$0xff] }
0x11b7   : > { %5273 = vmatpush.bf16.msra.mxu1 %v8068_v29  ;;  %5353 = vmatpush.bf16.msra.mxu2 %v8076_v26  ;;  %v8125_v29 = vld [vmem:[#allocation26 + $0x408] sm:$0xff]  ;;  %v8151_v26 = vld [vmem:[#allocation26 + $0x4d8] sm:$0xff] }
0x11b9   : > { %5507 = vmatpush.bf16.msra.mxu0 %v8098_v28  ;;  %5433 = vmatpush.bf16.msra.mxu3 %v8084_v2  ;;  %v8135_v28 = vld [vmem:[#allocation26 + $0x458] sm:$0xff]  ;;  %v8124_v2 = vld [vmem:[#allocation26 + $0x400] sm:$0xff] }
0x11ba   : > { %5274 = vmatmul.bf16.vlgmr.msra.gmra.mxu1 %v10206_v38  ;;  %5354 = vmatmul.bf16.vlgmr.msra.gmra.mxu2 %v5296_v55  ;;  %v8141_v38 = vld [vmem:[#allocation26 + $0x488] sm:$0xff] }
0x11bb   : > { %5586 = vmatpush.bf16.msrb.mxu1 %v8107_v59  ;;  %5666 = vmatpush.bf16.msrb.mxu2 %v8115_v24  ;;  %v8134_v59 = vld [vmem:[#allocation26 + $0x450] sm:$0xff] }
0x11bc   : > { %5434 = vmatmul.bf16.vlgmr.msra.gmra.mxu3 %v5376_v10  ;;  %v8142_v24 = vld [vmem:[#allocation26 + $0x490] sm:$0xff]  ;;  %v8148_v10 = vld [vmem:[#allocation26 + $0x4c0] sm:$0xff] }
0x11bd   : > { %5508 = vmatpush.bf16.msra.mxu0 %v8097_v9  ;;  %5746 = vmatpush.bf16.msrb.mxu3 %v8123_v48  ;;  %v8150_v9 = vld [vmem:[#allocation26 + $0x4d0] sm:$0xff]  ;;  %v8133_v48 = vld [vmem:[#allocation26 + $0x448] sm:$0xff] }
0x11bf   : > { %5587 = vmatpush.bf16.msrb.mxu1 %v8106_v39  ;;  %5667 = vmatpush.bf16.msrb.mxu2 %v8114_v21  ;;  %v8149_v39 = vld [vmem:[#allocation26 + $0x4c8] sm:$0xff] }
0x11c1   : > { %5509 = vmatpush.bf16.msra.mxu0 %v8096_v15  ;;  %5747 = vmatpush.bf16.msrb.mxu3 %v8122_v41  ;;  %v8132_v15 = vld [vmem:[#allocation26 + $0x440] sm:$0xff] }
0x11c2   : > { %v8140_v41 = vld [vmem:[#allocation26 + $0x480] sm:$0xff] }
0x11c3   : > { %5588 = vmatpush.bf16.msrb.mxu1 %v8105_v62  ;;  %5668 = vmatpush.bf16.msrb.mxu2 %v8113_v20 }
0x11c5   : > { %5510 = vmatpush.bf16.msra.mxu0 %v8095_v61  ;;  %5748 = vmatpush.bf16.msrb.mxu3 %v8121_v60 }
0x11c7   : > { %5589 = vmatpush.bf16.msrb.mxu1 %v8104_v50  ;;  %5669 = vmatpush.bf16.msrb.mxu2 %v8112_v23 }
0x11c9   : > { %5511 = vmatpush.bf16.msra.mxu0 %v8094_v40  ;;  %5749 = vmatpush.bf16.msrb.mxu3 %v8120_v0 }
0x11cb   : > { %5590 = vmatpush.bf16.msrb.mxu1 %v8103_v18  ;;  %5670 = vmatpush.bf16.msrb.mxu2 %v8111_v8 }
0x11cd   : > { %5512 = vmatpush.bf16.msra.mxu0 %v8093_v45  ;;  %5750 = vmatpush.bf16.msrb.mxu3 %v8119_v33 }
0x11cf   : > { %5591 = vmatpush.bf16.msrb.mxu1 %v8102_v47  ;;  %5671 = vmatpush.bf16.msrb.mxu2 %v8110_v4 }
0x11d1   : > { %5513 = vmatpush.bf16.msra.mxu0 %v8092_v49  ;;  %5751 = vmatpush.bf16.msrb.mxu3 %v8118_v54  ;;  %v4473_v49 = vld [vmem:[%s10355_s7] sm:$0x1] }
0x11d3   : > { %5592 = vmatpush.bf16.msrb.mxu1 %v8101_v51  ;;  %5672 = vmatpush.bf16.msrb.mxu2 %v8109_v31 }
0x11d4   : > { %5514 = vmatmul.bf16.vlgmr.msra.gmra.mxu0 %v5456_v63 }
0x11d5   : > { %5824 = vmatpush.bf16.msrb.mxu0 %v8131_v56  ;;  %5752 = vmatpush.bf16.msrb.mxu3 %v8117_v58 }
0x11d7   : > { %5593 = vmatpush.bf16.msrb.mxu1 %v8100_v27  ;;  %5673 = vmatpush.bf16.msrb.mxu2 %v8108_v12 }
0x11d9   : > { %5753 = vmatpush.bf16.msrb.mxu3 %v8116_v46  ;;  %5825 = vmatpush.bf16.msrb.mxu0 %v8130_v52 }
0x11da   : > { %5594 = vmatmul.bf16.vlgmr.msrb.gmra.mxu1 %v5536_v6  ;;  %5674 = vmatmul.bf16.vlgmr.msrb.gmra.mxu2 %v5616_v1 }
0x11db   : > { %5909 = vmatpush.bf16.msra.mxu1 %v8139_v22  ;;  %5989 = vmatpush.bf16.msra.mxu2 %v8147_v34 }
0x11dc   : > { %5754 = vmatmul.bf16.vlgmr.msrb.gmra.mxu3 %v5696_v3 }
0x11dd   : > { %5826 = vmatpush.bf16.msrb.mxu0 %v8129_v7  ;;  %6069 = vmatpush.bf16.msra.mxu3 %v8155_v57 }
0x11df   : > { %5910 = vmatpush.bf16.msra.mxu1 %v8138_v11  ;;  %5990 = vmatpush.bf16.msra.mxu2 %v8146_v30 }
0x11e1   : > { %5827 = vmatpush.bf16.msrb.mxu0 %v8128_v43  ;;  %6070 = vmatpush.bf16.msra.mxu3 %v8154_v36 }
0x11e3   : > { %5911 = vmatpush.bf16.msra.mxu1 %v8137_v44  ;;  %5991 = vmatpush.bf16.msra.mxu2 %v8145_v35 }
0x11e5   : > { %5828 = vmatpush.bf16.msrb.mxu0 %v8127_v13  ;;  %6071 = vmatpush.bf16.msra.mxu3 %v8153_v53 }
0x11e7   : > { %5912 = vmatpush.bf16.msra.mxu1 %v8136_v16  ;;  %5992 = vmatpush.bf16.msra.mxu2 %v8144_v37 }
0x11e9   : > { %5829 = vmatpush.bf16.msrb.mxu0 %v8126_v14  ;;  %6072 = vmatpush.bf16.msra.mxu3 %v8152_v25 }
0x11eb   : > { %5913 = vmatpush.bf16.msra.mxu1 %v8135_v28  ;;  %5993 = vmatpush.bf16.msra.mxu2 %v8143_v17 }
0x11ed   : > { %5830 = vmatpush.bf16.msrb.mxu0 %v8125_v29  ;;  %6073 = vmatpush.bf16.msra.mxu3 %v8151_v26 }
0x11ef   : > { %5914 = vmatpush.bf16.msra.mxu1 %v8134_v59  ;;  %5994 = vmatpush.bf16.msra.mxu2 %v8142_v24 }
0x11f1   : > { %5831 = vmatpush.bf16.msrb.mxu0 %v8124_v2  ;;  %6074 = vmatpush.bf16.msra.mxu3 %v8150_v9  ;;  %v4418_v21 = vpop.xlane.xlu0 %4417 }
0x11f2   : > { %v4421_v55 = vmul.f32 %v4418_v21, %v9788_v5 }
0x11f3   : > { %5915 = vmatpush.bf16.msra.mxu1 %v8133_v48  ;;  %5995 = vmatpush.bf16.msra.mxu2 %v8141_v38 }
0x11f4   : > { %v4424_v62 = vadd.f32 1e-05, %v4421_v55 }
0x11f5   : > { %6075 = vmatpush.bf16.msra.mxu3 %v8149_v39 }
0x11f6   : > { %8524 = vrsqrt.f32 %v4424_v62  ;;  %vm4451_vm2 = vweird.f32 %v4424_v62 }
0x11f7   : > { %5916 = vmatpush.bf16.msra.mxu1 %v8132_v15  ;;  %5996 = vmatpush.bf16.msra.mxu2 %v8140_v41 }
0x11f9   : > { %6076 = vmatpush.bf16.msra.mxu3 %v8148_v10 }
0x11fc   : > { %v8525_v20 = vpop.eup %8524 }
0x11fd   : > { %v4446_v61 = vmul.f32 %v8525_v20, %v4424_v62  ;;  %vm4452_vm8 = vweird.f32 %v8525_v20 }
0x11fe   : > { %vm4453_vm4 = vmor %vm4451_vm2, %vm4452_vm8 }
0x11ff   : > { %v4447_v60 = vmul.f32 %v8525_v20, %v4446_v61 }
0x1201   : > { %v4448_v50 = vmul.f32 0.5, %v4447_v60 }
0x1203   : > { %v4449_v23 = vsub.f32 1.5, %v4448_v50 }
0x1205   : > { %v4450_v40 = vmul.f32 %v8525_v20, %v4449_v23 }
0x1207   : > { %v4454_v0 = vsel %vm4453_vm4, %v8525_v20, %v4450_v40 }
0x1208   : > { %v4457_v5 = vmul.f32 %v4454_v0, %v10184_v32 }
0x120a   : > { %v4463_v18 = vmul.f32 %v10193_v42, %v4457_v5 }
0x120c   : > { %v4469_v8 = vadd.f32 %v10196_v19, %v4463_v18 }
0x120e   : > { %v4472_v45 = vpack.c.bf16 %v4469_v8, %v4469_v8 }
0x1210   : > { %5832 = vmatmul.bf16.vlgmr.msrb.gmra.mxu0 %v4472_v45  ;;  %v5855_v33 = vunpack.c.l.b16 %v4472_v45 }
0x1211   : > { %v4547_v47 = vpop.f32.mrf.mxu0 }
0x1212   : > { %v5856_v4 = vpack.c.b16 %v5855_v33, %v5855_v33  ;;  %v4551_v51 = vadd.f32 %v4547_v47, %v4473_v49 }
0x1214   : > { %v5858_v54 = vshrl.u32 %v5856_v4, 16  ;;  %v5939_v56 = vrot.slane %v5856_v4, 1 }
0x1216   : > { %5917 = vmatmul.bf16.vlgmr.msra.gmra.mxu1 %v5858_v54  ;;  %5997 = vmatmul.bf16.vlgmr.msra.gmra.mxu2 %v5939_v56  ;;  %v6019_v31 = vrot.slane %v5858_v54, 1 }
0x1217   : > { %v4632_v32 = vpop.f32.mrf.mxu1 }
0x1218   : > { %v4636_v58 = vadd.f32 %v4632_v32, %v4551_v51  ;;  %6077 = vmatmul.bf16.vlgmr.msra.gmra.mxu3 %v6019_v31 }
0x1219   : > { %v4549_v42 = vpop.f32.mrf.mxu0 }
0x121d   : > { %v4712_v19 = vpop.f32.mrf.mxu2 }
0x121e   : > { %v4716_v63 = vadd.f32 %v4712_v19, %v4636_v58 }
0x121f   : > { %v4634_v27 = vpop.f32.mrf.mxu1  ;;  %v4792_v12 = vpop.f32.mrf.mxu3 }
0x1220   : > { %v4796_v46 = vadd.f32 %v4792_v12, %v4716_v63 }
0x1221   : > { %v4872_v52 = vpop.f32.mrf.mxu0 }
0x1222   : > { %v4876_v6 = vadd.f32 %v4872_v52, %v4796_v46 }
0x1225   : > { %v4714_v1 = vpop.f32.mrf.mxu2 }
0x1227   : > { %v4794_v22 = vpop.f32.mrf.mxu3  ;;  %v4952_v34 = vpop.f32.mrf.mxu1 }
0x1228   : > { %v4956_v3 = vadd.f32 %v4952_v34, %v4876_v6 }
0x1229   : > { %v4874_v7 = vpop.f32.mrf.mxu0 }
0x122d   : > { %v5032_v57 = vpop.f32.mrf.mxu2 }
0x122e   : > { %v5036_v11 = vadd.f32 %v5032_v57, %v4956_v3 }
0x122f   : > { %v4954_v30 = vpop.f32.mrf.mxu1  ;;  %v5112_v43 = vpop.f32.mrf.mxu3 }
0x1230   : > { %v5116_v36 = vadd.f32 %v5112_v43, %v5036_v11 }
0x1231   : > { %v5190_v44 = vpop.f32.mrf.mxu0 }
0x1232   : > { %v5194_v35 = vadd.f32 %v5190_v44, %v5116_v36 }
0x1235   : > { %v5034_v13 = vpop.f32.mrf.mxu2 }
0x1237   : > { %v5114_v53 = vpop.f32.mrf.mxu3  ;;  %v5275_v16 = vpop.f32.mrf.mxu1 }
0x1238   : > { %v5279_v37 = vadd.f32 %v5275_v16, %v5194_v35 }
0x1239   : > { %v5192_v14 = vpop.f32.mrf.mxu0 }
0x123d   : > { %v5355_v25 = vpop.f32.mrf.mxu2 }
0x123e   : > { %v5359_v28 = vadd.f32 %v5355_v25, %v5279_v37 }
0x123f   : > { %v5277_v17 = vpop.f32.mrf.mxu1  ;;  %v5435_v29 = vpop.f32.mrf.mxu3 }
0x1240   : > { %v5439_v26 = vadd.f32 %v5435_v29, %v5359_v28 }
0x1245   : > { %v5357_v59 = vpop.f32.mrf.mxu2 }
0x1247   : > { %v5437_v24 = vpop.f32.mrf.mxu3 }
0x1251   : > { %v5515_v2 = vpop.f32.mrf.mxu0 }
0x1252   : > { %v5519_v41 = vadd.f32 %v5515_v2, %v5439_v26 }
0x1257   : > { %v5595_v9 = vpop.f32.mrf.mxu1 }
0x1258   : > { %v5599_v62 = vadd.f32 %v5595_v9, %v5519_v41 }
0x1259   : > { %v5517_v48 = vpop.f32.mrf.mxu0 }
0x125d   : > { %v5675_v38 = vpop.f32.mrf.mxu2 }
0x125e   : > { %v5679_v20 = vadd.f32 %v5675_v38, %v5599_v62 }
0x125f   : > { %v5597_v39 = vpop.f32.mrf.mxu1  ;;  %v5755_v21 = vpop.f32.mrf.mxu3 }
0x1260   : > { %v5759_v60 = vadd.f32 %v5755_v21, %v5679_v20 }
0x1265   : > { %v5677_v55 = vpop.f32.mrf.mxu2 }
0x1267   : > { %v5757_v15 = vpop.f32.mrf.mxu3 }
0x128d   : > { %v5833_v10 = vpop.f32.mrf.mxu0 }
0x128e   : > { %v5837_v23 = vadd.f32 %v5833_v10, %v5759_v60 }
0x1293   : > { %v5918_v61 = vpop.f32.mrf.mxu1 }
0x1294   : > { %v5922_v40 = vadd.f32 %v5918_v61, %v5837_v23 }
0x1295   : > { %v5835_v50 = vpop.f32.mrf.mxu0 }
0x1299   : > { %v5998_v0 = vpop.f32.mrf.mxu2 }
0x129a   : > { %v6002_v5 = vadd.f32 %v5998_v0, %v5922_v40 }
0x129b   : > { %v5920_v18 = vpop.f32.mrf.mxu1  ;;  %v6078_v8 = vpop.f32.mrf.mxu3 }
0x129c   : > { %v6082_v45 = vadd.f32 %v6078_v8, %v6002_v5 }
0x129e   : > { %6083 = vst [vmem:[%s936_s18] sm:$0x1] %v6082_v45 }
0x129f   : > { %9033 = shalt.err (!%p9030_p10)
}
0x12a0   : > { %8216 = dma.vmem_to_hbm [thread:$0]  (%p9410_p0), %s6096_s0, 16, %s6098_s16, %s6085_s9  }
0x12a1   : > { %v6000_v33 = vpop.f32.mrf.mxu2 }
0x12a3   : > { %v6080_v47 = vpop.f32.mrf.mxu3 }
0x12a4 PF: > { %s6109_s12 = sand.u32 1, %s9096_s2   ;;  %p10357_p12 = scmp.ge.s32.totalorder %s9108_s27, 2 }
0x12a5   : > { %s6110_s6 = scalar_lea.sflag [#allocation4], %s6109_s12 }
0x12a6   : > { %p8269_p5 = pnand %p10357_p12, %p9416_p6 }
0x12a8   : > { %p8270_p11 = pneg %p8269_p5 }
0x12aa   : > { %9091 = dma.done.wait (%p8270_p11), %s6110_s6, 16  }
0x12ab   : > { %9093 = vsyncadd (%p8270_p11), %s6110_s6, 4294967280  ;;  %p44_p0 = scmp.ge.s32.totalorder %s9386_s20, 4   ;;  %s10358_s2 = smov %s9100_s25 }
0x12ac   : > { %s10359_s25 = smov %s9104_s26  ;;  %s10360_s26 = smov %s9398_s1 }
0x12ad   : > { %s10361_s27 = smov %s9386_s20  ;;  %46 = sbr.rel (!%p44_p0) target bundleno = 36 (0x24), region = 230 }
0x12b2   :  { %6115 = vsyncpa [#allocation3], 1 }
0x12b3   :  { %6117 = vsyncpa [#allocation3 + $0x1], 1 }
0x12b4   :  { %6118 = vsyncpa [#allocation6], 1 }
0x12b5   :  { %6120 = vsyncpa [#allocation6 + $0x1], 1 }
0x12b6   :  { %6121 = vsyncpa [#allocation9], 1 }
0x12b7   :  { %6122 = vsyncpa [#allocation12], 1 }
0x12b8   :  { %6123 = vsyncpa [#allocation15], 1 }
0x12b9   :  { %6124 = vsyncpa [#allocation18], 1 }
0x12ba   :  { %6125 = vsyncpa [#allocation21], 1 }
0x12bb   :  { %6126 = vsyncpa [#allocation24], 1 }
0x12bc   :  { %6127 = vsyncpa [#allocation27], 1 }
0x12bd   :  { %6128 = vsyncpa [#allocation4], 1 }
0x12be   :  { %6130 = vsyncpa [#allocation4 + $0x1], 1 }

</bundles_post_ra>
